<compile_context>
chip_gen: v7x
topology: tpu7x:2x2x1
jax: 0.10.0
libtpu: 0.0.40
codegen_flags: <defaults>
</compile_context>

<pallas_src>
import functools

import jax
import jax.numpy as jnp
from jax.experimental import pallas as pl
from jax.experimental.pallas import tpu as pltpu


def _fused_motion_kernel(prev_ref, cur_ref, w1_ref, b1_ref, w2_ref, b2_ref,
                         o_ref,
                         xpad_ref, y1pad_ref, im1_ref, im2_ref,
                         *, H, W, Cin, Cout, neg_slope):
    """One batch element per grid step.

    prev_ref, cur_ref : (1, H, W, Cin)         NHWC input tiles (VMEM)
    w1_ref            : (9*2*Cin, Cout)        conv1 weights, im2col row order
    b1_ref            : (1, Cout)
    w2_ref            : (9*Cout, Cout)         conv2 weights, im2col row order
    b2_ref            : (1, Cout)
    o_ref             : (1, Cout, H*W)         lane-dense NCHW-flat output
    xpad_ref          : (H+2, W+2, 2*Cin)      zero-padded concat input (scratch)
    y1pad_ref         : (H+2, W+2, Cout)       zero-padded conv1 output (scratch)
    im1_ref           : (H*W, 9*2*Cin)         im2col block for conv1 (scratch)
    im2_ref           : (H*W, 9*Cout)          im2col block for conv2 (scratch)
    """
    Cin2 = 2 * Cin

    # ---- stage 0: channel concat + zero padding, entirely in VMEM ----------
    xpad_ref[...] = jnp.zeros_like(xpad_ref)
    xpad_ref[1:H + 1, 1:W + 1, 0:Cin] = prev_ref[0].astype(xpad_ref.dtype)
    xpad_ref[1:H + 1, 1:W + 1, Cin:Cin2] = cur_ref[0].astype(xpad_ref.dtype)

    def conv3x3(src_pad_ref, im_ref, w_ref, b_ref, C):
        # 3x3 "SAME" conv as ONE MXU matmul: build im2col (H*W, 9*C) in VMEM
        # from 9 shifted HxW windows, then (H*W, 9C) x (9C, Cout).
        xp = src_pad_ref[...]                               # (H+2, W+2, C)
        for dy in range(3):
            for dx in range(3):
                t = dy * 3 + dx
                patch = xp[dy:dy + H, dx:dx + W, :]         # (H, W, C), static slice
                im_ref[:, t * C:(t + 1) * C] = patch.reshape(H * W, C)
        acc = jnp.dot(im_ref[...], w_ref[...],
                      preferred_element_type=jnp.float32)   # (H*W, Cout) f32
        acc = acc + b_ref[...]                              # bias (1, Cout), single broadcast
        return jnp.where(acc >= 0, acc, neg_slope * acc)    # LeakyReLU(0.1)

    # ---- conv1 + LeakyReLU --------------------------------------------------
    y1 = conv3x3(xpad_ref, im1_ref, w1_ref, b1_ref, Cin2)   # (H*W, Cout) f32

    # conv1 output stays in VMEM (zero halo) and feeds conv2 directly.
    y1pad_ref[...] = jnp.zeros_like(y1pad_ref)
    y1pad_ref[1:H + 1, 1:W + 1, :] = y1.reshape(H, W, Cout).astype(y1pad_ref.dtype)

    # ---- conv2 + LeakyReLU --------------------------------------------------
    y2 = conv3x3(y1pad_ref, im2_ref, w2_ref, b2_ref, Cout)  # (H*W, Cout) f32

    # ---- lane-dense NCHW output: (Cout, H*W), last dim >= 128 ---------------
    o_ref[0] = y2.T.astype(o_ref.dtype)


@functools.partial(jax.jit, static_argnames=("neg_slope", "compute_dtype"))
def motion_estimator_forward(prev_nchw, cur_nchw, w1, b1, w2, b2, *,
                             neg_slope=0.1, compute_dtype=jnp.float32):
    """prev/cur: (N, Cin, H, W) NCHW; w*: (3, 3, in, out) HWIO; b*: (out,)."""
    N, Cin, H, W = prev_nchw.shape
    Cout = w1.shape[-1]
    Cin2 = 2 * Cin
    assert w1.shape == (3, 3, Cin2, Cout), w1.shape
    assert w2.shape == (3, 3, Cout, Cout), w2.shape

    # Only per-input NCHW -> NHWC transposes remain in the wrapper (tiny); the
    # channel concat, padding, both convs and activations are fused in-kernel.
    prev = jnp.transpose(prev_nchw, (0, 2, 3, 1))
    cur = jnp.transpose(cur_nchw, (0, 2, 3, 1))

    # im2col weight layout: row index = (dy*3 + dx)*C_in + c  (plain reshape).
    w1_2d = w1.reshape(9 * Cin2, Cout).astype(compute_dtype)
    w2_2d = w2.reshape(9 * Cout, Cout).astype(compute_dtype)
    b1_2d = b1.reshape(1, Cout).astype(jnp.float32)
    b2_2d = b2.reshape(1, Cout).astype(jnp.float32)

    kernel = functools.partial(_fused_motion_kernel, H=H, W=W, Cin=Cin,
                               Cout=Cout, neg_slope=neg_slope)

    out_flat = pl.pallas_call(
        kernel,
        out_shape=jax.ShapeDtypeStruct((N, Cout, H * W), prev_nchw.dtype),
        grid=(N,),
        in_specs=[
            pl.BlockSpec((1, H, W, Cin), lambda n: (n, 0, 0, 0)),   # prev
            pl.BlockSpec((1, H, W, Cin), lambda n: (n, 0, 0, 0)),   # cur
            pl.BlockSpec((9 * Cin2, Cout), lambda n: (0, 0)),       # w1
            pl.BlockSpec((1, Cout), lambda n: (0, 0)),              # b1
            pl.BlockSpec((9 * Cout, Cout), lambda n: (0, 0)),       # w2
            pl.BlockSpec((1, Cout), lambda n: (0, 0)),              # b2
        ],
        out_specs=pl.BlockSpec((1, Cout, H * W), lambda n: (n, 0, 0)),
        scratch_shapes=[
            pltpu.VMEM((H + 2, W + 2, Cin2), compute_dtype),   # padded concat input
            pltpu.VMEM((H + 2, W + 2, Cout), compute_dtype),   # padded conv1 output
            pltpu.VMEM((H * W, 9 * Cin2), compute_dtype),      # im2col for conv1
            pltpu.VMEM((H * W, 9 * Cout), compute_dtype),      # im2col for conv2
        ],
        compiler_params=pltpu.CompilerParams(
            dimension_semantics=("parallel",)),
    )(prev, cur, w1_2d, b1_2d, w2_2d, b2_2d)

    # (N, Cout, H*W) -> (N, Cout, H, W): row-major metadata reshape (free).
    return out_flat.reshape(N, Cout, H, W)


class MotionEstimator:
    """JAX/Pallas port of models/vsrvc.py::MotionEstimator (NCHW in/out)."""

    def __init__(self, in_channels: int, out_channels: int, key,
                 compute_dtype=jnp.float32):
        k1, k2, k3, k4 = jax.random.split(key, 4)
        # Mimic PyTorch Conv2d default init: uniform(-1/sqrt(fan_in), 1/sqrt(fan_in)).
        cin1 = 2 * in_channels
        bound1 = 1.0 / jnp.sqrt(float(cin1 * 9))
        self.w1 = jax.random.uniform(k1, (3, 3, cin1, out_channels),
                                     jnp.float32, -bound1, bound1)
        self.b1 = jax.random.uniform(k2, (out_channels,), jnp.float32,
                                     -bound1, bound1)
        bound2 = 1.0 / jnp.sqrt(float(out_channels * 9))
        self.w2 = jax.random.uniform(k3, (3, 3, out_channels, out_channels),
                                     jnp.float32, -bound2, bound2)
        self.b2 = jax.random.uniform(k4, (out_channels,), jnp.float32,
                                     -bound2, bound2)
        # jnp.bfloat16 recommended on v6e/v7x for MXU throughput (f32 accum kept).
        self.compute_dtype = compute_dtype

    def __call__(self, previous_features, current_features):
        return motion_estimator_forward(
            previous_features, current_features,
            self.w1, self.b1, self.w2, self.b2,
            neg_slope=0.1, compute_dtype=self.compute_dtype)


def _reference(previous, current, w1, b1, w2, b2, neg_slope=0.1):
    """Pure-JAX reference (lax conv) for correctness check."""
    x = jnp.concatenate([previous, current], axis=1)
    x = jnp.transpose(x, (0, 2, 3, 1))
    dn = ('NHWC', 'HWIO', 'NHWC')

    def conv(inp, w, b):
        y = jax.lax.conv_general_dilated(inp, w, (1, 1), 'SAME',
                                         dimension_numbers=dn) + b
        return jnp.where(y >= 0, y, neg_slope * y)

    y = conv(conv(x, w1, b1), w2, b2)
    return jnp.transpose(y, (0, 3, 1, 2))


if __name__ == "__main__":
    key = jax.random.PRNGKey(0)
    k_prev, k_cur, k_params = jax.random.split(key, 3)

    N, C, Hs, Ws = 2, 4, 16, 16
    out_channels = 32

    previous_features = jax.random.normal(k_prev, (N, C, Hs, Ws), jnp.float32)
    current_features = jax.random.normal(k_cur, (N, C, Hs, Ws), jnp.float32)

    model = MotionEstimator(in_channels=C, out_channels=out_channels, key=k_params)

    out = jax.block_until_ready(model(previous_features, current_features))
    assert out.shape == (N, out_channels, Hs, Ws), out.shape

    ref = jax.block_until_ready(
        _reference(previous_features, current_features,
                   model.w1, model.b1, model.w2, model.b2))
    max_err = float(jnp.max(jnp.abs(out - ref)))
    assert jnp.allclose(out, ref, atol=1e-4, rtol=1e-4), max_err

    print("KERNEL_OK")
</pallas_src>

<mosaic_0001>
module attributes {stable_mosaic.version = 11 : i64} {
  func.func @_fused_motion_kernel(%arg0: i32, %arg1: memref<1x16x16x4xf32, #tpu.memory_space<vmem>>, %arg2: memref<1x16x16x4xf32, #tpu.memory_space<vmem>>, %arg3: memref<72x32xf32, #tpu.memory_space<vmem>>, %arg4: memref<1x32xf32, #tpu.memory_space<vmem>>, %arg5: memref<288x32xf32, #tpu.memory_space<vmem>>, %arg6: memref<1x32xf32, #tpu.memory_space<vmem>>, %arg7: memref<1x32x256xf32, #tpu.memory_space<vmem>>, %arg8: memref<18x18x8xf32, #tpu.memory_space<vmem>>, %arg9: memref<18x18x32xf32, #tpu.memory_space<vmem>>, %arg10: memref<256x72xf32, #tpu.memory_space<vmem>>, %arg11: memref<256x288xf32, #tpu.memory_space<vmem>>) attributes {dimension_semantics = [#tpu.dimension_semantics<parallel>], iteration_bounds = array<i64: 2>, scalar_prefetch = 0 : i64, scratch_operands = 4 : i64, tpu.core_type = #tpu.core_type<tc>, window_params = [{transform_indices = @transform_0, window_bounds = array<i64: 1, 16, 16, 4>}, {transform_indices = @transform_1, window_bounds = array<i64: 1, 16, 16, 4>}, {pipeline_mode = #tpu.pipeline_mode<synchronous>, transform_indices = @transform_2, window_bounds = array<i64: 72, 32>}, {pipeline_mode = #tpu.pipeline_mode<synchronous>, transform_indices = @transform_3, window_bounds = array<i64: 1, 32>}, {pipeline_mode = #tpu.pipeline_mode<synchronous>, transform_indices = @transform_4, window_bounds = array<i64: 288, 32>}, {pipeline_mode = #tpu.pipeline_mode<synchronous>, transform_indices = @transform_5, window_bounds = array<i64: 1, 32>}, {transform_indices = @transform_6, window_bounds = array<i64: 1, 32, 256>}]} {
    %cst = arith.constant 0.000000e+00 : f32
    %0 = vector.broadcast %cst : f32 to vector<18x18x8xf32>
    %c0 = arith.constant 0 : index
    %c0_0 = arith.constant 0 : index
    %c0_1 = arith.constant 0 : index
    %1 = vector.load %arg8[%c0, %c0_0, %c0_1] : memref<18x18x8xf32, #tpu.memory_space<vmem>>, vector<18x18x8xf32>
    tpu.vector_store %arg8[%c0, %c0_0, %c0_1], %0 {strides = array<i32>} : memref<18x18x8xf32, #tpu.memory_space<vmem>>, vector<18x18x8xf32>,
    %c0_2 = arith.constant 0 : index
    %c0_3 = arith.constant 0 : index
    %c0_4 = arith.constant 0 : index
    %c0_5 = arith.constant 0 : index
    %2 = vector.load %arg1[%c0_2, %c0_3, %c0_4, %c0_5] : memref<1x16x16x4xf32, #tpu.memory_space<vmem>>, vector<1x16x16x4xf32>
    %3 = vector.shape_cast %2 : vector<1x16x16x4xf32> to vector<16x16x4xf32>
    %c1 = arith.constant 1 : index
    %c1_6 = arith.constant 1 : index
    %c0_7 = arith.constant 0 : index
    %4 = vector.load %arg8[%c1, %c1_6, %c0_7] : memref<18x18x8xf32, #tpu.memory_space<vmem>>, vector<16x16x4xf32>
    tpu.vector_store %arg8[%c1, %c1_6, %c0_7], %3 {strides = array<i32>} : memref<18x18x8xf32, #tpu.memory_space<vmem>>, vector<16x16x4xf32>,
    %c0_8 = arith.constant 0 : index
    %c0_9 = arith.constant 0 : index
    %c0_10 = arith.constant 0 : index
    %c0_11 = arith.constant 0 : index
    %5 = vector.load %arg2[%c0_8, %c0_9, %c0_10, %c0_11] : memref<1x16x16x4xf32, #tpu.memory_space<vmem>>, vector<1x16x16x4xf32>
    %6 = vector.shape_cast %5 : vector<1x16x16x4xf32> to vector<16x16x4xf32>
    %c1_12 = arith.constant 1 : index
    %c1_13 = arith.constant 1 : index
    %c4 = arith.constant 4 : index
    %7 = vector.load %arg8[%c1_12, %c1_13, %c4] : memref<18x18x8xf32, #tpu.memory_space<vmem>>, vector<16x16x4xf32>
    tpu.vector_store %arg8[%c1_12, %c1_13, %c4], %6 {strides = array<i32>} : memref<18x18x8xf32, #tpu.memory_space<vmem>>, vector<16x16x4xf32>,
    %c0_14 = arith.constant 0 : index
    %c0_15 = arith.constant 0 : index
    %c0_16 = arith.constant 0 : index
    %8 = vector.load %arg8[%c0_14, %c0_15, %c0_16] : memref<18x18x8xf32, #tpu.memory_space<vmem>>, vector<18x18x8xf32>
    %9 = vector.extract_strided_slice %8 {offsets = [0, 0, 0], sizes = [16, 16, 8], strides = [1, 1, 1]} : vector<18x18x8xf32> to vector<16x16x8xf32>
    %10 = vector.shape_cast %9 : vector<16x16x8xf32> to vector<256x8xf32>
    %c0_17 = arith.constant 0 : index
    %c0_18 = arith.constant 0 : index
    %11 = vector.load %arg10[%c0_17, %c0_18] : memref<256x72xf32, #tpu.memory_space<vmem>>, vector<256x8xf32>
    tpu.vector_store %arg10[%c0_17, %c0_18], %10 {strides = array<i32>} : memref<256x72xf32, #tpu.memory_space<vmem>>, vector<256x8xf32>,
    %12 = vector.extract_strided_slice %8 {offsets = [0, 1, 0], sizes = [16, 16, 8], strides = [1, 1, 1]} : vector<18x18x8xf32> to vector<16x16x8xf32>
    %13 = vector.shape_cast %12 : vector<16x16x8xf32> to vector<256x8xf32>
    %c0_19 = arith.constant 0 : index
    %c8 = arith.constant 8 : index
    %14 = vector.load %arg10[%c0_19, %c8] : memref<256x72xf32, #tpu.memory_space<vmem>>, vector<256x8xf32>
    tpu.vector_store %arg10[%c0_19, %c8], %13 {strides = array<i32>} : memref<256x72xf32, #tpu.memory_space<vmem>>, vector<256x8xf32>,
    %15 = vector.extract_strided_slice %8 {offsets = [0, 2, 0], sizes = [16, 16, 8], strides = [1, 1, 1]} : vector<18x18x8xf32> to vector<16x16x8xf32>
    %16 = vector.shape_cast %15 : vector<16x16x8xf32> to vector<256x8xf32>
    %c0_20 = arith.constant 0 : index
    %c16 = arith.constant 16 : index
    %17 = vector.load %arg10[%c0_20, %c16] : memref<256x72xf32, #tpu.memory_space<vmem>>, vector<256x8xf32>
    tpu.vector_store %arg10[%c0_20, %c16], %16 {strides = array<i32>} : memref<256x72xf32, #tpu.memory_space<vmem>>, vector<256x8xf32>,
    %18 = vector.extract_strided_slice %8 {offsets = [1, 0, 0], sizes = [16, 16, 8], strides = [1, 1, 1]} : vector<18x18x8xf32> to vector<16x16x8xf32>
    %19 = vector.shape_cast %18 : vector<16x16x8xf32> to vector<256x8xf32>
    %c0_21 = arith.constant 0 : index
    %c24 = arith.constant 24 : index
    %20 = vector.load %arg10[%c0_21, %c24] : memref<256x72xf32, #tpu.memory_space<vmem>>, vector<256x8xf32>
    tpu.vector_store %arg10[%c0_21, %c24], %19 {strides = array<i32>} : memref<256x72xf32, #tpu.memory_space<vmem>>, vector<256x8xf32>,
    %21 = vector.extract_strided_slice %8 {offsets = [1, 1, 0], sizes = [16, 16, 8], strides = [1, 1, 1]} : vector<18x18x8xf32> to vector<16x16x8xf32>
    %22 = vector.shape_cast %21 : vector<16x16x8xf32> to vector<256x8xf32>
    %c0_22 = arith.constant 0 : index
    %c32 = arith.constant 32 : index
    %23 = vector.load %arg10[%c0_22, %c32] : memref<256x72xf32, #tpu.memory_space<vmem>>, vector<256x8xf32>
    tpu.vector_store %arg10[%c0_22, %c32], %22 {strides = array<i32>} : memref<256x72xf32, #tpu.memory_space<vmem>>, vector<256x8xf32>,
    %24 = vector.extract_strided_slice %8 {offsets = [1, 2, 0], sizes = [16, 16, 8], strides = [1, 1, 1]} : vector<18x18x8xf32> to vector<16x16x8xf32>
    %25 = vector.shape_cast %24 : vector<16x16x8xf32> to vector<256x8xf32>
    %c0_23 = arith.constant 0 : index
    %c40 = arith.constant 40 : index
    %26 = vector.load %arg10[%c0_23, %c40] : memref<256x72xf32, #tpu.memory_space<vmem>>, vector<256x8xf32>
    tpu.vector_store %arg10[%c0_23, %c40], %25 {strides = array<i32>} : memref<256x72xf32, #tpu.memory_space<vmem>>, vector<256x8xf32>,
    %27 = vector.extract_strided_slice %8 {offsets = [2, 0, 0], sizes = [16, 16, 8], strides = [1, 1, 1]} : vector<18x18x8xf32> to vector<16x16x8xf32>
    %28 = vector.shape_cast %27 : vector<16x16x8xf32> to vector<256x8xf32>
    %c0_24 = arith.constant 0 : index
    %c48 = arith.constant 48 : index
    %29 = vector.load %arg10[%c0_24, %c48] : memref<256x72xf32, #tpu.memory_space<vmem>>, vector<256x8xf32>
    tpu.vector_store %arg10[%c0_24, %c48], %28 {strides = array<i32>} : memref<256x72xf32, #tpu.memory_space<vmem>>, vector<256x8xf32>,
    %30 = vector.extract_strided_slice %8 {offsets = [2, 1, 0], sizes = [16, 16, 8], strides = [1, 1, 1]} : vector<18x18x8xf32> to vector<16x16x8xf32>
    %31 = vector.shape_cast %30 : vector<16x16x8xf32> to vector<256x8xf32>
    %c0_25 = arith.constant 0 : index
    %c56 = arith.constant 56 : index
    %32 = vector.load %arg10[%c0_25, %c56] : memref<256x72xf32, #tpu.memory_space<vmem>>, vector<256x8xf32>
    tpu.vector_store %arg10[%c0_25, %c56], %31 {strides = array<i32>} : memref<256x72xf32, #tpu.memory_space<vmem>>, vector<256x8xf32>,
    %33 = vector.extract_strided_slice %8 {offsets = [2, 2, 0], sizes = [16, 16, 8], strides = [1, 1, 1]} : vector<18x18x8xf32> to vector<16x16x8xf32>
    %34 = vector.shape_cast %33 : vector<16x16x8xf32> to vector<256x8xf32>
    %c0_26 = arith.constant 0 : index
    %c64 = arith.constant 64 : index
    %35 = vector.load %arg10[%c0_26, %c64] : memref<256x72xf32, #tpu.memory_space<vmem>>, vector<256x8xf32>
    tpu.vector_store %arg10[%c0_26, %c64], %34 {strides = array<i32>} : memref<256x72xf32, #tpu.memory_space<vmem>>, vector<256x8xf32>,
    %c0_27 = arith.constant 0 : index
    %c0_28 = arith.constant 0 : index
    %36 = vector.load %arg10[%c0_27, %c0_28] : memref<256x72xf32, #tpu.memory_space<vmem>>, vector<256x72xf32>
    %c0_29 = arith.constant 0 : index
    %c0_30 = arith.constant 0 : index
    %37 = vector.load %arg3[%c0_29, %c0_30] : memref<72x32xf32, #tpu.memory_space<vmem>>, vector<72x32xf32>
    %cst_31 = arith.constant dense<0.000000e+00> : vector<256x32xf32>
    %38 = tpu.matmul %36, %37, %cst_31 {dimension_numbers = #tpu.dot_dimension_numbers<[1], [0], [0], [1], [0, 0, 1, 1], [], []>} : vector<256x72xf32>, vector<72x32xf32>, vector<256x32xf32> -> vector<256x32xf32>
    %c0_32 = arith.constant 0 : index
    %c0_33 = arith.constant 0 : index
    %39 = vector.load %arg4[%c0_32, %c0_33] : memref<1x32xf32, #tpu.memory_space<vmem>>, vector<1x32xf32>
    %40 = vector.broadcast %39 : vector<1x32xf32> to vector<256x32xf32>
    %41 = arith.addf %38, %40 : vector<256x32xf32>
    %cst_34 = arith.constant 0.000000e+00 : f32
    %42 = vector.broadcast %cst_34 : f32 to vector<256x32xf32>
    %43 = arith.cmpf oge, %41, %42 : vector<256x32xf32>
    %cst_35 = arith.constant 1.000000e-01 : f32
    %44 = vector.broadcast %cst_35 : f32 to vector<256x32xf32>
    %45 = arith.mulf %44, %41 : vector<256x32xf32>
    %46 = arith.select %43, %41, %45 : vector<256x32xi1>, vector<256x32xf32>
    %cst_36 = arith.constant 0.000000e+00 : f32
    %47 = vector.broadcast %cst_36 : f32 to vector<18x18x32xf32>
    %c0_37 = arith.constant 0 : index
    %c0_38 = arith.constant 0 : index
    %c0_39 = arith.constant 0 : index
    %48 = vector.load %arg9[%c0_37, %c0_38, %c0_39] : memref<18x18x32xf32, #tpu.memory_space<vmem>>, vector<18x18x32xf32>
    tpu.vector_store %arg9[%c0_37, %c0_38, %c0_39], %47 {strides = array<i32>} : memref<18x18x32xf32, #tpu.memory_space<vmem>>, vector<18x18x32xf32>,
    %49 = vector.shape_cast %46 : vector<256x32xf32> to vector<16x16x32xf32>
    %c1_40 = arith.constant 1 : index
    %c1_41 = arith.constant 1 : index
    %c0_42 = arith.constant 0 : index
    %50 = vector.load %arg9[%c1_40, %c1_41, %c0_42] : memref<18x18x32xf32, #tpu.memory_space<vmem>>, vector<16x16x32xf32>
    tpu.vector_store %arg9[%c1_40, %c1_41, %c0_42], %49 {strides = array<i32>} : memref<18x18x32xf32, #tpu.memory_space<vmem>>, vector<16x16x32xf32>,
    %c0_43 = arith.constant 0 : index
    %c0_44 = arith.constant 0 : index
    %c0_45 = arith.constant 0 : index
    %51 = vector.load %arg9[%c0_43, %c0_44, %c0_45] : memref<18x18x32xf32, #tpu.memory_space<vmem>>, vector<18x18x32xf32>
    %52 = vector.extract_strided_slice %51 {offsets = [0, 0, 0], sizes = [16, 16, 32], strides = [1, 1, 1]} : vector<18x18x32xf32> to vector<16x16x32xf32>
    %53 = vector.shape_cast %52 : vector<16x16x32xf32> to vector<256x32xf32>
    %c0_46 = arith.constant 0 : index
    %c0_47 = arith.constant 0 : index
    %54 = vector.load %arg11[%c0_46, %c0_47] : memref<256x288xf32, #tpu.memory_space<vmem>>, vector<256x32xf32>
    tpu.vector_store %arg11[%c0_46, %c0_47], %53 {strides = array<i32>} : memref<256x288xf32, #tpu.memory_space<vmem>>, vector<256x32xf32>,
    %55 = vector.extract_strided_slice %51 {offsets = [0, 1, 0], sizes = [16, 16, 32], strides = [1, 1, 1]} : vector<18x18x32xf32> to vector<16x16x32xf32>
    %56 = vector.shape_cast %55 : vector<16x16x32xf32> to vector<256x32xf32>
    %c0_48 = arith.constant 0 : index
    %c32_49 = arith.constant 32 : index
    %57 = vector.load %arg11[%c0_48, %c32_49] : memref<256x288xf32, #tpu.memory_space<vmem>>, vector<256x32xf32>
    tpu.vector_store %arg11[%c0_48, %c32_49], %56 {strides = array<i32>} : memref<256x288xf32, #tpu.memory_space<vmem>>, vector<256x32xf32>,
    %58 = vector.extract_strided_slice %51 {offsets = [0, 2, 0], sizes = [16, 16, 32], strides = [1, 1, 1]} : vector<18x18x32xf32> to vector<16x16x32xf32>
    %59 = vector.shape_cast %58 : vector<16x16x32xf32> to vector<256x32xf32>
    %c0_50 = arith.constant 0 : index
    %c64_51 = arith.constant 64 : index
    %60 = vector.load %arg11[%c0_50, %c64_51] : memref<256x288xf32, #tpu.memory_space<vmem>>, vector<256x32xf32>
    tpu.vector_store %arg11[%c0_50, %c64_51], %59 {strides = array<i32>} : memref<256x288xf32, #tpu.memory_space<vmem>>, vector<256x32xf32>,
    %61 = vector.extract_strided_slice %51 {offsets = [1, 0, 0], sizes = [16, 16, 32], strides = [1, 1, 1]} : vector<18x18x32xf32> to vector<16x16x32xf32>
    %62 = vector.shape_cast %61 : vector<16x16x32xf32> to vector<256x32xf32>
    %c0_52 = arith.constant 0 : index
    %c96 = arith.constant 96 : index
    %63 = vector.load %arg11[%c0_52, %c96] : memref<256x288xf32, #tpu.memory_space<vmem>>, vector<256x32xf32>
    tpu.vector_store %arg11[%c0_52, %c96], %62 {strides = array<i32>} : memref<256x288xf32, #tpu.memory_space<vmem>>, vector<256x32xf32>,
    %64 = vector.extract_strided_slice %51 {offsets = [1, 1, 0], sizes = [16, 16, 32], strides = [1, 1, 1]} : vector<18x18x32xf32> to vector<16x16x32xf32>
    %65 = vector.shape_cast %64 : vector<16x16x32xf32> to vector<256x32xf32>
    %c0_53 = arith.constant 0 : index
    %c128 = arith.constant 128 : index
    %66 = vector.load %arg11[%c0_53, %c128] : memref<256x288xf32, #tpu.memory_space<vmem>>, vector<256x32xf32>
    tpu.vector_store %arg11[%c0_53, %c128], %65 {strides = array<i32>} : memref<256x288xf32, #tpu.memory_space<vmem>>, vector<256x32xf32>,
    %67 = vector.extract_strided_slice %51 {offsets = [1, 2, 0], sizes = [16, 16, 32], strides = [1, 1, 1]} : vector<18x18x32xf32> to vector<16x16x32xf32>
    %68 = vector.shape_cast %67 : vector<16x16x32xf32> to vector<256x32xf32>
    %c0_54 = arith.constant 0 : index
    %c160 = arith.constant 160 : index
    %69 = vector.load %arg11[%c0_54, %c160] : memref<256x288xf32, #tpu.memory_space<vmem>>, vector<256x32xf32>
    tpu.vector_store %arg11[%c0_54, %c160], %68 {strides = array<i32>} : memref<256x288xf32, #tpu.memory_space<vmem>>, vector<256x32xf32>,
    %70 = vector.extract_strided_slice %51 {offsets = [2, 0, 0], sizes = [16, 16, 32], strides = [1, 1, 1]} : vector<18x18x32xf32> to vector<16x16x32xf32>
    %71 = vector.shape_cast %70 : vector<16x16x32xf32> to vector<256x32xf32>
    %c0_55 = arith.constant 0 : index
    %c192 = arith.constant 192 : index
    %72 = vector.load %arg11[%c0_55, %c192] : memref<256x288xf32, #tpu.memory_space<vmem>>, vector<256x32xf32>
    tpu.vector_store %arg11[%c0_55, %c192], %71 {strides = array<i32>} : memref<256x288xf32, #tpu.memory_space<vmem>>, vector<256x32xf32>,
    %73 = vector.extract_strided_slice %51 {offsets = [2, 1, 0], sizes = [16, 16, 32], strides = [1, 1, 1]} : vector<18x18x32xf32> to vector<16x16x32xf32>
    %74 = vector.shape_cast %73 : vector<16x16x32xf32> to vector<256x32xf32>
    %c0_56 = arith.constant 0 : index
    %c224 = arith.constant 224 : index
    %75 = vector.load %arg11[%c0_56, %c224] : memref<256x288xf32, #tpu.memory_space<vmem>>, vector<256x32xf32>
    tpu.vector_store %arg11[%c0_56, %c224], %74 {strides = array<i32>} : memref<256x288xf32, #tpu.memory_space<vmem>>, vector<256x32xf32>,
    %76 = vector.extract_strided_slice %51 {offsets = [2, 2, 0], sizes = [16, 16, 32], strides = [1, 1, 1]} : vector<18x18x32xf32> to vector<16x16x32xf32>
    %77 = vector.shape_cast %76 : vector<16x16x32xf32> to vector<256x32xf32>
    %c0_57 = arith.constant 0 : index
    %c256 = arith.constant 256 : index
    %78 = vector.load %arg11[%c0_57, %c256] : memref<256x288xf32, #tpu.memory_space<vmem>>, vector<256x32xf32>
    tpu.vector_store %arg11[%c0_57, %c256], %77 {strides = array<i32>} : memref<256x288xf32, #tpu.memory_space<vmem>>, vector<256x32xf32>,
    %c0_58 = arith.constant 0 : index
    %c0_59 = arith.constant 0 : index
    %79 = vector.load %arg11[%c0_58, %c0_59] : memref<256x288xf32, #tpu.memory_space<vmem>>, vector<256x288xf32>
    %c0_60 = arith.constant 0 : index
    %c0_61 = arith.constant 0 : index
    %80 = vector.load %arg5[%c0_60, %c0_61] : memref<288x32xf32, #tpu.memory_space<vmem>>, vector<288x32xf32>
    %cst_62 = arith.constant dense<0.000000e+00> : vector<256x32xf32>
    %81 = tpu.matmul %79, %80, %cst_62 {dimension_numbers = #tpu.dot_dimension_numbers<[1], [0], [0], [1], [0, 0, 1, 1], [], []>} : vector<256x288xf32>, vector<288x32xf32>, vector<256x32xf32> -> vector<256x32xf32>
    %c0_63 = arith.constant 0 : index
    %c0_64 = arith.constant 0 : index
    %82 = vector.load %arg6[%c0_63, %c0_64] : memref<1x32xf32, #tpu.memory_space<vmem>>, vector<1x32xf32>
    %83 = vector.broadcast %82 : vector<1x32xf32> to vector<256x32xf32>
    %84 = arith.addf %81, %83 : vector<256x32xf32>
    %cst_65 = arith.constant 0.000000e+00 : f32
    %85 = vector.broadcast %cst_65 : f32 to vector<256x32xf32>
    %86 = arith.cmpf oge, %84, %85 : vector<256x32xf32>
    %cst_66 = arith.constant 1.000000e-01 : f32
    %87 = vector.broadcast %cst_66 : f32 to vector<256x32xf32>
    %88 = arith.mulf %87, %84 : vector<256x32xf32>
    %89 = arith.select %86, %84, %88 : vector<256x32xi1>, vector<256x32xf32>
    %90 = tpu.transpose %89, [1, 0] : vector<256x32xf32> -> vector<32x256xf32>
    %c0_67 = arith.constant 0 : index
    %c0_68 = arith.constant 0 : index
    %c0_69 = arith.constant 0 : index
    %91 = vector.load %arg7[%c0_67, %c0_68, %c0_69] : memref<1x32x256xf32, #tpu.memory_space<vmem>>, vector<1x32x256xf32>
    %92 = vector.shape_cast %91 : vector<1x32x256xf32> to vector<32x256xf32>
    %93 = vector.shape_cast %90 : vector<32x256xf32> to vector<1x32x256xf32>
    tpu.vector_store %arg7[%c0_67, %c0_68, %c0_69], %93 {strides = array<i32>} : memref<1x32x256xf32, #tpu.memory_space<vmem>>, vector<1x32x256xf32>,
    return
  }
  func.func @transform_0(%arg0: i32) -> (i32, i32, i32, i32) {
    %c0_i32 = arith.constant 0 : i32
    %c0_i32_0 = arith.constant 0 : i32
    %c0_i32_1 = arith.constant 0 : i32
    %c0_i32_2 = arith.constant 0 : i32
    return %arg0, %c0_i32, %c0_i32_0, %c0_i32_1 : i32, i32, i32, i32
  }
  func.func @transform_1(%arg0: i32) -> (i32, i32, i32, i32) {
    %c0_i32 = arith.constant 0 : i32
    %c0_i32_0 = arith.constant 0 : i32
    %c0_i32_1 = arith.constant 0 : i32
    %c0_i32_2 = arith.constant 0 : i32
    return %arg0, %c0_i32, %c0_i32_0, %c0_i32_1 : i32, i32, i32, i32
  }
  func.func @transform_2(%arg0: i32) -> (i32, i32) {
    %c0_i32 = arith.constant 0 : i32
    %c0_i32_0 = arith.constant 0 : i32
    %c0_i32_1 = arith.constant 0 : i32
    return %c0_i32, %c0_i32_0 : i32, i32
  }
  func.func @transform_3(%arg0: i32) -> (i32, i32) {
    %c0_i32 = arith.constant 0 : i32
    %c0_i32_0 = arith.constant 0 : i32
    %c0_i32_1 = arith.constant 0 : i32
    return %c0_i32, %c0_i32_0 : i32, i32
  }
  func.func @transform_4(%arg0: i32) -> (i32, i32) {
    %c0_i32 = arith.constant 0 : i32
    %c0_i32_0 = arith.constant 0 : i32
    %c0_i32_1 = arith.constant 0 : i32
    return %c0_i32, %c0_i32_0 : i32, i32
  }
  func.func @transform_5(%arg0: i32) -> (i32, i32) {
    %c0_i32 = arith.constant 0 : i32
    %c0_i32_0 = arith.constant 0 : i32
    %c0_i32_1 = arith.constant 0 : i32
    return %c0_i32, %c0_i32_0 : i32, i32
  }
  func.func @transform_6(%arg0: i32) -> (i32, i32, i32) {
    %c0_i32 = arith.constant 0 : i32
    %c0_i32_0 = arith.constant 0 : i32
    %c0_i32_1 = arith.constant 0 : i32
    return %arg0, %c0_i32, %c0_i32_0 : i32, i32, i32
  }
}

</mosaic_0001>

<bundles_post_ra>
// kernel: motion_estimator_forward.1
= control target key start
LH: loop header
LB: loop body
LE: loop exit
PB: predicated region body
PF: predicated region fallthrough
CT: control target
= control target key end

     0   :  { %s5100_s21 = smov 0   ;;  %s8273_s0 = inlined_call_operand.vmem [shape: f32[2,16,16,4], index: 0, kind: input, shape index: {}]   ;;  %s8274_s1 = inlined_call_operand.vmem [shape: f32[2,16,16,4], index: 1, kind: input, shape index: {}]   ;;  %s8275_s2 = inlined_call_operand.vmem [shape: f32[72,32], index: 2, kind: input, shape index: {}]   ;;  %s8276_s3 = inlined_call_operand.vmem [shape: f32[1,32], index: 3, kind: input, shape index: {}]   ;;  %s8277_s4 = inlined_call_operand.vmem [shape: f32[288,32], index: 4, kind: input, shape index: {}]   ;;  %s8278_s5 = inlined_call_operand.vmem [shape: f32[1,32], index: 5, kind: input, shape index: {}]   ;;  %s8279_s6 = inlined_call_operand.vmem [shape: f32[2,32,256], index: 6, kind: output, shape index: {}]  }
   0x1 LB: > { %s4635_s22 = sadd.s32 4294967295, %s5051_s21   ;;  %p4639_p0 = scmp.ge.s32.totalorder %s5051_s21, 1  ;;  %s5051_s21 = sphi %s5100_s21, %s16_s21  }
   0x2   : > { %p222_p1 = scmp.lt.s32.totalorder %s5051_s21, 3 }
   0x4   : > { %p223_p2 = pnand %p4639_p0, %p222_p1 }
   0x6   : > { %226 = sbr.rel (%p223_p2) target bundleno = 1602 (0x642), region = 44 }
   0xd   : > { %p5110_p3 = scmp.lt.s32.totalorder %s4635_s22, 1  ;;  %vm272_vm0 = vcmask 64512   ;;  %v8280_v0 = vmov 0.0   ;;  %vm275_vm1 = vcmask 58368   ;;  %s5054_s28 = smov 4   ;;  %vm361_vm2 = vcmask 31744  }
   0xe   : > { %280 = vst.msk [vmem:[#allocation2 + $0x30] sm:$0xff] %vm272_vm0, %v8280_v0  ;;  %281 = vst.msk [vmem:[#allocation2 + $0x38] sm:$0xff] %vm272_vm0, %v8280_v0  ;;  %vm721_vm3 = vcmask 1046528   ;;  %vm931_vm4 = vcmask 1045504   ;;  %s5055_s8 = smov 8   ;;  %s5056_s9 = smov 16  }
   0xf   : > { %273 = vst.msk [vmem:[#allocation2] sm:$0xff] %vm272_vm0, %v8280_v0  ;;  %274 = vst.msk [vmem:[#allocation2 + $0x8] sm:$0xff] %vm272_vm0, %v8280_v0  ;;  %s8445_s22 = smov (!%p5110_p3, %s4635_s22), 1  ;;  %vm554_vm5 = vcmask 64544   ;;  %vm898_vm6 = vcmask 130112   ;;  %vm1108_vm7 = vcmask 195712  }
  0x10   : > { %277 = vst.msk [vmem:[#allocation2 + $0x18] sm:$0xff] %vm272_vm0, %v8280_v0  ;;  %278 = vst.msk [vmem:[#allocation2 + $0x20] sm:$0xff] %vm272_vm0, %v8280_v0  ;;  %s4714_s24 = sshll.u32 %s8445_s22, 8  ;;  %s5057_s10 = smov 24   ;;  %vm1239_vm8 = vcmask 261312   ;;  %vm1374_vm9 = vcmask 326912  }
  0x11   : > { %283 = vst.msk [vmem:[#allocation2 + $0x48] sm:$0xff] %vm272_vm0, %v8280_v0  ;;  %284 = vst.msk [vmem:[#allocation2 + $0x50] sm:$0xff] %vm272_vm0, %v8280_v0  ;;  %s5232_s27 = scalar_lea.vmem %s8274_s1, %s4714_s24  ;;  %s5251_s7 = scalar_lea.vmem %s8273_s0, %s4714_s24  ;;  %vm1508_vm10 = vcmask 392512   ;;  %vm1639_vm11 = vcmask 458112   ;;  %vm1774_vm12 = vcmask 523712   ;;  %vm1908_vm13 = vcmask 589312  }
  0x12   : > { %286 = vst.msk [vmem:[#allocation2 + $0x60] sm:$0xff] %vm272_vm0, %v8280_v0  ;;  %287 = vst.msk [vmem:[#allocation2 + $0x68] sm:$0xff] %vm272_vm0, %v8280_v0  ;;  %v396_v1 = vld [vmem:[%s5232_s27 + $0x10] sm:$0xff]  ;;  %v394_v2 = vld [vmem:[%s5232_s27] sm:$0xff]  ;;  %s5058_s11 = smov 32   ;;  %s5059_s20 = smov 40  }
  0x13   : > { %289 = vst.msk [vmem:[#allocation2 + $0x78] sm:$0xff] %vm272_vm0, %v8280_v0  ;;  %290 = vst.msk [vmem:[#allocation2 + $0x80] sm:$0xff] %vm272_vm0, %v8280_v0  ;;  %462 = vrot.lane.b32.xlu1 %v396_v1, %s5054_s28  ;;  %458 = vrot.lane.b32.xlu0 %v394_v2, %s5054_s28  ;;  %v397_v3 = vld [vmem:[%s5232_s27 + $0x18] sm:$0xff]  ;;  %v395_v4 = vld [vmem:[%s5232_s27 + $0x8] sm:$0xff]  ;;  %s5062_s12 = smov 64   ;;  %vm1989_vm14 = vcmask 588800  }
  0x14   : > { %292 = vst.msk [vmem:[#allocation2 + $0x90] sm:$0xff] %vm272_vm0, %v8280_v0  ;;  %293 = vst.msk [vmem:[#allocation2 + $0x98] sm:$0xff] %vm272_vm0, %v8280_v0  ;;  %v399_v6 = vld [vmem:[%s5232_s27 + $0x28] sm:$0xff]  ;;  %v398_v7 = vld [vmem:[%s5232_s27 + $0x20] sm:$0xff]  ;;  %vm2407_vm15 = vcmask 261120   ;;  %s5064_s19 = smov 96  }
  0x15   : > { %295 = vst.msk [vmem:[#allocation2 + $0xa8] sm:$0xff] %vm272_vm0, %v8280_v0  ;;  %296 = vst.msk [vmem:[#allocation2 + $0xb0] sm:$0xff] %vm272_vm0, %v8280_v0  ;;  %v401_v8 = vld [vmem:[%s5232_s27 + $0x38] sm:$0xff]  ;;  %v400_v9 = vld [vmem:[%s5232_s27 + $0x30] sm:$0xff] }
  0x16   : > { %298 = vst.msk [vmem:[#allocation2 + $0xc0] sm:$0xff] %vm272_vm0, %v8280_v0  ;;  %299 = vst.msk [vmem:[#allocation2 + $0xc8] sm:$0xff] %vm272_vm0, %v8280_v0  ;;  %v5242_v5 = vld [vmem:[#allocation2 + $0x8] sm:$0xff]  ;;  %v330_v10 = vld [vmem:[%s5251_s7 + $0x10] sm:$0xff] }
  0x17   : > { %301 = vst.msk [vmem:[#allocation2 + $0xd8] sm:$0xff] %vm272_vm0, %v8280_v0  ;;  %302 = vst.msk [vmem:[#allocation2 + $0xe0] sm:$0xff] %vm272_vm0, %v8280_v0  ;;  %464 = vrot.lane.b32.xlu1 %v397_v3, %s5054_s28  ;;  %460 = vrot.lane.b32.xlu0 %v395_v4, %s5054_s28  ;;  %v328_v11 = vld [vmem:[%s5251_s7] sm:$0xff]  ;;  %v403_v12 = vld [vmem:[%s5232_s27 + $0x48] sm:$0xff]  ;;  %v723_v3 = vrot.slane %v5242_v5, 1 }
  0x18   : > { %304 = vst.msk [vmem:[#allocation2 + $0xf0] sm:$0xff] %vm272_vm0, %v8280_v0  ;;  %305 = vst.msk [vmem:[#allocation2 + $0xf8] sm:$0xff] %vm272_vm0, %v8280_v0  ;;  %v402_v13 = vld [vmem:[%s5232_s27 + $0x40] sm:$0xff]  ;;  %v331_v14 = vld [vmem:[%s5251_s7 + $0x18] sm:$0xff] }
  0x19   : > { %307 = vst.msk [vmem:[#allocation2 + $0x108] sm:$0xff] %vm272_vm0, %v8280_v0  ;;  %308 = vst.msk [vmem:[#allocation2 + $0x110] sm:$0xff] %vm272_vm0, %v8280_v0  ;;  %v329_v15 = vld [vmem:[%s5251_s7 + $0x8] sm:$0xff]  ;;  %v5269_v16 = vld [vmem:[#allocation2] sm:$0xff] }
  0x1a   : > { %310 = vst.msk [vmem:[#allocation2 + $0x120] sm:$0xff] %vm272_vm0, %v8280_v0  ;;  %311 = vst.msk [vmem:[#allocation2 + $0x128] sm:$0xff] %vm272_vm0, %v8280_v0  ;;  %v333_v17 = vld [vmem:[%s5251_s7 + $0x28] sm:$0xff]  ;;  %v332_v18 = vld [vmem:[%s5251_s7 + $0x20] sm:$0xff] }
  0x1b   : > { %313 = vst.msk [vmem:[#allocation2 + $0x138] sm:$0xff] %vm272_vm0, %v8280_v0  ;;  %314 = vst.msk [vmem:[#allocation2 + $0x140] sm:$0xff] %vm272_vm0, %v8280_v0  ;;  %468 = vrot.lane.b32.xlu1 %v399_v6, %s5054_s28  ;;  %466 = vrot.lane.b32.xlu0 %v398_v7, %s5054_s28  ;;  %v335_v19 = vld [vmem:[%s5251_s7 + $0x38] sm:$0xff]  ;;  %v334_v20 = vld [vmem:[%s5251_s7 + $0x30] sm:$0xff]  ;;  %v722_v6 = vrot.slane %v5269_v16, 1  ;;  %v933_v7 = vrot.slane %v5242_v5, 2 }
  0x1c   : > { %316 = vst.msk [vmem:[#allocation2 + $0x150] sm:$0xff] %vm272_vm0, %v8280_v0  ;;  %317 = vst.msk [vmem:[#allocation2 + $0x158] sm:$0xff] %vm272_vm0, %v8280_v0  ;;  %v337_v21 = vld [vmem:[%s5251_s7 + $0x48] sm:$0xff]  ;;  %v336_v22 = vld [vmem:[%s5251_s7 + $0x40] sm:$0xff] }
  0x1d   : > { %319 = vst.msk [vmem:[#allocation2 + $0x168] sm:$0xff] %vm272_vm0, %v8280_v0  ;;  %320 = vst.msk [vmem:[#allocation2 + $0x170] sm:$0xff] %vm272_vm0, %v8280_v0  ;;  %v339_v23 = vld [vmem:[%s5251_s7 + $0x58] sm:$0xff]  ;;  %v338_v24 = vld [vmem:[%s5251_s7 + $0x50] sm:$0xff] }
  0x1e   : > { %322 = vst.msk [vmem:[#allocation2 + $0x180] sm:$0xff] %vm272_vm0, %v8280_v0  ;;  %323 = vst.msk [vmem:[#allocation2 + $0x188] sm:$0xff] %vm272_vm0, %v8280_v0  ;;  %v341_v25 = vld [vmem:[%s5251_s7 + $0x68] sm:$0xff]  ;;  %v340_v26 = vld [vmem:[%s5251_s7 + $0x60] sm:$0xff] }
  0x1f   : > { %325 = vst.msk [vmem:[#allocation2 + $0x198] sm:$0xff] %vm272_vm0, %v8280_v0  ;;  %326 = vst.msk [vmem:[#allocation2 + $0x1a0] sm:$0xff] %vm272_vm0, %v8280_v0  ;;  %472 = vrot.lane.b32.xlu1 %v401_v8, %s5054_s28  ;;  %470 = vrot.lane.b32.xlu0 %v400_v9, %s5054_s28  ;;  %v343_v27 = vld [vmem:[%s5251_s7 + $0x78] sm:$0xff]  ;;  %v342_v28 = vld [vmem:[%s5251_s7 + $0x70] sm:$0xff]  ;;  %v724_v9 = vsel %vm721_vm3, %v722_v6, %v723_v3 }
  0x20   : > { %282 = vst.msk [vmem:[#allocation2 + $0x40] sm:$0x3] %vm275_vm1, %v8280_v0  ;;  %276 = vst.msk [vmem:[#allocation2 + $0x10] sm:$0x3] %vm275_vm1, %v8280_v0  ;;  %v405_v29 = vld [vmem:[%s5232_s27 + $0x58] sm:$0xff]  ;;  %v404_v30 = vld [vmem:[%s5232_s27 + $0x50] sm:$0xff] }
  0x21   : > { %279 = vst.msk [vmem:[#allocation2 + $0x28] sm:$0x3] %vm275_vm1, %v8280_v0  ;;  %285 = vst.msk [vmem:[#allocation2 + $0x58] sm:$0x3] %vm275_vm1, %v8280_v0  ;;  %v345_v31 = vld [vmem:[%s5251_s7 + $0x88] sm:$0xff]  ;;  %v344_v32 = vld [vmem:[%s5251_s7 + $0x80] sm:$0xff] }
  0x22   : > { %288 = vst.msk [vmem:[#allocation2 + $0x70] sm:$0x3] %vm275_vm1, %v8280_v0  ;;  %291 = vst.msk [vmem:[#allocation2 + $0x88] sm:$0x3] %vm275_vm1, %v8280_v0  ;;  %v407_v33 = vld [vmem:[%s5232_s27 + $0x68] sm:$0xff]  ;;  %v406_v34 = vld [vmem:[%s5232_s27 + $0x60] sm:$0xff] }
  0x23   : > { %294 = vst.msk [vmem:[#allocation2 + $0xa0] sm:$0x3] %vm275_vm1, %v8280_v0  ;;  %297 = vst.msk [vmem:[#allocation2 + $0xb8] sm:$0x3] %vm275_vm1, %v8280_v0  ;;  %476 = vrot.lane.b32.xlu1 %v403_v12, %s5054_s28  ;;  %474 = vrot.lane.b32.xlu0 %v402_v13, %s5054_s28  ;;  %v347_v35 = vld [vmem:[%s5251_s7 + $0x98] sm:$0xff]  ;;  %v346_v36 = vld [vmem:[%s5251_s7 + $0x90] sm:$0xff] }
  0x24   : > { %300 = vst.msk [vmem:[#allocation2 + $0xd0] sm:$0x3] %vm275_vm1, %v8280_v0  ;;  %303 = vst.msk [vmem:[#allocation2 + $0xe8] sm:$0x3] %vm275_vm1, %v8280_v0  ;;  %v409_v37 = vld [vmem:[%s5232_s27 + $0x78] sm:$0xff]  ;;  %v408_v38 = vld [vmem:[%s5232_s27 + $0x70] sm:$0xff] }
  0x25   : > { %306 = vst.msk [vmem:[#allocation2 + $0x100] sm:$0x3] %vm275_vm1, %v8280_v0  ;;  %309 = vst.msk [vmem:[#allocation2 + $0x118] sm:$0x3] %vm275_vm1, %v8280_v0  ;;  %v349_v39 = vld [vmem:[%s5251_s7 + $0xa8] sm:$0xff]  ;;  %v348_v40 = vld [vmem:[%s5251_s7 + $0xa0] sm:$0xff] }
  0x26   : > { %312 = vst.msk [vmem:[#allocation2 + $0x130] sm:$0x3] %vm275_vm1, %v8280_v0  ;;  %315 = vst.msk [vmem:[#allocation2 + $0x148] sm:$0x3] %vm275_vm1, %v8280_v0  ;;  %v411_v41 = vld [vmem:[%s5232_s27 + $0x88] sm:$0xff]  ;;  %v410_v42 = vld [vmem:[%s5232_s27 + $0x80] sm:$0xff] }
  0x27   : > { %318 = vst.msk [vmem:[#allocation2 + $0x160] sm:$0x3] %vm275_vm1, %v8280_v0  ;;  %321 = vst.msk [vmem:[#allocation2 + $0x178] sm:$0x3] %vm275_vm1, %v8280_v0  ;;  %480 = vrot.lane.b32.xlu1 %v405_v29, %s5054_s28  ;;  %478 = vrot.lane.b32.xlu0 %v404_v30, %s5054_s28  ;;  %v351_v43 = vld [vmem:[%s5251_s7 + $0xb8] sm:$0xff]  ;;  %v350_v44 = vld [vmem:[%s5251_s7 + $0xb0] sm:$0xff] }
  0x28   : > { %324 = vst.msk [vmem:[#allocation2 + $0x190] sm:$0x3] %vm275_vm1, %v8280_v0  ;;  %327 = vst.msk [vmem:[#allocation2 + $0x1a8] sm:$0x3] %vm275_vm1, %v8280_v0  ;;  %v413_v45 = vld [vmem:[%s5232_s27 + $0x98] sm:$0xff]  ;;  %v412_v46 = vld [vmem:[%s5232_s27 + $0x90] sm:$0xff] }
  0x29   : > { %642 = vst.msk [vmem:[#allocation4 + $0x8] sm:$0xff] %vm272_vm0, %v5242_v5  ;;  %641 = vst.msk [vmem:[#allocation4] sm:$0xff] %vm272_vm0, %v5269_v16  ;;  %v353_v47 = vld [vmem:[%s5251_s7 + $0xc8] sm:$0xff]  ;;  %v352_v48 = vld [vmem:[%s5251_s7 + $0xc0] sm:$0xff] }
  0x2a   : > { %364 = vst.msk [vmem:[#allocation2 + $0x31] sm:$0xff] %vm361_vm2, %v330_v10  ;;  %362 = vst.msk [vmem:[#allocation2 + $0x19] sm:$0xff] %vm361_vm2, %v328_v11  ;;  %v415_v49 = vld [vmem:[%s5232_s27 + $0xa8] sm:$0xff]  ;;  %v414_v50 = vld [vmem:[%s5232_s27 + $0xa0] sm:$0xff]  ;;  %v932_v11 = vrot.slane %v5269_v16, 2 }
  0x2b   : > { %365 = vst.msk [vmem:[#allocation2 + $0x39] sm:$0xff] %vm361_vm2, %v331_v14  ;;  %363 = vst.msk [vmem:[#allocation2 + $0x21] sm:$0xff] %vm361_vm2, %v329_v15  ;;  %484 = vrot.lane.b32.xlu1 %v407_v33, %s5054_s28  ;;  %482 = vrot.lane.b32.xlu0 %v406_v34, %s5054_s28  ;;  %v355_v51 = vld [vmem:[%s5251_s7 + $0xd8] sm:$0xff]  ;;  %v354_v52 = vld [vmem:[%s5251_s7 + $0xd0] sm:$0xff] }
  0x2c   : > { %367 = vst.msk [vmem:[#allocation2 + $0x51] sm:$0xff] %vm361_vm2, %v333_v17  ;;  %366 = vst.msk [vmem:[#allocation2 + $0x49] sm:$0xff] %vm361_vm2, %v332_v18  ;;  %v417_v53 = vld [vmem:[%s5232_s27 + $0xb8] sm:$0xff]  ;;  %v416_v54 = vld [vmem:[%s5232_s27 + $0xb0] sm:$0xff]  ;;  %v934_v13 = vsel %vm931_vm4, %v932_v11, %v933_v7 }
  0x2d   : > { %369 = vst.msk [vmem:[#allocation2 + $0x69] sm:$0xff] %vm361_vm2, %v335_v19  ;;  %368 = vst.msk [vmem:[#allocation2 + $0x61] sm:$0xff] %vm361_vm2, %v334_v20  ;;  %v357_v55 = vld [vmem:[%s5251_s7 + $0xe8] sm:$0xff]  ;;  %v356_v56 = vld [vmem:[%s5251_s7 + $0xe0] sm:$0xff] }
  0x2e   : > { %371 = vst.msk [vmem:[#allocation2 + $0x81] sm:$0xff] %vm361_vm2, %v337_v21  ;;  %370 = vst.msk [vmem:[#allocation2 + $0x79] sm:$0xff] %vm361_vm2, %v336_v22  ;;  %v419_v57 = vld [vmem:[%s5232_s27 + $0xc8] sm:$0xff]  ;;  %v418_v58 = vld [vmem:[%s5232_s27 + $0xc0] sm:$0xff] }
  0x2f   : > { %373 = vst.msk [vmem:[#allocation2 + $0x99] sm:$0xff] %vm361_vm2, %v339_v23  ;;  %372 = vst.msk [vmem:[#allocation2 + $0x91] sm:$0xff] %vm361_vm2, %v338_v24  ;;  %488 = vrot.lane.b32.xlu1 %v409_v37, %s5054_s28  ;;  %486 = vrot.lane.b32.xlu0 %v408_v38, %s5054_s28  ;;  %v421_v59 = vld [vmem:[%s5232_s27 + $0xd8] sm:$0xff]  ;;  %v420_v60 = vld [vmem:[%s5232_s27 + $0xd0] sm:$0xff] }
  0x30   : > { %375 = vst.msk [vmem:[#allocation2 + $0xb1] sm:$0xff] %vm361_vm2, %v341_v25  ;;  %374 = vst.msk [vmem:[#allocation2 + $0xa9] sm:$0xff] %vm361_vm2, %v340_v26  ;;  %v423_v61 = vld [vmem:[%s5232_s27 + $0xe8] sm:$0xff]  ;;  %v422_v62 = vld [vmem:[%s5232_s27 + $0xe0] sm:$0xff] }
  0x31   : > { %377 = vst.msk [vmem:[#allocation2 + $0xc9] sm:$0xff] %vm361_vm2, %v343_v27  ;;  %376 = vst.msk [vmem:[#allocation2 + $0xc1] sm:$0xff] %vm361_vm2, %v342_v28  ;;  %v589_v63 = vld [vmem:[#allocation2 + $0x10] sm:$0x3]  ;;  %v425_v1 = vld [vmem:[%s5232_s27 + $0xf8] sm:$0xff] }
  0x32   : > { %379 = vst.msk [vmem:[#allocation2 + $0xe1] sm:$0xff] %vm361_vm2, %v345_v31  ;;  %378 = vst.msk [vmem:[#allocation2 + $0xd9] sm:$0xff] %vm361_vm2, %v344_v32  ;;  %v424_v2 = vld [vmem:[%s5232_s27 + $0xf0] sm:$0xff]  ;;  %v725_v4 = vrot.slane %v589_v63, 1  ;;  %v935_v10 = vrot.slane %v589_v63, 2  ;;  %v359_v5 = vld [vmem:[%s5251_s7 + $0xf8] sm:$0xff] }
  0x33   : > { %381 = vst.msk [vmem:[#allocation2 + $0xf9] sm:$0xff] %vm361_vm2, %v347_v35  ;;  %380 = vst.msk [vmem:[#allocation2 + $0xf1] sm:$0xff] %vm361_vm2, %v346_v36  ;;  %492 = vrot.lane.b32.xlu1 %v411_v41, %s5054_s28  ;;  %490 = vrot.lane.b32.xlu0 %v410_v42, %s5054_s28  ;;  %v358_v14 = vld [vmem:[%s5251_s7 + $0xf0] sm:$0xff]  ;;  %s5060_s27 = smov 48  }
  0x34   : > { %383 = vst.msk [vmem:[#allocation2 + $0x111] sm:$0xff] %vm361_vm2, %v349_v39  ;;  %382 = vst.msk [vmem:[#allocation2 + $0x109] sm:$0xff] %vm361_vm2, %v348_v40  ;;  %v726_v8 = vsel %vm721_vm3, %v723_v3, %v725_v4  ;;  %v936_v12 = vsel %vm931_vm4, %v933_v7, %v935_v10 }
  0x35   : > { %385 = vst.msk [vmem:[#allocation2 + $0x129] sm:$0xff] %vm361_vm2, %v351_v43  ;;  %384 = vst.msk [vmem:[#allocation2 + $0x121] sm:$0xff] %vm361_vm2, %v350_v44 }
  0x36   : > { %387 = vst.msk [vmem:[#allocation2 + $0x141] sm:$0xff] %vm361_vm2, %v353_v47  ;;  %386 = vst.msk [vmem:[#allocation2 + $0x139] sm:$0xff] %vm361_vm2, %v352_v48 }
  0x37   : > { %496 = vrot.lane.b32.xlu1 %v413_v45, %s5054_s28  ;;  %494 = vrot.lane.b32.xlu0 %v412_v46, %s5054_s28  ;;  %389 = vst.msk [vmem:[#allocation2 + $0x159] sm:$0xff] %vm361_vm2, %v355_v51  ;;  %388 = vst.msk [vmem:[#allocation2 + $0x151] sm:$0xff] %vm361_vm2, %v354_v52 }
  0x38   : > { %391 = vst.msk [vmem:[#allocation2 + $0x171] sm:$0xff] %vm361_vm2, %v357_v55  ;;  %390 = vst.msk [vmem:[#allocation2 + $0x169] sm:$0xff] %vm361_vm2, %v356_v56 }
  0x39   : > { %393 = vst.msk [vmem:[#allocation2 + $0x189] sm:$0xff] %vm361_vm2, %v359_v5  ;;  %392 = vst.msk [vmem:[#allocation2 + $0x181] sm:$0xff] %vm361_vm2, %v358_v14 }
  0x3b   : > { %500 = vrot.lane.b32.xlu1 %v415_v49, %s5054_s28  ;;  %498 = vrot.lane.b32.xlu0 %v414_v50, %s5054_s28 }
  0x3f   : > { %504 = vrot.lane.b32.xlu1 %v417_v53, %s5054_s28  ;;  %502 = vrot.lane.b32.xlu0 %v416_v54, %s5054_s28 }
  0x43   : > { %508 = vrot.lane.b32.xlu1 %v419_v57, %s5054_s28  ;;  %506 = vrot.lane.b32.xlu0 %v418_v58, %s5054_s28 }
  0x47   : > { %512 = vrot.lane.b32.xlu1 %v421_v59, %s5054_s28  ;;  %510 = vrot.lane.b32.xlu0 %v420_v60, %s5054_s28 }
  0x4b   : > { %516 = vrot.lane.b32.xlu1 %v423_v61, %s5054_s28  ;;  %514 = vrot.lane.b32.xlu0 %v422_v62, %s5054_s28 }
  0x4f   : > { %520 = vrot.lane.b32.xlu1 %v425_v1, %s5054_s28  ;;  %518 = vrot.lane.b32.xlu0 %v424_v2, %s5054_s28 }
  0x53   : > { %804 = vrot.lane.b32.xlu1 %v726_v8, %s5055_s8  ;;  %802 = vrot.lane.b32.xlu0 %v724_v9, %s5055_s8 }
  0x57   : > { %1014 = vrot.lane.b32.xlu1 %v936_v12, %s5056_s9  ;;  %1012 = vrot.lane.b32.xlu0 %v934_v13, %s5056_s9 }
  0x85   : > { %v463_v15 = vpop.permute.xlu1 %462  ;;  %v459_v16 = vpop.permute.xlu0 %458 }
  0x86   : > { %557 = vst.msk [vmem:[#allocation2 + $0x31] sm:$0xff] %vm554_vm5, %v463_v15  ;;  %555 = vst.msk [vmem:[#allocation2 + $0x19] sm:$0xff] %vm554_vm5, %v459_v16 }
  0x89   : > { %v465_v17 = vpop.permute.xlu1 %464  ;;  %v461_v18 = vpop.permute.xlu0 %460 }
  0x8a   : > { %558 = vst.msk [vmem:[#allocation2 + $0x39] sm:$0xff] %vm554_vm5, %v465_v17  ;;  %556 = vst.msk [vmem:[#allocation2 + $0x21] sm:$0xff] %vm554_vm5, %v461_v18 }
  0x8d   : > { %v469_v19 = vpop.permute.xlu1 %468  ;;  %v467_v20 = vpop.permute.xlu0 %466  ;;  %v5391_v21 = vld [vmem:[#allocation2 + $0x18] sm:$0xff]  ;;  %v5393_v22 = vld [vmem:[#allocation2 + $0x30] sm:$0xff] }
  0x8e   : > { %560 = vst.msk [vmem:[#allocation2 + $0x51] sm:$0xff] %vm554_vm5, %v469_v19  ;;  %559 = vst.msk [vmem:[#allocation2 + $0x49] sm:$0xff] %vm554_vm5, %v467_v20  ;;  %v727_v30 = vrot.slane %v5391_v21, 1  ;;  %v732_v32 = vrot.slane %v5393_v22, 1 }
  0x8f   : > { %643 = vst.msk [vmem:[#allocation4 + $0x10] sm:$0xff] %vm272_vm0, %v5391_v21  ;;  %645 = vst.msk [vmem:[#allocation4 + $0x20] sm:$0xff] %vm272_vm0, %v5393_v22 }
  0x91   : > { %v473_v23 = vpop.permute.xlu1 %472  ;;  %v471_v24 = vpop.permute.xlu0 %470  ;;  %v5401_v25 = vld [vmem:[#allocation2 + $0x20] sm:$0xff]  ;;  %v5403_v26 = vld [vmem:[#allocation2 + $0x28] sm:$0x3]  ;;  %v5405_v27 = vld [vmem:[#allocation2 + $0x38] sm:$0xff] }
  0x92   : > { %562 = vst.msk [vmem:[#allocation2 + $0x69] sm:$0xff] %vm554_vm5, %v473_v23  ;;  %561 = vst.msk [vmem:[#allocation2 + $0x61] sm:$0xff] %vm554_vm5, %v471_v24  ;;  %v728_v28 = vrot.slane %v5401_v25, 1  ;;  %v730_v29 = vrot.slane %v5403_v26, 1  ;;  %v5414_v31 = vld [vmem:[#allocation2 + $0x40] sm:$0x3] }
  0x93   : > { %644 = vst.msk [vmem:[#allocation4 + $0x18] sm:$0xff] %vm272_vm0, %v5401_v25  ;;  %646 = vst.msk [vmem:[#allocation4 + $0x28] sm:$0xff] %vm272_vm0, %v5405_v27  ;;  %v733_v35 = vrot.slane %v5405_v27, 1  ;;  %v735_v36 = vrot.slane %v5414_v31, 1 }
  0x94   : > { %v5420_v33 = vsel %vm721_vm3, %v728_v28, %v730_v29  ;;  %v5423_v34 = vsel %vm721_vm3, %v727_v30, %v728_v28 }
  0x95   : > { %808 = vrot.lane.b32.xlu1 %v5420_v33, %s5055_s8  ;;  %806 = vrot.lane.b32.xlu0 %v5423_v34, %s5055_s8  ;;  %v477_v37 = vpop.permute.xlu1 %476  ;;  %v475_v38 = vpop.permute.xlu0 %474  ;;  %v5431_v39 = vld [vmem:[#allocation2 + $0x50] sm:$0xff]  ;;  %v5433_v40 = vld [vmem:[#allocation2 + $0x58] sm:$0x3]  ;;  %v5435_v41 = vld [vmem:[#allocation2 + $0x48] sm:$0xff]  ;;  %v5447_v45 = vsel %vm721_vm3, %v733_v35, %v735_v36  ;;  %v5450_v46 = vsel %vm721_vm3, %v732_v32, %v733_v35 }
  0x96   : > { %564 = vst.msk [vmem:[#allocation2 + $0x81] sm:$0xff] %vm554_vm5, %v477_v37  ;;  %563 = vst.msk [vmem:[#allocation2 + $0x79] sm:$0xff] %vm554_vm5, %v475_v38  ;;  %v738_v42 = vrot.slane %v5431_v39, 1  ;;  %v740_v43 = vrot.slane %v5433_v40, 1  ;;  %v737_v44 = vrot.slane %v5435_v41, 1 }
  0x97   : > { %648 = vst.msk [vmem:[#allocation4 + $0x38] sm:$0xff] %vm272_vm0, %v5431_v39  ;;  %647 = vst.msk [vmem:[#allocation4 + $0x30] sm:$0xff] %vm272_vm0, %v5435_v41 }
  0x98   : > { %v5457_v49 = vsel %vm721_vm3, %v738_v42, %v740_v43  ;;  %v5468_v53 = vsel %vm721_vm3, %v737_v44, %v738_v42 }
  0x99   : > { %812 = vrot.lane.b32.xlu1 %v5447_v45, %s5055_s8  ;;  %810 = vrot.lane.b32.xlu0 %v5450_v46, %s5055_s8  ;;  %v481_v47 = vpop.permute.xlu1 %480  ;;  %v479_v48 = vpop.permute.xlu0 %478  ;;  %v5459_v50 = vld [vmem:[#allocation2 + $0x68] sm:$0xff]  ;;  %v5461_v51 = vld [vmem:[#allocation2 + $0x70] sm:$0x3]  ;;  %v5463_v52 = vld [vmem:[#allocation2 + $0x60] sm:$0xff] }
  0x9a   : > { %566 = vst.msk [vmem:[#allocation2 + $0x99] sm:$0xff] %vm554_vm5, %v481_v47  ;;  %565 = vst.msk [vmem:[#allocation2 + $0x91] sm:$0xff] %vm554_vm5, %v479_v48  ;;  %v743_v54 = vrot.slane %v5459_v50, 1  ;;  %v745_v55 = vrot.slane %v5461_v51, 1  ;;  %v742_v56 = vrot.slane %v5463_v52, 1 }
  0x9b   : > { %650 = vst.msk [vmem:[#allocation4 + $0x48] sm:$0xff] %vm272_vm0, %v5459_v50  ;;  %649 = vst.msk [vmem:[#allocation4 + $0x40] sm:$0xff] %vm272_vm0, %v5463_v52 }
  0x9c   : > { %v5482_v59 = vsel %vm721_vm3, %v743_v54, %v745_v55  ;;  %v5493_v63 = vsel %vm721_vm3, %v742_v56, %v743_v54 }
  0x9d   : > { %816 = vrot.lane.b32.xlu1 %v5457_v49, %s5055_s8  ;;  %814 = vrot.lane.b32.xlu0 %v5468_v53, %s5055_s8  ;;  %v485_v57 = vpop.permute.xlu1 %484  ;;  %v483_v58 = vpop.permute.xlu0 %482  ;;  %v5484_v60 = vld [vmem:[#allocation2 + $0x80] sm:$0xff]  ;;  %v5486_v61 = vld [vmem:[#allocation2 + $0x88] sm:$0x3]  ;;  %v5488_v62 = vld [vmem:[#allocation2 + $0x78] sm:$0xff] }
  0x9e   : > { %568 = vst.msk [vmem:[#allocation2 + $0xb1] sm:$0xff] %vm554_vm5, %v485_v57  ;;  %567 = vst.msk [vmem:[#allocation2 + $0xa9] sm:$0xff] %vm554_vm5, %v483_v58  ;;  %v748_v1 = vrot.slane %v5484_v60, 1  ;;  %v750_v2 = vrot.slane %v5486_v61, 1  ;;  %v747_v3 = vrot.slane %v5488_v62, 1 }
  0x9f   : > { %652 = vst.msk [vmem:[#allocation4 + $0x58] sm:$0xff] %vm272_vm0, %v5484_v60  ;;  %651 = vst.msk [vmem:[#allocation4 + $0x50] sm:$0xff] %vm272_vm0, %v5488_v62 }
  0xa0   : > { %v5507_v7 = vsel %vm721_vm3, %v748_v1, %v750_v2  ;;  %v5518_v11 = vsel %vm721_vm3, %v747_v3, %v748_v1 }
  0xa1   : > { %820 = vrot.lane.b32.xlu1 %v5482_v59, %s5055_s8  ;;  %818 = vrot.lane.b32.xlu0 %v5493_v63, %s5055_s8  ;;  %v489_v4 = vpop.permute.xlu1 %488  ;;  %v487_v6 = vpop.permute.xlu0 %486  ;;  %8361 = vst [vmem:[#allocation6_spill] sm:$0xff] %v5507_v7  ;;  %v5509_v8 = vld [vmem:[#allocation2 + $0x98] sm:$0xff]  ;;  %v5511_v9 = vld [vmem:[#allocation2 + $0xa0] sm:$0x3]  ;;  %v5513_v10 = vld [vmem:[#allocation2 + $0x90] sm:$0xff] }
  0xa2   : > { %570 = vst.msk [vmem:[#allocation2 + $0xc9] sm:$0xff] %vm554_vm5, %v489_v4  ;;  %569 = vst.msk [vmem:[#allocation2 + $0xc1] sm:$0xff] %vm554_vm5, %v487_v6  ;;  %v753_v12 = vrot.slane %v5509_v8, 1  ;;  %v755_v13 = vrot.slane %v5511_v9, 1  ;;  %v752_v5 = vrot.slane %v5513_v10, 1 }
  0xa3   : > { %8362 = vst [vmem:[#allocation7_spill] sm:$0xff] %v5518_v11  ;;  %654 = vst.msk [vmem:[#allocation4 + $0x68] sm:$0xff] %vm272_vm0, %v5509_v8 }
  0xa4   : > { %653 = vst.msk [vmem:[#allocation4 + $0x60] sm:$0xff] %vm272_vm0, %v5513_v10  ;;  %v5532_v16 = vsel %vm721_vm3, %v753_v12, %v755_v13  ;;  %v5543_v20 = vsel %vm721_vm3, %v752_v5, %v753_v12 }
  0xa5   : > { %824 = vrot.lane.b32.xlu1 %v5507_v7, %s5055_s8  ;;  %822 = vrot.lane.b32.xlu0 %v5518_v11, %s5055_s8  ;;  %v493_v14 = vpop.permute.xlu1 %492  ;;  %v491_v15 = vpop.permute.xlu0 %490  ;;  %8363 = vst [vmem:[#allocation8_spill] sm:$0xff] %v5532_v16  ;;  %v5534_v17 = vld [vmem:[#allocation2 + $0xb0] sm:$0xff]  ;;  %v5536_v18 = vld [vmem:[#allocation2 + $0xb8] sm:$0x3]  ;;  %v5538_v19 = vld [vmem:[#allocation2 + $0xa8] sm:$0xff] }
  0xa6   : > { %572 = vst.msk [vmem:[#allocation2 + $0xe1] sm:$0xff] %vm554_vm5, %v493_v14  ;;  %571 = vst.msk [vmem:[#allocation2 + $0xd9] sm:$0xff] %vm554_vm5, %v491_v15  ;;  %v758_v23 = vrot.slane %v5534_v17, 1  ;;  %v760_v24 = vrot.slane %v5536_v18, 1  ;;  %v757_v28 = vrot.slane %v5538_v19, 1 }
  0xa7   : > { %8364 = vst [vmem:[#allocation9_spill] sm:$0xff] %v5543_v20  ;;  %656 = vst.msk [vmem:[#allocation4 + $0x78] sm:$0xff] %vm272_vm0, %v5534_v17 }
  0xa8   : > { %655 = vst.msk [vmem:[#allocation4 + $0x70] sm:$0xff] %vm272_vm0, %v5538_v19  ;;  %v5557_v32 = vsel %vm721_vm3, %v758_v23, %v760_v24  ;;  %v5568_v38 = vsel %vm721_vm3, %v757_v28, %v758_v23 }
  0xa9   : > { %828 = vrot.lane.b32.xlu1 %v5532_v16, %s5055_s8  ;;  %826 = vrot.lane.b32.xlu0 %v5543_v20, %s5055_s8  ;;  %v497_v29 = vpop.permute.xlu1 %496  ;;  %v495_v30 = vpop.permute.xlu0 %494  ;;  %8365 = vst [vmem:[#allocation10_spill] sm:$0xff] %v5557_v32  ;;  %v5559_v35 = vld [vmem:[#allocation2 + $0xc8] sm:$0xff]  ;;  %v5561_v36 = vld [vmem:[#allocation2 + $0xd0] sm:$0x3]  ;;  %v5563_v37 = vld [vmem:[#allocation2 + $0xc0] sm:$0xff] }
  0xaa   : > { %574 = vst.msk [vmem:[#allocation2 + $0xf9] sm:$0xff] %vm554_vm5, %v497_v29  ;;  %573 = vst.msk [vmem:[#allocation2 + $0xf1] sm:$0xff] %vm554_vm5, %v495_v30  ;;  %v763_v42 = vrot.slane %v5559_v35, 1  ;;  %v765_v43 = vrot.slane %v5561_v36, 1  ;;  %v762_v44 = vrot.slane %v5563_v37, 1 }
  0xab   : > { %8366 = vst [vmem:[#allocation11_spill] sm:$0xff] %v5568_v38  ;;  %658 = vst.msk [vmem:[#allocation4 + $0x88] sm:$0xff] %vm272_vm0, %v5559_v35 }
  0xac   : > { %657 = vst.msk [vmem:[#allocation4 + $0x80] sm:$0xff] %vm272_vm0, %v5563_v37  ;;  %v5582_v54 = vsel %vm721_vm3, %v763_v42, %v765_v43  ;;  %v5593_v58 = vsel %vm721_vm3, %v762_v44, %v763_v42 }
  0xad   : > { %832 = vrot.lane.b32.xlu1 %v5557_v32, %s5055_s8  ;;  %830 = vrot.lane.b32.xlu0 %v5568_v38, %s5055_s8  ;;  %v501_v47 = vpop.permute.xlu1 %500  ;;  %v499_v48 = vpop.permute.xlu0 %498  ;;  %8367 = vst [vmem:[#allocation12_spill] sm:$0xff] %v5582_v54  ;;  %v5584_v55 = vld [vmem:[#allocation2 + $0xe0] sm:$0xff]  ;;  %v5586_v56 = vld [vmem:[#allocation2 + $0xe8] sm:$0x3]  ;;  %v5588_v57 = vld [vmem:[#allocation2 + $0xd8] sm:$0xff] }
  0xae   : > { %576 = vst.msk [vmem:[#allocation2 + $0x111] sm:$0xff] %vm554_vm5, %v501_v47  ;;  %575 = vst.msk [vmem:[#allocation2 + $0x109] sm:$0xff] %vm554_vm5, %v499_v48  ;;  %v768_v1 = vrot.slane %v5584_v55, 1  ;;  %v770_v2 = vrot.slane %v5586_v56, 1  ;;  %v767_v3 = vrot.slane %v5588_v57, 1 }
  0xaf   : > { %8368 = vst [vmem:[#allocation13_spill] sm:$0xff] %v5593_v58  ;;  %660 = vst.msk [vmem:[#allocation4 + $0x98] sm:$0xff] %vm272_vm0, %v5584_v55 }
  0xb0   : > { %659 = vst.msk [vmem:[#allocation4 + $0x90] sm:$0xff] %vm272_vm0, %v5588_v57  ;;  %v5607_v12 = vsel %vm721_vm3, %v768_v1, %v770_v2  ;;  %v5618_v15 = vsel %vm721_vm3, %v767_v3, %v768_v1 }
  0xb1   : > { %836 = vrot.lane.b32.xlu1 %v5582_v54, %s5055_s8  ;;  %834 = vrot.lane.b32.xlu0 %v5593_v58, %s5055_s8  ;;  %v505_v4 = vpop.permute.xlu1 %504  ;;  %v503_v6 = vpop.permute.xlu0 %502  ;;  %8369 = vst [vmem:[#allocation14_spill] sm:$0xff] %v5607_v12  ;;  %v5609_v13 = vld [vmem:[#allocation2 + $0xf8] sm:$0xff]  ;;  %v5611_v5 = vld [vmem:[#allocation2 + $0x100] sm:$0x3]  ;;  %v5613_v14 = vld [vmem:[#allocation2 + $0xf0] sm:$0xff] }
  0xb2   : > { %578 = vst.msk [vmem:[#allocation2 + $0x129] sm:$0xff] %vm554_vm5, %v505_v4  ;;  %577 = vst.msk [vmem:[#allocation2 + $0x121] sm:$0xff] %vm554_vm5, %v503_v6  ;;  %v773_v23 = vrot.slane %v5609_v13, 1  ;;  %v775_v24 = vrot.slane %v5611_v5, 1  ;;  %v772_v28 = vrot.slane %v5613_v14, 1 }
  0xb3   : > { %8370 = vst [vmem:[#allocation15_spill] sm:$0xff] %v5618_v15  ;;  %662 = vst.msk [vmem:[#allocation4 + $0xa8] sm:$0xff] %vm272_vm0, %v5609_v13 }
  0xb4   : > { %661 = vst.msk [vmem:[#allocation4 + $0xa0] sm:$0xff] %vm272_vm0, %v5613_v14  ;;  %v5632_v42 = vsel %vm721_vm3, %v773_v23, %v775_v24  ;;  %v5643_v48 = vsel %vm721_vm3, %v772_v28, %v773_v23 }
  0xb5   : > { %840 = vrot.lane.b32.xlu1 %v5607_v12, %s5055_s8  ;;  %838 = vrot.lane.b32.xlu0 %v5618_v15, %s5055_s8  ;;  %v509_v29 = vpop.permute.xlu1 %508  ;;  %v507_v30 = vpop.permute.xlu0 %506  ;;  %8371 = vst [vmem:[#allocation16_spill] sm:$0xff] %v5632_v42  ;;  %v5634_v43 = vld [vmem:[#allocation2 + $0x110] sm:$0xff]  ;;  %v5636_v44 = vld [vmem:[#allocation2 + $0x118] sm:$0x3]  ;;  %v5638_v47 = vld [vmem:[#allocation2 + $0x108] sm:$0xff] }
  0xb6   : > { %580 = vst.msk [vmem:[#allocation2 + $0x141] sm:$0xff] %vm554_vm5, %v509_v29  ;;  %579 = vst.msk [vmem:[#allocation2 + $0x139] sm:$0xff] %vm554_vm5, %v507_v30  ;;  %v778_v1 = vrot.slane %v5634_v43, 1  ;;  %v780_v2 = vrot.slane %v5636_v44, 1  ;;  %v777_v3 = vrot.slane %v5638_v47, 1 }
  0xb7   : > { %8372 = vst [vmem:[#allocation17_spill] sm:$0xff] %v5643_v48  ;;  %664 = vst.msk [vmem:[#allocation4 + $0xb8] sm:$0xff] %vm272_vm0, %v5634_v43 }
  0xb8   : > { %663 = vst.msk [vmem:[#allocation4 + $0xb0] sm:$0xff] %vm272_vm0, %v5638_v47  ;;  %v5657_v23 = vsel %vm721_vm3, %v778_v1, %v780_v2  ;;  %v5668_v30 = vsel %vm721_vm3, %v777_v3, %v778_v1 }
  0xb9   : > { %844 = vrot.lane.b32.xlu1 %v5632_v42, %s5055_s8  ;;  %842 = vrot.lane.b32.xlu0 %v5643_v48, %s5055_s8  ;;  %v513_v4 = vpop.permute.xlu1 %512  ;;  %v511_v6 = vpop.permute.xlu0 %510  ;;  %8373 = vst [vmem:[#allocation18_spill] sm:$0xff] %v5657_v23  ;;  %v5659_v24 = vld [vmem:[#allocation2 + $0x128] sm:$0xff]  ;;  %v5661_v28 = vld [vmem:[#allocation2 + $0x130] sm:$0x3]  ;;  %v5663_v29 = vld [vmem:[#allocation2 + $0x120] sm:$0xff] }
  0xba   : > { %582 = vst.msk [vmem:[#allocation2 + $0x159] sm:$0xff] %vm554_vm5, %v513_v4  ;;  %581 = vst.msk [vmem:[#allocation2 + $0x151] sm:$0xff] %vm554_vm5, %v511_v6  ;;  %v783_v0 = vrot.slane %v5659_v24, 1  ;;  %v785_v48 = vrot.slane %v5661_v28, 1  ;;  %v782_v2 = vrot.slane %v5663_v29, 1 }
  0xbb   : > { %8374 = vst [vmem:[#allocation19_spill] sm:$0xff] %v5668_v30  ;;  %666 = vst.msk [vmem:[#allocation4 + $0xc8] sm:$0xff] %vm272_vm0, %v5659_v24 }
  0xbc   : > { %665 = vst.msk [vmem:[#allocation4 + $0xc0] sm:$0xff] %vm272_vm0, %v5663_v29  ;;  %v5682_v4 = vsel %vm721_vm3, %v783_v0, %v785_v48 }
  0xbd   : > { %848 = vrot.lane.b32.xlu1 %v5657_v23, %s5055_s8  ;;  %846 = vrot.lane.b32.xlu0 %v5668_v30, %s5055_s8  ;;  %v517_v1 = vpop.permute.xlu1 %516  ;;  %v515_v3 = vpop.permute.xlu0 %514  ;;  %8375 = vst [vmem:[#allocation20_spill] sm:$0xff] %v5682_v4  ;;  %v5684_v6 = vld [vmem:[#allocation2 + $0x140] sm:$0xff]  ;;  %v5686_v42 = vld [vmem:[#allocation2 + $0x148] sm:$0x3]  ;;  %v5688_v15 = vld [vmem:[#allocation2 + $0x138] sm:$0xff]  ;;  %v5693_v23 = vsel %vm721_vm3, %v782_v2, %v783_v0 }
  0xbe   : > { %584 = vst.msk [vmem:[#allocation2 + $0x171] sm:$0xff] %vm554_vm5, %v517_v1  ;;  %583 = vst.msk [vmem:[#allocation2 + $0x169] sm:$0xff] %vm554_vm5, %v515_v3  ;;  %v788_v30 = vrot.slane %v5684_v6, 1  ;;  %v790_v12 = vrot.slane %v5686_v42, 1  ;;  %v787_v48 = vrot.slane %v5688_v15, 1 }
  0xbf   : > { %8376 = vst [vmem:[#allocation21_spill] sm:$0xff] %v5693_v23  ;;  %668 = vst.msk [vmem:[#allocation4 + $0xd8] sm:$0xff] %vm272_vm0, %v5684_v6 }
  0xc0   : > { %667 = vst.msk [vmem:[#allocation4 + $0xd0] sm:$0xff] %vm272_vm0, %v5688_v15  ;;  %v5707_v0 = vsel %vm721_vm3, %v788_v30, %v790_v12  ;;  %v5716_v38 = vsel %vm721_vm3, %v787_v48, %v788_v30 }
  0xc1   : > { %852 = vrot.lane.b32.xlu1 %v5682_v4, %s5055_s8  ;;  %850 = vrot.lane.b32.xlu0 %v5693_v23, %s5055_s8  ;;  %8377 = vst [vmem:[#allocation22_spill] sm:$0xff] %v5707_v0  ;;  %v5709_v2 = vld [vmem:[#allocation2 + $0x158] sm:$0xff]  ;;  %v5711_v1 = vld [vmem:[#allocation2 + $0x160] sm:$0x3]  ;;  %v5713_v3 = vld [vmem:[#allocation2 + $0x150] sm:$0xff]  ;;  %v521_v58 = vpop.permute.xlu1 %520  ;;  %v519_v54 = vpop.permute.xlu0 %518 }
  0xc2   : > { %8378 = vst [vmem:[#allocation23_spill] sm:$0xff] %v5709_v2  ;;  %8379 = vst [vmem:[#allocation24_spill] sm:$0xff] %v5713_v3  ;;  %v793_v32 = vrot.slane %v5709_v2, 1  ;;  %v795_v4 = vrot.slane %v5711_v1, 1  ;;  %v792_v12 = vrot.slane %v5713_v3, 1 }
  0xc3   : > { %8380 = vst [vmem:[#allocation25_spill] sm:$0xff] %v5716_v38  ;;  %670 = vst.msk [vmem:[#allocation4 + $0xe8] sm:$0xff] %vm272_vm0, %v5709_v2 }
  0xc4   : > { %669 = vst.msk [vmem:[#allocation4 + $0xe0] sm:$0xff] %vm272_vm0, %v5713_v3  ;;  %v5732_v30 = vsel %vm721_vm3, %v793_v32, %v795_v4 }
  0xc5   : > { %586 = vst.msk [vmem:[#allocation2 + $0x189] sm:$0xff] %vm554_vm5, %v521_v58  ;;  %585 = vst.msk [vmem:[#allocation2 + $0x181] sm:$0xff] %vm554_vm5, %v519_v54  ;;  %856 = vrot.lane.b32.xlu1 %v5707_v0, %s5055_s8  ;;  %854 = vrot.lane.b32.xlu0 %v5716_v38, %s5055_s8  ;;  %v5734_v48 = vld [vmem:[#allocation2 + $0x170] sm:$0xff]  ;;  %v5736_v23 = vld [vmem:[#allocation2 + $0x178] sm:$0x3]  ;;  %v805_v16 = vpop.permute.xlu1 %804  ;;  %v803_v58 = vpop.permute.xlu0 %802  ;;  %v5741_v54 = vsel %vm721_vm3, %v792_v12, %v793_v32 }
  0xc6   : > { %8381 = vst [vmem:[#allocation26_spill] sm:$0xff] %v5732_v30  ;;  %8382 = vst [vmem:[#allocation27_spill] sm:$0xff] %v5734_v48  ;;  %v5738_v20 = vld [vmem:[#allocation2 + $0x168] sm:$0xff]  ;;  %v798_v11 = vrot.slane %v5734_v48, 1  ;;  %v800_v0 = vrot.slane %v5736_v23, 1 }
  0xc7   : > { %8383 = vst [vmem:[#allocation28_spill] sm:$0xff] %v5738_v20  ;;  %8384 = vst [vmem:[#allocation29_spill] sm:$0xff] %v5741_v54  ;;  %v797_v4 = vrot.slane %v5738_v20, 1 }
  0xc8   : > { %672 = vst.msk [vmem:[#allocation4 + $0xf8] sm:$0xff] %vm272_vm0, %v5734_v48  ;;  %671 = vst.msk [vmem:[#allocation4 + $0xf0] sm:$0xff] %vm272_vm0, %v5738_v20  ;;  %v5757_v38 = vsel %vm721_vm3, %v798_v11, %v800_v0  ;;  %v937_v0 = vrot.slane %v5391_v21, 2  ;;  %vm2410_vm0 = vcmask 254976  }
  0xc9   : > { %900 = vst.msk [vmem:[#allocation4 + $0x8] sm:$0xff] %vm898_vm6, %v805_v16  ;;  %899 = vst.msk [vmem:[#allocation4] sm:$0xff] %vm898_vm6, %v803_v58  ;;  %860 = vrot.lane.b32.xlu1 %v5732_v30, %s5055_s8  ;;  %858 = vrot.lane.b32.xlu0 %v5741_v54, %s5055_s8  ;;  %v1015_v32 = vpop.permute.xlu1 %1014  ;;  %v1013_v12 = vpop.permute.xlu0 %1012  ;;  %v5760_v7 = vsel %vm721_vm3, %v797_v4, %v798_v11  ;;  %v938_v16 = vrot.slane %v5401_v25, 2  ;;  %v940_v58 = vrot.slane %v5403_v26, 2  ;;  %v943_v54 = vrot.slane %v5405_v27, 2 }
  0xca   : > { %8385 = vst [vmem:[#allocation30_spill] sm:$0xff] %v5757_v38  ;;  %8386 = vst [vmem:[#allocation31_spill] sm:$0xff] %v5760_v7  ;;  %v945_v11 = vrot.slane %v5414_v31, 2  ;;  %v942_v26 = vrot.slane %v5393_v22, 2  ;;  %v948_v31 = vrot.slane %v5431_v39, 2 }
  0xcb   : > { %1110 = vst.msk [vmem:[#allocation4 + $0x8] sm:$0xff] %vm1108_vm7, %v1015_v32  ;;  %1109 = vst.msk [vmem:[#allocation4] sm:$0xff] %vm1108_vm7, %v1013_v12  ;;  %v5774_v4 = vsel %vm931_vm4, %v938_v16, %v940_v58  ;;  %v5777_v32 = vsel %vm931_vm4, %v937_v0, %v938_v16  ;;  %v950_v58 = vrot.slane %v5433_v40, 2  ;;  %v947_v16 = vrot.slane %v5435_v41, 2 }
  0xcc   : > { %v5785_v12 = vsel %vm931_vm4, %v943_v54, %v945_v11  ;;  %v953_v0 = vrot.slane %v5459_v50, 2  ;;  %v955_v11 = vrot.slane %v5461_v51, 2  ;;  %v952_v40 = vrot.slane %v5463_v52, 2 }
  0xcd   : > { %864 = vrot.lane.b32.xlu1 %v5757_v38, %s5055_s8  ;;  %862 = vrot.lane.b32.xlu0 %v5760_v7, %s5055_s8  ;;  %v5788_v7 = vsel %vm931_vm4, %v942_v26, %v943_v54  ;;  %v5800_v38 = vsel %vm931_vm4, %v948_v31, %v950_v58  ;;  %v5803_v54 = vsel %vm931_vm4, %v947_v16, %v948_v31  ;;  %v958_v51 = vrot.slane %v5484_v60, 2  ;;  %s5061_s8 = smov 56  }
  0xce   : > { %8387 = vst [vmem:[#allocation32_spill] sm:$0xff] %v5800_v38  ;;  %v5811_v26 = vsel %vm931_vm4, %v953_v0, %v955_v11  ;;  %v5814_v30 = vsel %vm931_vm4, %v952_v40, %v953_v0  ;;  %v960_v58 = vrot.slane %v5486_v61, 2  ;;  %v957_v31 = vrot.slane %v5488_v62, 2 }
  0xcf   : > { %8388 = vst [vmem:[#allocation33_spill] sm:$0xff] %v5811_v26  ;;  %v963_v16 = vrot.slane %v5509_v8, 2  ;;  %v965_v11 = vrot.slane %v5511_v9, 2  ;;  %v962_v61 = vrot.slane %v5513_v10, 2  ;;  %v968_v9 = vrot.slane %v5534_v17, 2 }
  0xd0   : > { %v5829_v0 = vsel %vm931_vm4, %v957_v31, %v958_v51  ;;  %v973_v31 = vrot.slane %v5559_v35, 2 }
  0xd1   : > { %1018 = vrot.lane.b32.xlu1 %v5774_v4, %s5056_s9  ;;  %1016 = vrot.lane.b32.xlu0 %v5777_v32, %s5056_s9  ;;  %v5837_v40 = vsel %vm931_vm4, %v963_v16, %v965_v11  ;;  %v975_v11 = vrot.slane %v5561_v36, 2  ;;  %v978_v36 = vrot.slane %v5584_v55, 2 }
  0xd5   : > { %1022 = vrot.lane.b32.xlu1 %v5785_v12, %s5056_s9  ;;  %1020 = vrot.lane.b32.xlu0 %v5788_v7, %s5056_s9 }
  0xd9   : > { %1026 = vrot.lane.b32.xlu1 %v5800_v38, %s5056_s9  ;;  %1024 = vrot.lane.b32.xlu0 %v5803_v54, %s5056_s9  ;;  %v5826_v38 = vsel %vm931_vm4, %v958_v51, %v960_v58  ;;  %v970_v58 = vrot.slane %v5536_v18, 2  ;;  %v967_v51 = vrot.slane %v5538_v19, 2  ;;  %v972_v18 = vrot.slane %v5563_v37, 2 }
  0xda   : > { %8389 = vst [vmem:[#allocation34_spill] sm:$0xff] %v5826_v38 }
  0xdd   : > { %1030 = vrot.lane.b32.xlu1 %v5811_v26, %s5056_s9  ;;  %1028 = vrot.lane.b32.xlu0 %v5814_v30, %s5056_s9  ;;  %v5840_v26 = vsel %vm931_vm4, %v962_v61, %v963_v16  ;;  %v5855_v16 = vsel %vm931_vm4, %v967_v51, %v968_v9  ;;  %v5863_v61 = vsel %vm931_vm4, %v973_v31, %v975_v11  ;;  %v983_v51 = vrot.slane %v5609_v13, 2 }
  0xde   : > { %8390 = vst [vmem:[#allocation35_spill] sm:$0xff] %v5840_v26  ;;  %8391 = vst [vmem:[#allocation36_spill] sm:$0xff] %v5855_v16  ;;  %v985_v11 = vrot.slane %v5611_v5, 2  ;;  %v988_v5 = vrot.slane %v5634_v43, 2 }
  0xe1   : > { %1034 = vrot.lane.b32.xlu1 %v5826_v38, %s5056_s9  ;;  %1032 = vrot.lane.b32.xlu0 %v5829_v0, %s5056_s9  ;;  %v5852_v38 = vsel %vm931_vm4, %v968_v9, %v970_v58  ;;  %v980_v58 = vrot.slane %v5586_v56, 2  ;;  %v977_v9 = vrot.slane %v5588_v57, 2  ;;  %v982_v56 = vrot.slane %v5613_v14, 2 }
  0xe5   : > { %1038 = vrot.lane.b32.xlu1 %v5837_v40, %s5056_s9  ;;  %1036 = vrot.lane.b32.xlu0 %v5840_v26, %s5056_s9  ;;  %v5866_v26 = vsel %vm931_vm4, %v972_v18, %v973_v31  ;;  %v5881_v31 = vsel %vm931_vm4, %v977_v9, %v978_v36  ;;  %v5889_v18 = vsel %vm931_vm4, %v983_v51, %v985_v11  ;;  %v993_v9 = vrot.slane %v5659_v24, 2 }
  0xe6   : > { %8392 = vst [vmem:[#allocation37_spill] sm:$0xff] %v5866_v26  ;;  %8393 = vst [vmem:[#allocation38_spill] sm:$0xff] %v5881_v31  ;;  %v995_v11 = vrot.slane %v5661_v28, 2  ;;  %v998_v28 = vrot.slane %v5684_v6, 2 }
  0xe9   : > { %1042 = vrot.lane.b32.xlu1 %v5852_v38, %s5056_s9  ;;  %1040 = vrot.lane.b32.xlu0 %v5855_v16, %s5056_s9  ;;  %v5878_v16 = vsel %vm931_vm4, %v978_v36, %v980_v58  ;;  %v990_v58 = vrot.slane %v5636_v44, 2  ;;  %v987_v36 = vrot.slane %v5638_v47, 2  ;;  %v992_v44 = vrot.slane %v5663_v29, 2 }
  0xed   : > { %1046 = vrot.lane.b32.xlu1 %v5863_v61, %s5056_s9  ;;  %1044 = vrot.lane.b32.xlu0 %v5866_v26, %s5056_s9  ;;  %v5892_v26 = vsel %vm931_vm4, %v982_v56, %v983_v51  ;;  %v5907_v51 = vsel %vm931_vm4, %v987_v36, %v988_v5  ;;  %v5915_v56 = vsel %vm931_vm4, %v993_v9, %v995_v11  ;;  %v1003_v36 = vrot.slane %v5709_v2, 2 }
  0xee   : > { %8394 = vst [vmem:[#allocation39_spill] sm:$0xff] %v5892_v26  ;;  %8395 = vst [vmem:[#allocation40_spill] sm:$0xff] %v5907_v51  ;;  %v1005_v11 = vrot.slane %v5711_v1, 2  ;;  %v1008_v1 = vrot.slane %v5734_v48, 2 }
  0xf1   : > { %1050 = vrot.lane.b32.xlu1 %v5878_v16, %s5056_s9  ;;  %1048 = vrot.lane.b32.xlu0 %v5881_v31, %s5056_s9  ;;  %v5904_v31 = vsel %vm931_vm4, %v988_v5, %v990_v58  ;;  %v1000_v58 = vrot.slane %v5686_v42, 2  ;;  %v997_v5 = vrot.slane %v5688_v15, 2  ;;  %v1002_v42 = vrot.slane %v5713_v3, 2 }
  0xf5   : > { %1054 = vrot.lane.b32.xlu1 %v5889_v18, %s5056_s9  ;;  %1052 = vrot.lane.b32.xlu0 %v5892_v26, %s5056_s9  ;;  %v5918_v26 = vsel %vm931_vm4, %v992_v44, %v993_v9  ;;  %v5933_v9 = vsel %vm931_vm4, %v997_v5, %v998_v28  ;;  %v5941_v44 = vsel %vm931_vm4, %v1003_v36, %v1005_v11 }
  0xf6   : > { %8396 = vst [vmem:[#allocation41_spill] sm:$0xff] %v5918_v26  ;;  %8397 = vst [vmem:[#allocation42_spill] sm:$0xff] %v5933_v9 }
  0xf7   : > { %8398 = vst [vmem:[#allocation43_spill] sm:$0xff] %v5941_v44 }
  0xf9   : > { %1058 = vrot.lane.b32.xlu1 %v5904_v31, %s5056_s9  ;;  %1056 = vrot.lane.b32.xlu0 %v5907_v51, %s5056_s9  ;;  %v5930_v51 = vsel %vm931_vm4, %v998_v28, %v1000_v58  ;;  %v1010_v58 = vrot.slane %v5736_v23, 2  ;;  %v1007_v28 = vrot.slane %v5738_v20, 2 }
  0xfb   : > { %v5959_v11 = vsel %vm931_vm4, %v1007_v28, %v1008_v1 }
  0xfc   : > { %8401 = vst [vmem:[#allocation46_spill] sm:$0xff] %v5959_v11 }
  0xfd   : > { %1062 = vrot.lane.b32.xlu1 %v5915_v56, %s5056_s9  ;;  %1060 = vrot.lane.b32.xlu0 %v5918_v26, %s5056_s9  ;;  %v5944_v26 = vsel %vm931_vm4, %v1002_v42, %v1003_v36  ;;  %v5956_v36 = vsel %vm931_vm4, %v1008_v1, %v1010_v58 }
  0xfe   : > { %8399 = vst [vmem:[#allocation44_spill] sm:$0xff] %v5944_v26  ;;  %8400 = vst [vmem:[#allocation45_spill] sm:$0xff] %v5956_v36 }
 0x101   : > { %1066 = vrot.lane.b32.xlu1 %v5930_v51, %s5056_s9  ;;  %1064 = vrot.lane.b32.xlu0 %v5933_v9, %s5056_s9 }
 0x105   : > { %1070 = vrot.lane.b32.xlu1 %v5941_v44, %s5056_s9  ;;  %1068 = vrot.lane.b32.xlu0 %v5944_v26, %s5056_s9 }
 0x107   : > { %v809_v5 = vpop.permute.xlu1 %808  ;;  %v807_v9 = vpop.permute.xlu0 %806 }
 0x108   : > { %902 = vst.msk [vmem:[#allocation4 + $0x18] sm:$0xff] %vm898_vm6, %v809_v5  ;;  %901 = vst.msk [vmem:[#allocation4 + $0x10] sm:$0xff] %vm898_vm6, %v807_v9 }
 0x109   : > { %1074 = vrot.lane.b32.xlu1 %v5956_v36, %s5056_s9  ;;  %1072 = vrot.lane.b32.xlu0 %v5959_v11, %s5056_s9  ;;  %v8409_v11 = vld [vmem:[#allocation13_spill] sm:$0xff]  ;;  %v8410_v36 = vld [vmem:[#allocation14_spill] sm:$0xff] }
 0x10b   : > { %v813_v23 = vpop.permute.xlu1 %812  ;;  %v811_v42 = vpop.permute.xlu0 %810 }
 0x10c   : > { %904 = vst.msk [vmem:[#allocation4 + $0x28] sm:$0xff] %vm898_vm6, %v813_v23  ;;  %903 = vst.msk [vmem:[#allocation4 + $0x20] sm:$0xff] %vm898_vm6, %v811_v42 }
 0x10d   : > { %1145 = vrot.lane.b32.xlu1 %v5401_v25, %s5057_s10  ;;  %1143 = vrot.lane.b32.xlu0 %v5391_v21, %s5057_s10 }
 0x10f   : > { %v817_v9 = vpop.permute.xlu1 %816  ;;  %v815_v1 = vpop.permute.xlu0 %814 }
 0x110   : > { %906 = vst.msk [vmem:[#allocation4 + $0x38] sm:$0xff] %vm898_vm6, %v817_v9  ;;  %905 = vst.msk [vmem:[#allocation4 + $0x30] sm:$0xff] %vm898_vm6, %v815_v1 }
 0x111   : > { %1149 = vrot.lane.b32.xlu1 %v5405_v27, %s5057_s10  ;;  %1147 = vrot.lane.b32.xlu0 %v5393_v22, %s5057_s10 }
 0x113   : > { %v821_v58 = vpop.permute.xlu1 %820  ;;  %v819_v28 = vpop.permute.xlu0 %818 }
 0x114   : > { %908 = vst.msk [vmem:[#allocation4 + $0x48] sm:$0xff] %vm898_vm6, %v821_v58  ;;  %907 = vst.msk [vmem:[#allocation4 + $0x40] sm:$0xff] %vm898_vm6, %v819_v28 }
 0x115   : > { %1153 = vrot.lane.b32.xlu1 %v5431_v39, %s5057_s10  ;;  %1151 = vrot.lane.b32.xlu0 %v5435_v41, %s5057_s10 }
 0x117   : > { %v825_v21 = vpop.permute.xlu1 %824  ;;  %v823_v25 = vpop.permute.xlu0 %822 }
 0x118   : > { %910 = vst.msk [vmem:[#allocation4 + $0x58] sm:$0xff] %vm898_vm6, %v825_v21  ;;  %909 = vst.msk [vmem:[#allocation4 + $0x50] sm:$0xff] %vm898_vm6, %v823_v25 }
 0x119   : > { %1157 = vrot.lane.b32.xlu1 %v5459_v50, %s5057_s10  ;;  %1155 = vrot.lane.b32.xlu0 %v5463_v52, %s5057_s10 }
 0x11b   : > { %v829_v5 = vpop.permute.xlu1 %828  ;;  %v827_v23 = vpop.permute.xlu0 %826 }
 0x11c   : > { %912 = vst.msk [vmem:[#allocation4 + $0x68] sm:$0xff] %vm898_vm6, %v829_v5  ;;  %911 = vst.msk [vmem:[#allocation4 + $0x60] sm:$0xff] %vm898_vm6, %v827_v23 }
 0x11d   : > { %1161 = vrot.lane.b32.xlu1 %v5484_v60, %s5057_s10  ;;  %1159 = vrot.lane.b32.xlu0 %v5488_v62, %s5057_s10 }
 0x11f   : > { %v833_v42 = vpop.permute.xlu1 %832  ;;  %v831_v9 = vpop.permute.xlu0 %830 }
 0x120   : > { %914 = vst.msk [vmem:[#allocation4 + $0x78] sm:$0xff] %vm898_vm6, %v833_v42  ;;  %913 = vst.msk [vmem:[#allocation4 + $0x70] sm:$0xff] %vm898_vm6, %v831_v9 }
 0x121   : > { %1165 = vrot.lane.b32.xlu1 %v5509_v8, %s5057_s10  ;;  %1163 = vrot.lane.b32.xlu0 %v5513_v10, %s5057_s10 }
 0x123   : > { %v837_v1 = vpop.permute.xlu1 %836  ;;  %v835_v58 = vpop.permute.xlu0 %834 }
 0x124   : > { %916 = vst.msk [vmem:[#allocation4 + $0x88] sm:$0xff] %vm898_vm6, %v837_v1  ;;  %915 = vst.msk [vmem:[#allocation4 + $0x80] sm:$0xff] %vm898_vm6, %v835_v58 }
 0x125   : > { %1169 = vrot.lane.b32.xlu1 %v5534_v17, %s5057_s10  ;;  %1167 = vrot.lane.b32.xlu0 %v5538_v19, %s5057_s10 }
 0x127   : > { %v841_v28 = vpop.permute.xlu1 %840  ;;  %v839_v21 = vpop.permute.xlu0 %838 }
 0x128   : > { %918 = vst.msk [vmem:[#allocation4 + $0x98] sm:$0xff] %vm898_vm6, %v841_v28  ;;  %917 = vst.msk [vmem:[#allocation4 + $0x90] sm:$0xff] %vm898_vm6, %v839_v21 }
 0x129   : > { %1173 = vrot.lane.b32.xlu1 %v5559_v35, %s5057_s10  ;;  %1171 = vrot.lane.b32.xlu0 %v5563_v37, %s5057_s10 }
 0x12b   : > { %v845_v25 = vpop.permute.xlu1 %844  ;;  %v843_v5 = vpop.permute.xlu0 %842 }
 0x12c   : > { %920 = vst.msk [vmem:[#allocation4 + $0xa8] sm:$0xff] %vm898_vm6, %v845_v25  ;;  %919 = vst.msk [vmem:[#allocation4 + $0xa0] sm:$0xff] %vm898_vm6, %v843_v5 }
 0x12d   : > { %1177 = vrot.lane.b32.xlu1 %v5584_v55, %s5057_s10  ;;  %1175 = vrot.lane.b32.xlu0 %v5588_v57, %s5057_s10 }
 0x12f   : > { %v849_v23 = vpop.permute.xlu1 %848  ;;  %v847_v42 = vpop.permute.xlu0 %846 }
 0x130   : > { %922 = vst.msk [vmem:[#allocation4 + $0xb8] sm:$0xff] %vm898_vm6, %v849_v23  ;;  %921 = vst.msk [vmem:[#allocation4 + $0xb0] sm:$0xff] %vm898_vm6, %v847_v42 }
 0x131   : > { %1181 = vrot.lane.b32.xlu1 %v5609_v13, %s5057_s10  ;;  %1179 = vrot.lane.b32.xlu0 %v5613_v14, %s5057_s10 }
 0x133   : > { %v853_v9 = vpop.permute.xlu1 %852  ;;  %v851_v1 = vpop.permute.xlu0 %850 }
 0x134   : > { %924 = vst.msk [vmem:[#allocation4 + $0xc8] sm:$0xff] %vm898_vm6, %v853_v9  ;;  %923 = vst.msk [vmem:[#allocation4 + $0xc0] sm:$0xff] %vm898_vm6, %v851_v1 }
 0x135   : > { %1185 = vrot.lane.b32.xlu1 %v5634_v43, %s5057_s10  ;;  %1183 = vrot.lane.b32.xlu0 %v5638_v47, %s5057_s10 }
 0x137   : > { %v857_v58 = vpop.permute.xlu1 %856  ;;  %v855_v28 = vpop.permute.xlu0 %854 }
 0x138   : > { %926 = vst.msk [vmem:[#allocation4 + $0xd8] sm:$0xff] %vm898_vm6, %v857_v58  ;;  %925 = vst.msk [vmem:[#allocation4 + $0xd0] sm:$0xff] %vm898_vm6, %v855_v28  ;;  %v636_v28 = vld [vmem:[#allocation2 + $0x188] sm:$0xff] }
 0x139   : > { %1189 = vrot.lane.b32.xlu1 %v5659_v24, %s5057_s10  ;;  %1187 = vrot.lane.b32.xlu0 %v5663_v29, %s5057_s10 }
 0x13b   : > { %v861_v21 = vpop.permute.xlu1 %860  ;;  %v859_v25 = vpop.permute.xlu0 %858 }
 0x13c   : > { %928 = vst.msk [vmem:[#allocation4 + $0xe8] sm:$0xff] %vm898_vm6, %v861_v21  ;;  %927 = vst.msk [vmem:[#allocation4 + $0xe0] sm:$0xff] %vm898_vm6, %v859_v25  ;;  %v635_v21 = vld [vmem:[#allocation2 + $0x180] sm:$0xff] }
 0x13d   : > { %1193 = vrot.lane.b32.xlu1 %v5684_v6, %s5057_s10  ;;  %1191 = vrot.lane.b32.xlu0 %v5688_v15, %s5057_s10 }
 0x13f   : > { %v865_v5 = vpop.permute.xlu1 %864  ;;  %v863_v23 = vpop.permute.xlu0 %862 }
 0x140   : > { %930 = vst.msk [vmem:[#allocation4 + $0xf8] sm:$0xff] %vm898_vm6, %v865_v5  ;;  %929 = vst.msk [vmem:[#allocation4 + $0xf0] sm:$0xff] %vm898_vm6, %v863_v23 }
 0x141   : > { %1197 = vrot.lane.b32.xlu1 %v5709_v2, %s5057_s10  ;;  %1195 = vrot.lane.b32.xlu0 %v5713_v3, %s5057_s10  ;;  %v1975_v3 = vld [vmem:[%s8275_s2 + $0x10] sm:$0xff] }
 0x143   : > { %v1019_v42 = vpop.permute.xlu1 %1018  ;;  %v1017_v9 = vpop.permute.xlu0 %1016 }
 0x144   : > { %1112 = vst.msk [vmem:[#allocation4 + $0x18] sm:$0xff] %vm1108_vm7, %v1019_v42  ;;  %1111 = vst.msk [vmem:[#allocation4 + $0x10] sm:$0xff] %vm1108_vm7, %v1017_v9 }
 0x145   : > { %1201 = vrot.lane.b32.xlu1 %v5734_v48, %s5057_s10  ;;  %1199 = vrot.lane.b32.xlu0 %v5738_v20, %s5057_s10  ;;  %v8411_v20 = vld [vmem:[#allocation15_spill] sm:$0xff] }
 0x147   : > { %v1023_v1 = vpop.permute.xlu1 %1022  ;;  %v1021_v58 = vpop.permute.xlu0 %1020 }
 0x148   : > { %1114 = vst.msk [vmem:[#allocation4 + $0x28] sm:$0xff] %vm1108_vm7, %v1023_v1  ;;  %1113 = vst.msk [vmem:[#allocation4 + $0x20] sm:$0xff] %vm1108_vm7, %v1021_v58 }
 0x149   : > { %1205 = vrot.lane.b32.xlu1 %v636_v28, %s5057_s10  ;;  %1203 = vrot.lane.b32.xlu0 %v635_v21, %s5057_s10  ;;  %v8402_v21 = vld [vmem:[#allocation6_spill] sm:$0xff] }
 0x14b   : > { %v1027_v25 = vpop.permute.xlu1 %1026  ;;  %v1025_v5 = vpop.permute.xlu0 %1024 }
 0x14c   : > { %1116 = vst.msk [vmem:[#allocation4 + $0x38] sm:$0xff] %vm1108_vm7, %v1027_v25  ;;  %1115 = vst.msk [vmem:[#allocation4 + $0x30] sm:$0xff] %vm1108_vm7, %v1025_v5  ;;  %v8403_v25 = vld [vmem:[#allocation7_spill] sm:$0xff] }
 0x14d   : > { %1280 = vrot.lane.b32.xlu1 %v5420_v33, %s5058_s11  ;;  %1278 = vrot.lane.b32.xlu0 %v5423_v34, %s5058_s11 }
 0x14f   : > { %v1031_v23 = vpop.permute.xlu1 %1030  ;;  %v1029_v42 = vpop.permute.xlu0 %1028 }
 0x150   : > { %1118 = vst.msk [vmem:[#allocation4 + $0x48] sm:$0xff] %vm1108_vm7, %v1031_v23  ;;  %1117 = vst.msk [vmem:[#allocation4 + $0x40] sm:$0xff] %vm1108_vm7, %v1029_v42  ;;  %v8404_v42 = vld [vmem:[#allocation8_spill] sm:$0xff] }
 0x151   : > { %1284 = vrot.lane.b32.xlu1 %v5447_v45, %s5058_s11  ;;  %1282 = vrot.lane.b32.xlu0 %v5450_v46, %s5058_s11 }
 0x153   : > { %v1035_v9 = vpop.permute.xlu1 %1034  ;;  %v1033_v1 = vpop.permute.xlu0 %1032 }
 0x154   : > { %1120 = vst.msk [vmem:[#allocation4 + $0x58] sm:$0xff] %vm1108_vm7, %v1035_v9  ;;  %1119 = vst.msk [vmem:[#allocation4 + $0x50] sm:$0xff] %vm1108_vm7, %v1033_v1  ;;  %v8405_v9 = vld [vmem:[#allocation9_spill] sm:$0xff] }
 0x155   : > { %1288 = vrot.lane.b32.xlu1 %v5457_v49, %s5058_s11  ;;  %1286 = vrot.lane.b32.xlu0 %v5468_v53, %s5058_s11 }
 0x157   : > { %v1039_v33 = vpop.permute.xlu1 %1038  ;;  %v1037_v34 = vpop.permute.xlu0 %1036 }
 0x158   : > { %1122 = vst.msk [vmem:[#allocation4 + $0x68] sm:$0xff] %vm1108_vm7, %v1039_v33  ;;  %1121 = vst.msk [vmem:[#allocation4 + $0x60] sm:$0xff] %vm1108_vm7, %v1037_v34  ;;  %v8406_v34 = vld [vmem:[#allocation10_spill] sm:$0xff] }
 0x159   : > { %1292 = vrot.lane.b32.xlu1 %v5482_v59, %s5058_s11  ;;  %1290 = vrot.lane.b32.xlu0 %v5493_v63, %s5058_s11 }
 0x15b   : > { %v1043_v58 = vpop.permute.xlu1 %1042  ;;  %v1041_v28 = vpop.permute.xlu0 %1040 }
 0x15c   : > { %1124 = vst.msk [vmem:[#allocation4 + $0x78] sm:$0xff] %vm1108_vm7, %v1043_v58  ;;  %1123 = vst.msk [vmem:[#allocation4 + $0x70] sm:$0xff] %vm1108_vm7, %v1041_v28  ;;  %v8407_v58 = vld [vmem:[#allocation11_spill] sm:$0xff] }
 0x15d   : > { %1296 = vrot.lane.b32.xlu1 %v8402_v21, %s5058_s11  ;;  %1294 = vrot.lane.b32.xlu0 %v8403_v25, %s5058_s11 }
 0x15f   : > { %v1047_v5 = vpop.permute.xlu1 %1046  ;;  %v1045_v23 = vpop.permute.xlu0 %1044 }
 0x160   : > { %1126 = vst.msk [vmem:[#allocation4 + $0x88] sm:$0xff] %vm1108_vm7, %v1047_v5  ;;  %1125 = vst.msk [vmem:[#allocation4 + $0x80] sm:$0xff] %vm1108_vm7, %v1045_v23  ;;  %v8408_v23 = vld [vmem:[#allocation12_spill] sm:$0xff] }
 0x161   : > { %1300 = vrot.lane.b32.xlu1 %v8404_v42, %s5058_s11  ;;  %1298 = vrot.lane.b32.xlu0 %v8405_v9, %s5058_s11 }
 0x163   : > { %v1051_v1 = vpop.permute.xlu1 %1050  ;;  %v1049_v33 = vpop.permute.xlu0 %1048 }
 0x164   : > { %1128 = vst.msk [vmem:[#allocation4 + $0x98] sm:$0xff] %vm1108_vm7, %v1051_v1  ;;  %1127 = vst.msk [vmem:[#allocation4 + $0x90] sm:$0xff] %vm1108_vm7, %v1049_v33 }
 0x165   : > { %1304 = vrot.lane.b32.xlu1 %v8406_v34, %s5058_s11  ;;  %1302 = vrot.lane.b32.xlu0 %v8407_v58, %s5058_s11 }
 0x167   : > { %v1055_v28 = vpop.permute.xlu1 %1054  ;;  %v1053_v5 = vpop.permute.xlu0 %1052 }
 0x168   : > { %1130 = vst.msk [vmem:[#allocation4 + $0xa8] sm:$0xff] %vm1108_vm7, %v1055_v28  ;;  %1129 = vst.msk [vmem:[#allocation4 + $0xa0] sm:$0xff] %vm1108_vm7, %v1053_v5  ;;  %v1973_v28 = vld [vmem:[%s8275_s2] sm:$0xff]  ;;  %v1974_v5 = vld [vmem:[%s8275_s2 + $0x8] sm:$0xff] }
 0x169   : > { %1308 = vrot.lane.b32.xlu1 %v8408_v23, %s5058_s11  ;;  %1306 = vrot.lane.b32.xlu0 %v8409_v11, %s5058_s11  ;;  %v4916_v48 = vpack.c.bf16 %v1974_v5, %v1973_v28  ;;  %v1976_v28 = vld [vmem:[%s8275_s2 + $0x18] sm:$0xff] }
 0x16a   : > { %v4920_v5 = vpack.c.bf16 %v1976_v28, %v1975_v3  ;;  %v1978_v3 = vld [vmem:[%s8275_s2 + $0x28] sm:$0xff] }
 0x16b   : > { %v1059_v1 = vpop.permute.xlu1 %1058  ;;  %v1057_v33 = vpop.permute.xlu0 %1056  ;;  %4917 = vmatprep.subr.bf16.mxu0 %v4916_v48 }
 0x16c   : > { %1132 = vst.msk [vmem:[#allocation4 + $0xb8] sm:$0xff] %vm1108_vm7, %v1059_v1  ;;  %1131 = vst.msk [vmem:[#allocation4 + $0xb0] sm:$0xff] %vm1108_vm7, %v1057_v33  ;;  %v8412_v1 = vld [vmem:[#allocation16_spill] sm:$0xff]  ;;  %v8413_v33 = vld [vmem:[#allocation17_spill] sm:$0xff]  ;;  %4919 = vmatpush3.bf16.msra.mxu0 %v4916_v48 }
 0x16d   : > { %1312 = vrot.lane.b32.xlu1 %v8410_v36, %s5058_s11  ;;  %1310 = vrot.lane.b32.xlu0 %v8411_v20, %s5058_s11 }
 0x16e   : > { %4921 = vmatprep.subr.bf16.mxu0 %v4920_v5 }
 0x16f   : > { %v1063_v26 = vpop.permute.xlu1 %1062  ;;  %v1061_v44 = vpop.permute.xlu0 %1060 }
 0x170   : > { %1134 = vst.msk [vmem:[#allocation4 + $0xc8] sm:$0xff] %vm1108_vm7, %v1063_v26  ;;  %1133 = vst.msk [vmem:[#allocation4 + $0xc0] sm:$0xff] %vm1108_vm7, %v1061_v44  ;;  %v1977_v44 = vld [vmem:[%s8275_s2 + $0x20] sm:$0xff]  ;;  %4923 = vmatpush3.bf16.msra.mxu0 %v4920_v5 }
 0x171   : > { %1316 = vrot.lane.b32.xlu1 %v8412_v1, %s5058_s11  ;;  %1314 = vrot.lane.b32.xlu0 %v8413_v33, %s5058_s11  ;;  %v4924_v48 = vpack.c.bf16 %v1978_v3, %v1977_v44 }
 0x173   : > { %v1067_v26 = vpop.permute.xlu1 %1066  ;;  %v1065_v2 = vpop.permute.xlu0 %1064  ;;  %4925 = vmatprep.subr.bf16.mxu0 %v4924_v48 }
 0x174   : > { %1136 = vst.msk [vmem:[#allocation4 + $0xd8] sm:$0xff] %vm1108_vm7, %v1067_v26  ;;  %1135 = vst.msk [vmem:[#allocation4 + $0xd0] sm:$0xff] %vm1108_vm7, %v1065_v2  ;;  %4927 = vmatpush3.bf16.msra.mxu0 %v4924_v48 }
 0x175   : > { %1414 = vrot.lane.b32.xlu1 %v5774_v4, %s5059_s20  ;;  %1412 = vrot.lane.b32.xlu0 %v5777_v32, %s5059_s20  ;;  %v1979_v4 = vld [vmem:[%s8275_s2 + $0x30] sm:$0xff]  ;;  %v1980_v32 = vld [vmem:[%s8275_s2 + $0x38] sm:$0xff] }
 0x176   : > { %v4928_v5 = vpack.c.bf16 %v1980_v32, %v1979_v4 }
 0x177   : > { %v1071_v28 = vpop.permute.xlu1 %1070  ;;  %v1069_v2 = vpop.permute.xlu0 %1068 }
 0x178   : > { %1138 = vst.msk [vmem:[#allocation4 + $0xe8] sm:$0xff] %vm1108_vm7, %v1071_v28  ;;  %1137 = vst.msk [vmem:[#allocation4 + $0xe0] sm:$0xff] %vm1108_vm7, %v1069_v2  ;;  %4929 = vmatprep.subr.bf16.mxu0 %v4928_v5 }
 0x179   : > { %1545 = vrot.lane.b32.xlu1 %v5405_v27, %s5060_s27  ;;  %1543 = vrot.lane.b32.xlu0 %v5393_v22, %s5060_s27  ;;  %v1981_v22 = vld [vmem:[%s8275_s2 + $0x40] sm:$0xff] }
 0x17a   : > { %4931 = vmatpush3.bf16.msra.mxu0 %v4928_v5 }
 0x17b   : > { %v1075_v26 = vpop.permute.xlu1 %1074  ;;  %v1073_v44 = vpop.permute.xlu0 %1072  ;;  %4810 = vmatprep.subr.mxu0 %v1981_v22 }
 0x17c   : > { %1140 = vst.msk [vmem:[#allocation4 + $0xf8] sm:$0xff] %vm1108_vm7, %v1075_v26  ;;  %1139 = vst.msk [vmem:[#allocation4 + $0xf0] sm:$0xff] %vm1108_vm7, %v1073_v44 }
 0x17d   : > { %1680 = vrot.lane.b32.xlu1 %v5447_v45, %s5061_s8  ;;  %1678 = vrot.lane.b32.xlu0 %v5450_v46, %s5061_s8 }
 0x17e   : > { %4811 = vmatpush3.msra.mxu0 %v1981_v22 }
 0x17f   : > { %v1146_v27 = vpop.permute.xlu1 %1145  ;;  %v1144_v3 = vpop.permute.xlu0 %1143 }
 0x180   : > { %1241 = vst.msk [vmem:[#allocation4 + $0x8] sm:$0xff] %vm1239_vm8, %v1146_v27  ;;  %1240 = vst.msk [vmem:[#allocation4] sm:$0xff] %vm1239_vm8, %v1144_v3 }
 0x181   : > { %1416 = vrot.lane.b32.xlu1 %v5788_v7, %s5059_s20  ;;  %1812 = vrot.lane.b32.xlu0 %v5788_v7, %s5062_s12 }
 0x183   : > { %v1150_v45 = vpop.permute.xlu1 %1149  ;;  %v1148_v46 = vpop.permute.xlu0 %1147 }
 0x184   : > { %1243 = vst.msk [vmem:[#allocation4 + $0x18] sm:$0xff] %vm1239_vm8, %v1150_v45  ;;  %1242 = vst.msk [vmem:[#allocation4 + $0x10] sm:$0xff] %vm1239_vm8, %v1148_v46 }
 0x185   : > { %1418 = vrot.lane.b32.xlu1 %v5785_v12, %s5059_s20  ;;  %1814 = vrot.lane.b32.xlu0 %v5785_v12, %s5062_s12 }
 0x187   : > { %v1154_v48 = vpop.permute.xlu1 %1153  ;;  %v1152_v28 = vpop.permute.xlu0 %1151 }
 0x188   : > { %1245 = vst.msk [vmem:[#allocation4 + $0x28] sm:$0xff] %vm1239_vm8, %v1154_v48  ;;  %1244 = vst.msk [vmem:[#allocation4 + $0x20] sm:$0xff] %vm1239_vm8, %v1152_v28 }
 0x189   : > { %1549 = vrot.lane.b32.xlu1 %v5431_v39, %s5060_s27  ;;  %1547 = vrot.lane.b32.xlu0 %v5435_v41, %s5060_s27 }
 0x18b   : > { %v1158_v7 = vpop.permute.xlu1 %1157  ;;  %v1156_v2 = vpop.permute.xlu0 %1155 }
 0x18c   : > { %1247 = vst.msk [vmem:[#allocation4 + $0x38] sm:$0xff] %vm1239_vm8, %v1158_v7  ;;  %1246 = vst.msk [vmem:[#allocation4 + $0x30] sm:$0xff] %vm1239_vm8, %v1156_v2 }
 0x18d   : > { %1684 = vrot.lane.b32.xlu1 %v5457_v49, %s5061_s8  ;;  %1682 = vrot.lane.b32.xlu0 %v5468_v53, %s5061_s8  ;;  %v8414_v49 = vld [vmem:[#allocation32_spill] sm:$0xff] }
 0x18f   : > { %v1162_v12 = vpop.permute.xlu1 %1161  ;;  %v1160_v4 = vpop.permute.xlu0 %1159 }
 0x190   : > { %1249 = vst.msk [vmem:[#allocation4 + $0x48] sm:$0xff] %vm1239_vm8, %v1162_v12  ;;  %1248 = vst.msk [vmem:[#allocation4 + $0x40] sm:$0xff] %vm1239_vm8, %v1160_v4 }
 0x191   : > { %1420 = vrot.lane.b32.xlu1 %v5803_v54, %s5059_s20  ;;  %1816 = vrot.lane.b32.xlu0 %v5803_v54, %s5062_s12 }
 0x193   : > { %v1166_v39 = vpop.permute.xlu1 %1165  ;;  %v1164_v41 = vpop.permute.xlu0 %1163 }
 0x194   : > { %1251 = vst.msk [vmem:[#allocation4 + $0x58] sm:$0xff] %vm1239_vm8, %v1166_v39  ;;  %1250 = vst.msk [vmem:[#allocation4 + $0x50] sm:$0xff] %vm1239_vm8, %v1164_v41 }
 0x195   : > { %1422 = vrot.lane.b32.xlu1 %v8414_v49, %s5059_s20  ;;  %1818 = vrot.lane.b32.xlu0 %v8414_v49, %s5062_s12 }
 0x197   : > { %v1170_v53 = vpop.permute.xlu1 %1169  ;;  %v1168_v32 = vpop.permute.xlu0 %1167 }
 0x198   : > { %1253 = vst.msk [vmem:[#allocation4 + $0x68] sm:$0xff] %vm1239_vm8, %v1170_v53  ;;  %1252 = vst.msk [vmem:[#allocation4 + $0x60] sm:$0xff] %vm1239_vm8, %v1168_v32 }
 0x199   : > { %1553 = vrot.lane.b32.xlu1 %v5459_v50, %s5060_s27  ;;  %1551 = vrot.lane.b32.xlu0 %v5463_v52, %s5060_s27 }
 0x19b   : > { %v1174_v54 = vpop.permute.xlu1 %1173  ;;  %v1172_v5 = vpop.permute.xlu0 %1171 }
 0x19c   : > { %1255 = vst.msk [vmem:[#allocation4 + $0x78] sm:$0xff] %vm1239_vm8, %v1174_v54  ;;  %1254 = vst.msk [vmem:[#allocation4 + $0x70] sm:$0xff] %vm1239_vm8, %v1172_v5 }
 0x19d   : > { %1688 = vrot.lane.b32.xlu1 %v5482_v59, %s5061_s8  ;;  %1686 = vrot.lane.b32.xlu0 %v5493_v63, %s5061_s8  ;;  %v8415_v59 = vld [vmem:[#allocation33_spill] sm:$0xff] }
 0x19f   : > { %v1178_v26 = vpop.permute.xlu1 %1177  ;;  %v1176_v44 = vpop.permute.xlu0 %1175 }
 0x1a0   : > { %1257 = vst.msk [vmem:[#allocation4 + $0x88] sm:$0xff] %vm1239_vm8, %v1178_v26  ;;  %1256 = vst.msk [vmem:[#allocation4 + $0x80] sm:$0xff] %vm1239_vm8, %v1176_v44 }
 0x1a1   : > { %1424 = vrot.lane.b32.xlu1 %v5814_v30, %s5059_s20  ;;  %1820 = vrot.lane.b32.xlu0 %v5814_v30, %s5062_s12 }
 0x1a3   : > { %v1182_v50 = vpop.permute.xlu1 %1181  ;;  %v1180_v52 = vpop.permute.xlu0 %1179 }
 0x1a4   : > { %1259 = vst.msk [vmem:[#allocation4 + $0x98] sm:$0xff] %vm1239_vm8, %v1182_v50  ;;  %1258 = vst.msk [vmem:[#allocation4 + $0x90] sm:$0xff] %vm1239_vm8, %v1180_v52 }
 0x1a5   : > { %1426 = vrot.lane.b32.xlu1 %v8415_v59, %s5059_s20  ;;  %1822 = vrot.lane.b32.xlu0 %v8415_v59, %s5062_s12 }
 0x1a7   : > { %v1186_v63 = vpop.permute.xlu1 %1185  ;;  %v1184_v22 = vpop.permute.xlu0 %1183 }
 0x1a8   : > { %1261 = vst.msk [vmem:[#allocation4 + $0xa8] sm:$0xff] %vm1239_vm8, %v1186_v63  ;;  %1260 = vst.msk [vmem:[#allocation4 + $0xa0] sm:$0xff] %vm1239_vm8, %v1184_v22 }
 0x1a9   : > { %1557 = vrot.lane.b32.xlu1 %v5484_v60, %s5060_s27  ;;  %1555 = vrot.lane.b32.xlu0 %v5488_v62, %s5060_s27 }
 0x1ab   : > { %v1190_v30 = vpop.permute.xlu1 %1189  ;;  %v1188_v27 = vpop.permute.xlu0 %1187 }
 0x1ac   : > { %1263 = vst.msk [vmem:[#allocation4 + $0xb8] sm:$0xff] %vm1239_vm8, %v1190_v30  ;;  %1262 = vst.msk [vmem:[#allocation4 + $0xb0] sm:$0xff] %vm1239_vm8, %v1188_v27 }
 0x1ad   : > { %1692 = vrot.lane.b32.xlu1 %v8402_v21, %s5061_s8  ;;  %1690 = vrot.lane.b32.xlu0 %v8403_v25, %s5061_s8  ;;  %v8416_v21 = vld [vmem:[#allocation34_spill] sm:$0xff] }
 0x1af   : > { %v1194_v3 = vpop.permute.xlu1 %1193  ;;  %v1192_v45 = vpop.permute.xlu0 %1191 }
 0x1b0   : > { %1265 = vst.msk [vmem:[#allocation4 + $0xc8] sm:$0xff] %vm1239_vm8, %v1194_v3  ;;  %1264 = vst.msk [vmem:[#allocation4 + $0xc0] sm:$0xff] %vm1239_vm8, %v1192_v45 }
 0x1b1   : > { %1428 = vrot.lane.b32.xlu1 %v5829_v0, %s5059_s20  ;;  %1824 = vrot.lane.b32.xlu0 %v5829_v0, %s5062_s12 }
 0x1b3   : > { %v1198_v60 = vpop.permute.xlu1 %1197  ;;  %v1196_v62 = vpop.permute.xlu0 %1195 }
 0x1b4   : > { %1267 = vst.msk [vmem:[#allocation4 + $0xd8] sm:$0xff] %vm1239_vm8, %v1198_v60  ;;  %1266 = vst.msk [vmem:[#allocation4 + $0xd0] sm:$0xff] %vm1239_vm8, %v1196_v62  ;;  %v8423_v62 = vld [vmem:[#allocation19_spill] sm:$0xff] }
 0x1b5   : > { %1430 = vrot.lane.b32.xlu1 %v8416_v21, %s5059_s20  ;;  %1826 = vrot.lane.b32.xlu0 %v8416_v21, %s5062_s12 }
 0x1b7   : > { %v1202_v25 = vpop.permute.xlu1 %1201  ;;  %v1200_v46 = vpop.permute.xlu0 %1199 }
 0x1b8   : > { %1269 = vst.msk [vmem:[#allocation4 + $0xe8] sm:$0xff] %vm1239_vm8, %v1202_v25  ;;  %1268 = vst.msk [vmem:[#allocation4 + $0xe0] sm:$0xff] %vm1239_vm8, %v1200_v46 }
 0x1b9   : > { %1561 = vrot.lane.b32.xlu1 %v5509_v8, %s5060_s27  ;;  %1559 = vrot.lane.b32.xlu0 %v5513_v10, %s5060_s27  ;;  %v8417_v8 = vld [vmem:[#allocation35_spill] sm:$0xff] }
 0x1bb   : > { %v1206_v0 = vpop.permute.xlu1 %1205  ;;  %v1204_v48 = vpop.permute.xlu0 %1203 }
 0x1bc   : > { %1271 = vst.msk [vmem:[#allocation4 + $0xf8] sm:$0xff] %vm1239_vm8, %v1206_v0  ;;  %1270 = vst.msk [vmem:[#allocation4 + $0xf0] sm:$0xff] %vm1239_vm8, %v1204_v48 }
 0x1bd   : > { %1696 = vrot.lane.b32.xlu1 %v8404_v42, %s5061_s8  ;;  %1694 = vrot.lane.b32.xlu0 %v8405_v9, %s5061_s8 }
 0x1bf   : > { %v1281_v28 = vpop.permute.xlu1 %1280  ;;  %v1279_v7 = vpop.permute.xlu0 %1278 }
 0x1c0   : > { %1376 = vst.msk [vmem:[#allocation4 + $0x8] sm:$0xff] %vm1374_vm9, %v1281_v28  ;;  %1375 = vst.msk [vmem:[#allocation4] sm:$0xff] %vm1374_vm9, %v1279_v7 }
 0x1c1   : > { %1830 = vrot.lane.b32.xlu1 %v5837_v40, %s5062_s12  ;;  %1828 = vrot.lane.b32.xlu0 %v8417_v8, %s5062_s12 }
 0x1c3   : > { %v1285_v10 = vpop.permute.xlu1 %1284  ;;  %v1283_v2 = vpop.permute.xlu0 %1282 }
 0x1c4   : > { %1378 = vst.msk [vmem:[#allocation4 + $0x18] sm:$0xff] %vm1374_vm9, %v1285_v10  ;;  %1377 = vst.msk [vmem:[#allocation4 + $0x10] sm:$0xff] %vm1374_vm9, %v1283_v2 }
 0x1c5   : > { %1434 = vrot.lane.b32.xlu1 %v5837_v40, %s5059_s20  ;;  %1432 = vrot.lane.b32.xlu0 %v8417_v8, %s5059_s20 }
 0x1c7   : > { %v1289_v42 = vpop.permute.xlu1 %1288  ;;  %v1287_v9 = vpop.permute.xlu0 %1286 }
 0x1c8   : > { %1380 = vst.msk [vmem:[#allocation4 + $0x28] sm:$0xff] %vm1374_vm9, %v1289_v42  ;;  %1379 = vst.msk [vmem:[#allocation4 + $0x20] sm:$0xff] %vm1374_vm9, %v1287_v9  ;;  %v8425_v9 = vld [vmem:[#allocation20_spill] sm:$0xff] }
 0x1c9   : > { %1565 = vrot.lane.b32.xlu1 %v5534_v17, %s5060_s27  ;;  %1563 = vrot.lane.b32.xlu0 %v5538_v19, %s5060_s27  ;;  %v8418_v17 = vld [vmem:[#allocation36_spill] sm:$0xff] }
 0x1cb   : > { %v1293_v12 = vpop.permute.xlu1 %1292  ;;  %v1291_v4 = vpop.permute.xlu0 %1290 }
 0x1cc   : > { %1382 = vst.msk [vmem:[#allocation4 + $0x38] sm:$0xff] %vm1374_vm9, %v1293_v12  ;;  %1381 = vst.msk [vmem:[#allocation4 + $0x30] sm:$0xff] %vm1374_vm9, %v1291_v4  ;;  %v8426_v12 = vld [vmem:[#allocation21_spill] sm:$0xff] }
 0x1cd   : > { %1700 = vrot.lane.b32.xlu1 %v8406_v34, %s5061_s8  ;;  %1698 = vrot.lane.b32.xlu0 %v8407_v58, %s5061_s8 }
 0x1cf   : > { %v1297_v40 = vpop.permute.xlu1 %1296  ;;  %v1295_v39 = vpop.permute.xlu0 %1294 }
 0x1d0   : > { %1384 = vst.msk [vmem:[#allocation4 + $0x48] sm:$0xff] %vm1374_vm9, %v1297_v40  ;;  %1383 = vst.msk [vmem:[#allocation4 + $0x40] sm:$0xff] %vm1374_vm9, %v1295_v39 }
 0x1d1   : > { %1834 = vrot.lane.b32.xlu1 %v5852_v38, %s5062_s12  ;;  %1832 = vrot.lane.b32.xlu0 %v8418_v17, %s5062_s12 }
 0x1d3   : > { %v1301_v19 = vpop.permute.xlu1 %1300  ;;  %v1299_v41 = vpop.permute.xlu0 %1298 }
 0x1d4   : > { %1386 = vst.msk [vmem:[#allocation4 + $0x58] sm:$0xff] %vm1374_vm9, %v1301_v19  ;;  %1385 = vst.msk [vmem:[#allocation4 + $0x50] sm:$0xff] %vm1374_vm9, %v1299_v41 }
 0x1d5   : > { %1438 = vrot.lane.b32.xlu1 %v5852_v38, %s5059_s20  ;;  %1436 = vrot.lane.b32.xlu0 %v8418_v17, %s5059_s20 }
 0x1d7   : > { %v1305_v34 = vpop.permute.xlu1 %1304  ;;  %v1303_v58 = vpop.permute.xlu0 %1302 }
 0x1d8   : > { %1388 = vst.msk [vmem:[#allocation4 + $0x68] sm:$0xff] %vm1374_vm9, %v1305_v34  ;;  %1387 = vst.msk [vmem:[#allocation4 + $0x60] sm:$0xff] %vm1374_vm9, %v1303_v58 }
 0x1d9   : > { %1569 = vrot.lane.b32.xlu1 %v5559_v35, %s5060_s27  ;;  %1567 = vrot.lane.b32.xlu0 %v5563_v37, %s5060_s27  ;;  %v8419_v35 = vld [vmem:[#allocation37_spill] sm:$0xff] }
 0x1db   : > { %v1309_v49 = vpop.permute.xlu1 %1308  ;;  %v1307_v53 = vpop.permute.xlu0 %1306 }
 0x1dc   : > { %1390 = vst.msk [vmem:[#allocation4 + $0x78] sm:$0xff] %vm1374_vm9, %v1309_v49  ;;  %1389 = vst.msk [vmem:[#allocation4 + $0x70] sm:$0xff] %vm1374_vm9, %v1307_v53 }
 0x1dd   : > { %1704 = vrot.lane.b32.xlu1 %v8408_v23, %s5061_s8  ;;  %1702 = vrot.lane.b32.xlu0 %v8409_v11, %s5061_s8 }
 0x1df   : > { %v1313_v38 = vpop.permute.xlu1 %1312  ;;  %v1311_v32 = vpop.permute.xlu0 %1310 }
 0x1e0   : > { %1392 = vst.msk [vmem:[#allocation4 + $0x88] sm:$0xff] %vm1374_vm9, %v1313_v38  ;;  %1391 = vst.msk [vmem:[#allocation4 + $0x80] sm:$0xff] %vm1374_vm9, %v1311_v32  ;;  %v8428_v38 = vld [vmem:[#allocation22_spill] sm:$0xff]  ;;  %v8429_v32 = vld [vmem:[#allocation25_spill] sm:$0xff] }
 0x1e1   : > { %1838 = vrot.lane.b32.xlu1 %v5863_v61, %s5062_s12  ;;  %1836 = vrot.lane.b32.xlu0 %v8419_v35, %s5062_s12 }
 0x1e3   : > { %v1317_v37 = vpop.permute.xlu1 %1316  ;;  %v1315_v54 = vpop.permute.xlu0 %1314 }
 0x1e4   : > { %1394 = vst.msk [vmem:[#allocation4 + $0x98] sm:$0xff] %vm1374_vm9, %v1317_v37  ;;  %1393 = vst.msk [vmem:[#allocation4 + $0x90] sm:$0xff] %vm1374_vm9, %v1315_v54 }
 0x1e5   : > { %1442 = vrot.lane.b32.xlu1 %v5863_v61, %s5059_s20  ;;  %1440 = vrot.lane.b32.xlu0 %v8419_v35, %s5059_s20 }
 0x1e7   : > { %v1415_v11 = vpop.permute.xlu1 %1414  ;;  %v1413_v23 = vpop.permute.xlu0 %1412 }
 0x1e8   : > { %1510 = vst.msk [vmem:[#allocation4 + $0x8] sm:$0xff] %vm1508_vm10, %v1415_v11  ;;  %1509 = vst.msk [vmem:[#allocation4] sm:$0xff] %vm1508_vm10, %v1413_v23 }
 0x1e9   : > { %1573 = vrot.lane.b32.xlu1 %v5584_v55, %s5060_s27  ;;  %1571 = vrot.lane.b32.xlu0 %v5588_v57, %s5060_s27  ;;  %v8420_v55 = vld [vmem:[#allocation38_spill] sm:$0xff] }
 0x1eb   : > { %v1546_v5 = vpop.permute.xlu1 %1545  ;;  %v1544_v26 = vpop.permute.xlu0 %1543 }
 0x1ec   : > { %1641 = vst.msk [vmem:[#allocation4 + $0x8] sm:$0xff] %vm1639_vm11, %v1546_v5  ;;  %1640 = vst.msk [vmem:[#allocation4] sm:$0xff] %vm1639_vm11, %v1544_v26 }
 0x1ed   : > { %1708 = vrot.lane.b32.xlu1 %v8410_v36, %s5061_s8  ;;  %1706 = vrot.lane.b32.xlu0 %v8411_v20, %s5061_s8 }
 0x1ef   : > { %v1681_v61 = vpop.permute.xlu1 %1680  ;;  %v1679_v44 = vpop.permute.xlu0 %1678 }
 0x1f0   : > { %1776 = vst.msk [vmem:[#allocation4 + $0x8] sm:$0xff] %vm1774_vm12, %v1681_v61  ;;  %1775 = vst.msk [vmem:[#allocation4] sm:$0xff] %vm1774_vm12, %v1679_v44 }
 0x1f1   : > { %1842 = vrot.lane.b32.xlu1 %v5878_v16, %s5062_s12  ;;  %1840 = vrot.lane.b32.xlu0 %v8420_v55, %s5062_s12 }
 0x1f3   : > { %v1417_v57 = vpop.permute.xlu1 %1416  ;;  %v1813_v50 = vpop.permute.xlu0 %1812 }
 0x1f4   : > { %1511 = vst.msk [vmem:[#allocation4 + $0x10] sm:$0xff] %vm1508_vm10, %v1417_v57  ;;  %v8432_v57 = vld [vmem:[#allocation24_spill] sm:$0xff] }
 0x1f5   : > { %1909 = vst.msk [vmem:[#allocation4] sm:$0xff] %vm1908_vm13, %v1813_v50  ;;  %1446 = vrot.lane.b32.xlu1 %v5878_v16, %s5059_s20  ;;  %1444 = vrot.lane.b32.xlu0 %v8420_v55, %s5059_s20  ;;  %v8431_v55 = vld [vmem:[#allocation23_spill] sm:$0xff] }
 0x1f7   : > { %v1419_v20 = vpop.permute.xlu1 %1418  ;;  %v1815_v36 = vpop.permute.xlu0 %1814 }
 0x1f8   : > { %1512 = vst.msk [vmem:[#allocation4 + $0x18] sm:$0xff] %vm1508_vm10, %v1419_v20 }
 0x1f9   : > { %1910 = vst.msk [vmem:[#allocation4 + $0x8] sm:$0xff] %vm1908_vm13, %v1815_v36  ;;  %1577 = vrot.lane.b32.xlu1 %v5609_v13, %s5060_s27  ;;  %1575 = vrot.lane.b32.xlu0 %v5613_v14, %s5060_s27  ;;  %v8421_v14 = vld [vmem:[#allocation39_spill] sm:$0xff]  ;;  %v8434_v36 = vld [vmem:[#allocation29_spill] sm:$0xff] }
 0x1fb   : > { %v1550_v52 = vpop.permute.xlu1 %1549  ;;  %v1548_v59 = vpop.permute.xlu0 %1547 }
 0x1fc   : > { %v1941_v63 = vld [vmem:[#allocation4] sm:$0xff]  ;;  %1643 = vst.msk [vmem:[#allocation4 + $0x18] sm:$0xff] %vm1639_vm11, %v1550_v52  ;;  %1642 = vst.msk [vmem:[#allocation4 + $0x10] sm:$0xff] %vm1639_vm11, %v1548_v59 }
 0x1fd   : > { %4812 = vmatprep.mubr.msk.f32.mxu0 %vm1989_vm14, %v1941_v63  ;;  %1712 = vrot.lane.b32.xlu1 %v8412_v1, %s5061_s8 }
 0x1fe   : > { %1710 = vrot.lane.b32.xlu0 %v8413_v33, %s5061_s8 }
 0x1ff   : > { %v1685_v13 = vpop.permute.xlu1 %1684  ;;  %v1683_v16 = vpop.permute.xlu0 %1682 }
 0x200   : > { %v1942_v22 = vld [vmem:[#allocation4 + $0x8] sm:$0xff]  ;;  %1778 = vst.msk [vmem:[#allocation4 + $0x18] sm:$0xff] %vm1774_vm12, %v1685_v13  ;;  %1777 = vst.msk [vmem:[#allocation4 + $0x10] sm:$0xff] %vm1774_vm12, %v1683_v16 }
 0x201   : > { %4813 = vmatmul.mubr.msk.f32.vlgmr.msra.gmra.mrb[0].mxu0 %vm1989_vm14, %v1942_v22  ;;  %1846 = vrot.lane.b32.xlu1 %v5889_v18, %s5062_s12  ;;  %v8435_v16 = vld [vmem:[#allocation43_spill] sm:$0xff]  ;;  %v8436_v22 = vld [vmem:[#allocation44_spill] sm:$0xff] }
 0x202   : > { %1844 = vrot.lane.b32.xlu0 %v8421_v14, %s5062_s12 }
 0x203   : > { %v1421_v30 = vpop.permute.xlu1 %1420  ;;  %v1817_v1 = vpop.permute.xlu0 %1816 }
 0x204   : > { %1513 = vst.msk [vmem:[#allocation4 + $0x20] sm:$0xff] %vm1508_vm10, %v1421_v30 }
 0x205   : > { %1911 = vst.msk [vmem:[#allocation4 + $0x10] sm:$0xff] %vm1908_vm13, %v1817_v1  ;;  %1450 = vrot.lane.b32.xlu1 %v5889_v18, %s5059_s20  ;;  %v8422_v18 = vld [vmem:[#allocation18_spill] sm:$0xff] }
 0x206   : > { %1448 = vrot.lane.b32.xlu0 %v8421_v14, %s5059_s20 }
 0x207   : > { %v1423_v33 = vpop.permute.xlu1 %1422  ;;  %v1819_v27 = vpop.permute.xlu0 %1818 }
 0x208   : > { %1514 = vst.msk [vmem:[#allocation4 + $0x28] sm:$0xff] %vm1508_vm10, %v1423_v33 }
 0x209   : > { %1912 = vst.msk [vmem:[#allocation4 + $0x18] sm:$0xff] %vm1908_vm13, %v1819_v27  ;;  %1581 = vrot.lane.b32.xlu1 %v5634_v43, %s5060_s27 }
 0x20a   : > { %1579 = vrot.lane.b32.xlu0 %v5638_v47, %s5060_s27  ;;  %v8424_v47 = vld [vmem:[#allocation40_spill] sm:$0xff] }
 0x20b   : > { %v1554_v3 = vpop.permute.xlu1 %1553  ;;  %v1552_v45 = vpop.permute.xlu0 %1551 }
 0x20c   : > { %v1943_v60 = vld [vmem:[#allocation4 + $0x10] sm:$0xff]  ;;  %1645 = vst.msk [vmem:[#allocation4 + $0x28] sm:$0xff] %vm1639_vm11, %v1554_v3  ;;  %1644 = vst.msk [vmem:[#allocation4 + $0x20] sm:$0xff] %vm1639_vm11, %v1552_v45  ;;  %v8437_v45 = vmov 0.0  }
 0x20d   : > { %4815 = vmatprep.mubr.msk.f32.mxu0 %vm1989_vm14, %v1943_v60  ;;  %1716 = vrot.lane.b32.xlu1 %v8422_v18, %s5061_s8  ;;  %2413 = vst.msk [vmem:[#allocation3 + $0x20] sm:$0xff] %vm2407_vm15, %v8437_v45  ;;  %2408 = vst.msk [vmem:[#allocation3] sm:$0xff] %vm2407_vm15, %v8437_v45  ;;  %v8438_v60 = vld [vmem:[#allocation27_spill] sm:$0xff] }
 0x20e   : > { %1714 = vrot.lane.b32.xlu0 %v8423_v62, %s5061_s8  ;;  %2414 = vst.msk [vmem:[#allocation3 + $0x28] sm:$0x3] %vm2410_vm0, %v8437_v45  ;;  %2411 = vst.msk [vmem:[#allocation3 + $0x10] sm:$0x3] %vm2410_vm0, %v8437_v45 }
 0x20f   : > { %v1689_v21 = vpop.permute.xlu1 %1688  ;;  %v1687_v43 = vpop.permute.xlu0 %1686  ;;  %2409 = vst.msk [vmem:[#allocation3 + $0x8] sm:$0xff] %vm2407_vm15, %v8437_v45  ;;  %2412 = vst.msk [vmem:[#allocation3 + $0x18] sm:$0xff] %vm2407_vm15, %v8437_v45 }
 0x210   : > { %v1944_v25 = vld [vmem:[#allocation4 + $0x18] sm:$0xff]  ;;  %1780 = vst.msk [vmem:[#allocation4 + $0x28] sm:$0xff] %vm1774_vm12, %v1689_v21  ;;  %1779 = vst.msk [vmem:[#allocation4 + $0x20] sm:$0xff] %vm1774_vm12, %v1687_v43 }
 0x211   : > { %4816 = vmatmul.mubr.msk.f32.gmra.mrb[2].mxu0 %vm1989_vm14, %v1944_v25  ;;  %1850 = vrot.lane.b32.xlu1 %v5904_v31, %s5062_s12  ;;  %2415 = vst.msk [vmem:[#allocation3 + $0x30] sm:$0xff] %vm2407_vm15, %v8437_v45  ;;  %2416 = vst.msk [vmem:[#allocation3 + $0x38] sm:$0xff] %vm2407_vm15, %v8437_v45 }
 0x212   : > { %1848 = vrot.lane.b32.xlu0 %v8424_v47, %s5062_s12  ;;  %2417 = vst.msk [vmem:[#allocation3 + $0x40] sm:$0x3] %vm2410_vm0, %v8437_v45  ;;  %2420 = vst.msk [vmem:[#allocation3 + $0x58] sm:$0x3] %vm2410_vm0, %v8437_v45 }
 0x213   : > { %v1425_v46 = vpop.permute.xlu1 %1424  ;;  %v1821_v0 = vpop.permute.xlu0 %1820  ;;  %2418 = vst.msk [vmem:[#allocation3 + $0x48] sm:$0xff] %vm2407_vm15, %v8437_v45  ;;  %2419 = vst.msk [vmem:[#allocation3 + $0x50] sm:$0xff] %vm2407_vm15, %v8437_v45 }
 0x214   : > { %1515 = vst.msk [vmem:[#allocation4 + $0x30] sm:$0xff] %vm1508_vm10, %v1425_v46  ;;  %v8441_v46 = vld [vmem:[#allocation31_spill] sm:$0xff] }
 0x215   : > { %1913 = vst.msk [vmem:[#allocation4 + $0x20] sm:$0xff] %vm1908_vm13, %v1821_v0  ;;  %1320 = vrot.lane.b32.xlu1 %v8422_v18, %s5058_s11  ;;  %v8439_v18 = vld [vmem:[#allocation28_spill] sm:$0xff] }
 0x216   : > { %1318 = vrot.lane.b32.xlu0 %v8423_v62, %s5058_s11  ;;  %2421 = vst.msk [vmem:[#allocation3 + $0x60] sm:$0xff] %vm2407_vm15, %v8437_v45  ;;  %2422 = vst.msk [vmem:[#allocation3 + $0x68] sm:$0xff] %vm2407_vm15, %v8437_v45 }
 0x217   : > { %v1427_v48 = vpop.permute.xlu1 %1426  ;;  %v1823_v28 = vpop.permute.xlu0 %1822  ;;  %2423 = vst.msk [vmem:[#allocation3 + $0x70] sm:$0x3] %vm2410_vm0, %v8437_v45  ;;  %2426 = vst.msk [vmem:[#allocation3 + $0x88] sm:$0x3] %vm2410_vm0, %v8437_v45 }
 0x218   : > { %1516 = vst.msk [vmem:[#allocation4 + $0x38] sm:$0xff] %vm1508_vm10, %v1427_v48 }
 0x219   : > { %1914 = vst.msk [vmem:[#allocation4 + $0x28] sm:$0xff] %vm1908_vm13, %v1823_v28  ;;  %1454 = vrot.lane.b32.xlu1 %v5904_v31, %s5059_s20  ;;  %v6622_v28 = vld [vmem:[#allocation3 + $0x8] sm:$0xff] }
 0x21a   : > { %1452 = vrot.lane.b32.xlu0 %v8424_v47, %s5059_s20  ;;  %2424 = vst.msk [vmem:[#allocation3 + $0x78] sm:$0xff] %vm2407_vm15, %v8437_v45  ;;  %2425 = vst.msk [vmem:[#allocation3 + $0x80] sm:$0xff] %vm2407_vm15, %v8437_v45  ;;  %v8440_v47 = vld [vmem:[#allocation30_spill] sm:$0xff] }
 0x21b   : > { %v1558_v7 = vpop.permute.xlu1 %1557  ;;  %v1556_v8 = vpop.permute.xlu0 %1555  ;;  %2427 = vst.msk [vmem:[#allocation3 + $0x90] sm:$0xff] %vm2407_vm15, %v8437_v45  ;;  %2428 = vst.msk [vmem:[#allocation3 + $0x98] sm:$0xff] %vm2407_vm15, %v8437_v45 }
 0x21c   : > { %v1945_v10 = vld [vmem:[#allocation4 + $0x20] sm:$0xff]  ;;  %1647 = vst.msk [vmem:[#allocation4 + $0x38] sm:$0xff] %vm1639_vm11, %v1558_v7  ;;  %1646 = vst.msk [vmem:[#allocation4 + $0x30] sm:$0xff] %vm1639_vm11, %v1556_v8  ;;  %v6624_v7 = vld [vmem:[#allocation3] sm:$0xff] }
 0x21d   : > { %4818 = vmatprep.mubr.msk.f32.mxu0 %vm1989_vm14, %v1945_v10  ;;  %1585 = vrot.lane.b32.xlu1 %v5659_v24, %s5060_s27  ;;  %2429 = vst.msk [vmem:[#allocation3 + $0xa0] sm:$0x3] %vm2410_vm0, %v8437_v45  ;;  %2432 = vst.msk [vmem:[#allocation3 + $0xb8] sm:$0x3] %vm2410_vm0, %v8437_v45  ;;  %v8442_v8 = vld [vmem:[#allocation45_spill] sm:$0xff]  ;;  %v8443_v10 = vld [vmem:[#allocation46_spill] sm:$0xff] }
 0x21e   : > { %1583 = vrot.lane.b32.xlu0 %v5663_v29, %s5060_s27  ;;  %v8427_v29 = vld [vmem:[#allocation41_spill] sm:$0xff]  ;;  %2430 = vst.msk [vmem:[#allocation3 + $0xa8] sm:$0xff] %vm2407_vm15, %v8437_v45  ;;  %2431 = vst.msk [vmem:[#allocation3 + $0xb0] sm:$0xff] %vm2407_vm15, %v8437_v45 }
 0x21f   : > { %v1693_v2 = vpop.permute.xlu1 %1692  ;;  %v1691_v31 = vpop.permute.xlu0 %1690  ;;  %2433 = vst.msk [vmem:[#allocation3 + $0xc0] sm:$0xff] %vm2407_vm15, %v8437_v45  ;;  %2434 = vst.msk [vmem:[#allocation3 + $0xc8] sm:$0xff] %vm2407_vm15, %v8437_v45 }
 0x220   : > { %v1946_v42 = vld [vmem:[#allocation4 + $0x28] sm:$0xff]  ;;  %1782 = vst.msk [vmem:[#allocation4 + $0x38] sm:$0xff] %vm1774_vm12, %v1693_v2  ;;  %1781 = vst.msk [vmem:[#allocation4 + $0x30] sm:$0xff] %vm1774_vm12, %v1691_v31 }
 0x221   : > { %4819 = vmatmul.mubr.msk.f32.gmra.mrb[4].mxu0 %vm1989_vm14, %v1946_v42  ;;  %1720 = vrot.lane.b32.xlu1 %v8425_v9, %s5061_s8  ;;  %2435 = vst.msk [vmem:[#allocation3 + $0xd0] sm:$0x3] %vm2410_vm0, %v8437_v45  ;;  %2438 = vst.msk [vmem:[#allocation3 + $0xe8] sm:$0x3] %vm2410_vm0, %v8437_v45 }
 0x222   : > { %1718 = vrot.lane.b32.xlu0 %v8426_v12, %s5061_s8  ;;  %2436 = vst.msk [vmem:[#allocation3 + $0xd8] sm:$0xff] %vm2407_vm15, %v8437_v45  ;;  %2437 = vst.msk [vmem:[#allocation3 + $0xe0] sm:$0xff] %vm2407_vm15, %v8437_v45 }
 0x223   : > { %v1429_v4 = vpop.permute.xlu1 %1428  ;;  %v1825_v24 = vpop.permute.xlu0 %1824  ;;  %2439 = vst.msk [vmem:[#allocation3 + $0xf0] sm:$0xff] %vm2407_vm15, %v8437_v45  ;;  %2440 = vst.msk [vmem:[#allocation3 + $0xf8] sm:$0xff] %vm2407_vm15, %v8437_v45 }
 0x224   : > { %1517 = vst.msk [vmem:[#allocation4 + $0x40] sm:$0xff] %vm1508_vm10, %v1429_v4 }
 0x225   : > { %1915 = vst.msk [vmem:[#allocation4 + $0x30] sm:$0xff] %vm1908_vm13, %v1825_v24  ;;  %1854 = vrot.lane.b32.xlu1 %v5915_v56, %s5062_s12 }
 0x226   : > { %1852 = vrot.lane.b32.xlu0 %v8427_v29, %s5062_s12  ;;  %2441 = vst.msk [vmem:[#allocation3 + $0x100] sm:$0x3] %vm2410_vm0, %v8437_v45  ;;  %2444 = vst.msk [vmem:[#allocation3 + $0x118] sm:$0x3] %vm2410_vm0, %v8437_v45 }
 0x227   : > { %v1431_v40 = vpop.permute.xlu1 %1430  ;;  %v1827_v39 = vpop.permute.xlu0 %1826  ;;  %2442 = vst.msk [vmem:[#allocation3 + $0x108] sm:$0xff] %vm2407_vm15, %v8437_v45  ;;  %2443 = vst.msk [vmem:[#allocation3 + $0x110] sm:$0xff] %vm2407_vm15, %v8437_v45 }
 0x228   : > { %1518 = vst.msk [vmem:[#allocation4 + $0x48] sm:$0xff] %vm1508_vm10, %v1431_v40 }
 0x229   : > { %1916 = vst.msk [vmem:[#allocation4 + $0x38] sm:$0xff] %vm1908_vm13, %v1827_v39  ;;  %1324 = vrot.lane.b32.xlu1 %v8425_v9, %s5058_s11  ;;  %v5040_v39 = vld [vmem:[#allocation2 + $0x188] sm:$0xff] }
 0x22a   : > { %1322 = vrot.lane.b32.xlu0 %v8426_v12, %s5058_s11  ;;  %2445 = vst.msk [vmem:[#allocation3 + $0x120] sm:$0xff] %vm2407_vm15, %v8437_v45  ;;  %2446 = vst.msk [vmem:[#allocation3 + $0x128] sm:$0xff] %vm2407_vm15, %v8437_v45  ;;  %v637_v12 = vld [vmem:[#allocation2 + $0x190] sm:$0x3] }
 0x22b   : > { %v1562_v17 = vpop.permute.xlu1 %1561  ;;  %v1560_v19 = vpop.permute.xlu0 %1559  ;;  %2447 = vst.msk [vmem:[#allocation3 + $0x130] sm:$0x3] %vm2410_vm0, %v8437_v45  ;;  %2450 = vst.msk [vmem:[#allocation3 + $0x148] sm:$0x3] %vm2410_vm0, %v8437_v45 }
 0x22c   : > { %v1947_v41 = vld [vmem:[#allocation4 + $0x30] sm:$0xff]  ;;  %1649 = vst.msk [vmem:[#allocation4 + $0x48] sm:$0xff] %vm1639_vm11, %v1562_v17  ;;  %1648 = vst.msk [vmem:[#allocation4 + $0x40] sm:$0xff] %vm1639_vm11, %v1560_v19  ;;  %v1274_v17 = vrot.slane %v5040_v39, 1  ;;  %v5041_v19 = vld [vmem:[#allocation2 + $0x180] sm:$0xff] }
 0x22d   : > { %4821 = vmatprep.mubr.msk.f32.mxu0 %vm1989_vm14, %v1947_v41  ;;  %1458 = vrot.lane.b32.xlu1 %v5915_v56, %s5059_s20  ;;  %2448 = vst.msk [vmem:[#allocation3 + $0x138] sm:$0xff] %vm2407_vm15, %v8437_v45  ;;  %2449 = vst.msk [vmem:[#allocation3 + $0x140] sm:$0xff] %vm2407_vm15, %v8437_v45  ;;  %v1273_v41 = vrot.slane %v5041_v19, 1 }
 0x22e   : > { %1456 = vrot.lane.b32.xlu0 %v8427_v29, %s5059_s20  ;;  %2451 = vst.msk [vmem:[#allocation3 + $0x150] sm:$0xff] %vm2407_vm15, %v8437_v45  ;;  %2452 = vst.msk [vmem:[#allocation3 + $0x158] sm:$0xff] %vm2407_vm15, %v8437_v45 }
 0x22f   : > { %v1697_v34 = vpop.permute.xlu1 %1696  ;;  %v1695_v58 = vpop.permute.xlu0 %1694  ;;  %2453 = vst.msk [vmem:[#allocation3 + $0x160] sm:$0x3] %vm2410_vm0, %v8437_v45  ;;  %2456 = vst.msk [vmem:[#allocation3 + $0x178] sm:$0x3] %vm2410_vm0, %v8437_v45 }
 0x230   : > { %v1948_v49 = vld [vmem:[#allocation4 + $0x38] sm:$0xff]  ;;  %1784 = vst.msk [vmem:[#allocation4 + $0x48] sm:$0xff] %vm1774_vm12, %v1697_v34  ;;  %1783 = vst.msk [vmem:[#allocation4 + $0x40] sm:$0xff] %vm1774_vm12, %v1695_v58  ;;  %v1276_v34 = vrot.slane %v637_v12, 1  ;;  %v1408_v58 = vrot.slane %v5040_v39, 2 }
 0x231   : > { %4822 = vmatmul.mubr.msk.f32.gmra.mrb[6].mxu0 %vm1989_vm14, %v1948_v49  ;;  %1589 = vrot.lane.b32.xlu1 %v5684_v6, %s5060_s27  ;;  %2454 = vst.msk [vmem:[#allocation3 + $0x168] sm:$0xff] %vm2407_vm15, %v8437_v45  ;;  %2455 = vst.msk [vmem:[#allocation3 + $0x170] sm:$0xff] %vm2407_vm15, %v8437_v45 }
 0x232   : > { %1587 = vrot.lane.b32.xlu0 %v5688_v15, %s5060_s27  ;;  %v8430_v15 = vld [vmem:[#allocation42_spill] sm:$0xff]  ;;  %2457 = vst.msk [vmem:[#allocation3 + $0x180] sm:$0xff] %vm2407_vm15, %v8437_v45  ;;  %2458 = vst.msk [vmem:[#allocation3 + $0x188] sm:$0xff] %vm2407_vm15, %v8437_v45 }
 0x233   : > { %v1831_v53 = vpop.permute.xlu1 %1830  ;;  %v1829_v56 = vpop.permute.xlu0 %1828  ;;  %2459 = vst.msk [vmem:[#allocation3 + $0x190] sm:$0x3] %vm2410_vm0, %v8437_v45  ;;  %2462 = vst.msk [vmem:[#allocation3 + $0x1a8] sm:$0x3] %vm2410_vm0, %v8437_v45 }
 0x234   : > { %1918 = vst.msk [vmem:[#allocation4 + $0x48] sm:$0xff] %vm1908_vm13, %v1831_v53  ;;  %1917 = vst.msk [vmem:[#allocation4 + $0x40] sm:$0xff] %vm1908_vm13, %v1829_v56  ;;  %v1407_v56 = vrot.slane %v5041_v19, 2 }
 0x235   : > { %1724 = vrot.lane.b32.xlu1 %v8428_v38, %s5061_s8  ;;  %2460 = vst.msk [vmem:[#allocation3 + $0x198] sm:$0xff] %vm2407_vm15, %v8437_v45  ;;  %2461 = vst.msk [vmem:[#allocation3 + $0x1a0] sm:$0xff] %vm2407_vm15, %v8437_v45  ;;  %v2631_v45 = vrot.slane %v6622_v28, 1 }
 0x236   : > { %1722 = vrot.lane.b32.xlu0 %v8429_v32, %s5061_s8  ;;  %2551 = vst.msk [vmem:[#allocation5 + $0x18] sm:$0xff] %vm2407_vm15, %v6622_v28  ;;  %2550 = vst.msk [vmem:[#allocation5] sm:$0xff] %vm2407_vm15, %v6624_v7 }
 0x237   : > { %v1435_v35 = vpop.permute.xlu1 %1434  ;;  %v1433_v37 = vpop.permute.xlu0 %1432 }
 0x238   : > { %1520 = vst.msk [vmem:[#allocation4 + $0x58] sm:$0xff] %vm1508_vm10, %v1435_v35  ;;  %1519 = vst.msk [vmem:[#allocation4 + $0x50] sm:$0xff] %vm1508_vm10, %v1433_v37  ;;  %v1410_v35 = vrot.slane %v637_v12, 2 }
 0x239   : > { %1858 = vrot.lane.b32.xlu1 %v5930_v51, %s5062_s12 }
 0x23a   : > { %1856 = vrot.lane.b32.xlu0 %v8430_v15, %s5062_s12 }
 0x23b   : > { %v1566_v6 = vpop.permute.xlu1 %1565  ;;  %v1564_v54 = vpop.permute.xlu0 %1563  ;;  %v1949_v11 = vld [vmem:[#allocation4 + $0x40] sm:$0xff]  ;;  %v1950_v23 = vld [vmem:[#allocation4 + $0x48] sm:$0xff] }
 0x23c   : > { %1651 = vst.msk [vmem:[#allocation4 + $0x58] sm:$0xff] %vm1639_vm11, %v1566_v6  ;;  %1650 = vst.msk [vmem:[#allocation4 + $0x50] sm:$0xff] %vm1639_vm11, %v1564_v54  ;;  %4824 = vmatprep.mubr.msk.f32.mxu0 %vm1989_vm14, %v1949_v11  ;;  %v1411_v6 = vsel %vm931_vm4, %v1408_v58, %v1410_v35  ;;  %v1409_v54 = vsel %vm931_vm4, %v1407_v56, %v1408_v58 }
 0x23d   : > { %1328 = vrot.lane.b32.xlu1 %v8428_v38, %s5058_s11  ;;  %4825 = vmatmul.mubr.msk.f32.gmra.mrb[8].mxu0 %vm1989_vm14, %v1950_v23  ;;  %v1277_v38 = vsel %vm721_vm3, %v1274_v17, %v1276_v34 }
 0x23e   : > { %1326 = vrot.lane.b32.xlu0 %v8429_v32, %s5058_s11  ;;  %v1275_v32 = vsel %vm721_vm3, %v1273_v41, %v1274_v17 }
 0x23f   : > { %v1701_v5 = vpop.permute.xlu1 %1700  ;;  %v1699_v26 = vpop.permute.xlu0 %1698 }
 0x240   : > { %1786 = vst.msk [vmem:[#allocation4 + $0x58] sm:$0xff] %vm1774_vm12, %v1701_v5  ;;  %1785 = vst.msk [vmem:[#allocation4 + $0x50] sm:$0xff] %vm1774_vm12, %v1699_v26  ;;  %v639_v5 = vld [vmem:[#allocation2 + $0x1a0] sm:$0xff]  ;;  %v638_v26 = vld [vmem:[#allocation2 + $0x198] sm:$0xff] }
 0x241   : > { %1462 = vrot.lane.b32.xlu1 %v5930_v51, %s5059_s20  ;;  %v8433_v51 = vld [vmem:[#allocation26_spill] sm:$0xff] }
 0x242   : > { %1460 = vrot.lane.b32.xlu0 %v8430_v15, %s5059_s20 }
 0x243   : > { %v1835_v61 = vpop.permute.xlu1 %1834  ;;  %v1833_v44 = vpop.permute.xlu0 %1832 }
 0x244   : > { %1920 = vst.msk [vmem:[#allocation4 + $0x58] sm:$0xff] %vm1908_vm13, %v1835_v61  ;;  %1919 = vst.msk [vmem:[#allocation4 + $0x50] sm:$0xff] %vm1908_vm13, %v1833_v44 }
 0x245   : > { %1593 = vrot.lane.b32.xlu1 %v8431_v55, %s5060_s27 }
 0x246   : > { %1591 = vrot.lane.b32.xlu0 %v8432_v57, %s5060_s27 }
 0x247   : > { %v1439_v50 = vpop.permute.xlu1 %1438  ;;  %v1437_v20 = vpop.permute.xlu0 %1436 }
 0x248   : > { %1522 = vst.msk [vmem:[#allocation4 + $0x68] sm:$0xff] %vm1508_vm10, %v1439_v50  ;;  %1521 = vst.msk [vmem:[#allocation4 + $0x60] sm:$0xff] %vm1508_vm10, %v1437_v20  ;;  %v640_v50 = vld [vmem:[#allocation2 + $0x1a8] sm:$0x3]  ;;  %v1674_v20 = vrot.slane %v639_v5, 1 }
 0x249   : > { %1728 = vrot.lane.b32.xlu1 %v8433_v51, %s5061_s8 }
 0x24a   : > { %1726 = vrot.lane.b32.xlu0 %v8434_v36, %s5061_s8 }
 0x24b   : > { %v1570_v52 = vpop.permute.xlu1 %1569  ;;  %v1568_v59 = vpop.permute.xlu0 %1567  ;;  %v1951_v63 = vld [vmem:[#allocation4 + $0x50] sm:$0xff]  ;;  %v1952_v13 = vld [vmem:[#allocation4 + $0x58] sm:$0xff] }
 0x24c   : > { %1653 = vst.msk [vmem:[#allocation4 + $0x68] sm:$0xff] %vm1639_vm11, %v1570_v52  ;;  %1652 = vst.msk [vmem:[#allocation4 + $0x60] sm:$0xff] %vm1639_vm11, %v1568_v59  ;;  %4827 = vmatprep.mubr.msk.f32.mxu0 %vm1989_vm14, %v1951_v63  ;;  %v1808_v63 = vrot.slane %v639_v5, 2 }
 0x24d   : > { %1862 = vrot.lane.b32.xlu1 %v8435_v16, %s5062_s12  ;;  %4828 = vmatmul.mubr.msk.f32.gmra.mrb[10].mxu0 %vm1989_vm14, %v1952_v13  ;;  %v1807_v13 = vrot.slane %v638_v26, 2 }
 0x24e   : > { %1860 = vrot.lane.b32.xlu0 %v8436_v22, %s5062_s12 }
 0x24f   : > { %v1705_v14 = vpop.permute.xlu1 %1704  ;;  %v1703_v30 = vpop.permute.xlu0 %1702 }
 0x250   : > { %1788 = vst.msk [vmem:[#allocation4 + $0x68] sm:$0xff] %vm1774_vm12, %v1705_v14  ;;  %1787 = vst.msk [vmem:[#allocation4 + $0x60] sm:$0xff] %vm1774_vm12, %v1703_v30  ;;  %v1810_v14 = vrot.slane %v640_v50, 2 }
 0x251   : > { %1332 = vrot.lane.b32.xlu1 %v8433_v51, %s5058_s11  ;;  %v1673_v51 = vrot.slane %v638_v26, 1 }
 0x252   : > { %1330 = vrot.lane.b32.xlu0 %v8434_v36, %s5058_s11  ;;  %v1676_v36 = vrot.slane %v640_v50, 1 }
 0x253   : > { %v1839_v1 = vpop.permute.xlu1 %1838  ;;  %v1837_v33 = vpop.permute.xlu0 %1836 }
 0x254   : > { %1922 = vst.msk [vmem:[#allocation4 + $0x68] sm:$0xff] %vm1908_vm13, %v1839_v1  ;;  %1921 = vst.msk [vmem:[#allocation4 + $0x60] sm:$0xff] %vm1908_vm13, %v1837_v33  ;;  %v2498_v33 = vld [vmem:[#allocation3 + $0x10] sm:$0x3] }
 0x255   : > { %1466 = vrot.lane.b32.xlu1 %v8435_v16, %s5059_s20  ;;  %v1677_v16 = vsel %vm721_vm3, %v1674_v20, %v1676_v36 }
 0x256   : > { %1464 = vrot.lane.b32.xlu0 %v8436_v22, %s5059_s20  ;;  %v1675_v22 = vsel %vm721_vm3, %v1673_v51, %v1674_v20 }
 0x257   : > { %v1443_v27 = vpop.permute.xlu1 %1442  ;;  %v1441_v3 = vpop.permute.xlu0 %1440 }
 0x258   : > { %1524 = vst.msk [vmem:[#allocation4 + $0x78] sm:$0xff] %vm1508_vm10, %v1443_v27  ;;  %1523 = vst.msk [vmem:[#allocation4 + $0x70] sm:$0xff] %vm1508_vm10, %v1441_v3  ;;  %v1811_v27 = vsel %vm931_vm4, %v1808_v63, %v1810_v14  ;;  %v1809_v3 = vsel %vm931_vm4, %v1807_v13, %v1808_v63 }
 0x259   : > { %1597 = vrot.lane.b32.xlu1 %v8438_v60, %s5060_s27  ;;  %v2633_v60 = vrot.slane %v2498_v33, 1 }
 0x25a   : > { %1595 = vrot.lane.b32.xlu0 %v8439_v18, %s5060_s27 }
 0x25b   : > { %v1574_v62 = vpop.permute.xlu1 %1573  ;;  %v1572_v21 = vpop.permute.xlu0 %1571  ;;  %v1953_v43 = vld [vmem:[#allocation4 + $0x60] sm:$0xff]  ;;  %v1954_v25 = vld [vmem:[#allocation4 + $0x68] sm:$0xff] }
 0x25c   : > { %1655 = vst.msk [vmem:[#allocation4 + $0x78] sm:$0xff] %vm1639_vm11, %v1574_v62  ;;  %1654 = vst.msk [vmem:[#allocation4 + $0x70] sm:$0xff] %vm1639_vm11, %v1572_v21  ;;  %4830 = vmatprep.mubr.msk.f32.mxu0 %vm1989_vm14, %v1953_v43  ;;  %v2630_v21 = vrot.slane %v6624_v7, 1  ;;  %v2634_v43 = vsel %vm721_vm3, %v2631_v45, %v2633_v60 }
 0x25d   : > { %1732 = vrot.lane.b32.xlu1 %v8440_v47, %s5061_s8  ;;  %4831 = vmatmul.mubr.msk.f32.gmra.mrb[12].mxu0 %vm1989_vm14, %v1954_v25 }
 0x25e   : > { %1730 = vrot.lane.b32.xlu0 %v8441_v46, %s5061_s8 }
 0x25f   : > { %v1709_v0 = vpop.permute.xlu1 %1708  ;;  %v1707_v48 = vpop.permute.xlu0 %1706 }
 0x260   : > { %1790 = vst.msk [vmem:[#allocation4 + $0x78] sm:$0xff] %vm1774_vm12, %v1709_v0  ;;  %1789 = vst.msk [vmem:[#allocation4 + $0x70] sm:$0xff] %vm1774_vm12, %v1707_v48  ;;  %v2632_v48 = vsel %vm721_vm3, %v2630_v21, %v2631_v45 }
 0x261   : > { %1866 = vrot.lane.b32.xlu1 %v8442_v8, %s5062_s12 }
 0x262   : > { %1864 = vrot.lane.b32.xlu0 %v8443_v10, %s5062_s12 }
 0x263   : > { %v1843_v2 = vpop.permute.xlu1 %1842  ;;  %v1841_v31 = vpop.permute.xlu0 %1840 }
 0x264   : > { %1924 = vst.msk [vmem:[#allocation4 + $0x78] sm:$0xff] %vm1908_vm13, %v1843_v2  ;;  %1923 = vst.msk [vmem:[#allocation4 + $0x70] sm:$0xff] %vm1908_vm13, %v1841_v31 }
 0x265   : > { %1336 = vrot.lane.b32.xlu1 %v8440_v47, %s5058_s11 }
 0x266   : > { %1334 = vrot.lane.b32.xlu0 %v8441_v46, %s5058_s11 }
 0x267   : > { %v1447_v42 = vpop.permute.xlu1 %1446  ;;  %v1445_v9 = vpop.permute.xlu0 %1444 }
 0x268   : > { %1526 = vst.msk [vmem:[#allocation4 + $0x88] sm:$0xff] %vm1508_vm10, %v1447_v42  ;;  %1525 = vst.msk [vmem:[#allocation4 + $0x80] sm:$0xff] %vm1508_vm10, %v1445_v9 }
 0x269   : > { %1470 = vrot.lane.b32.xlu1 %v8442_v8, %s5059_s20 }
 0x26a   : > { %1468 = vrot.lane.b32.xlu0 %v8443_v10, %s5059_s20 }
 0x26b   : > { %v1578_v4 = vpop.permute.xlu1 %1577  ;;  %v1576_v24 = vpop.permute.xlu0 %1575  ;;  %v1955_v29 = vld [vmem:[#allocation4 + $0x70] sm:$0xff]  ;;  %v1956_v40 = vld [vmem:[#allocation4 + $0x78] sm:$0xff] }
 0x26c   : > { %1657 = vst.msk [vmem:[#allocation4 + $0x88] sm:$0xff] %vm1639_vm11, %v1578_v4  ;;  %1656 = vst.msk [vmem:[#allocation4 + $0x80] sm:$0xff] %vm1639_vm11, %v1576_v24  ;;  %4833 = vmatprep.mubr.msk.f32.mxu0 %vm1989_vm14, %v1955_v29 }
 0x26d   : > { %1601 = vrot.lane.b32.xlu1 %v5040_v39, %s5060_s27  ;;  %4834 = vmatmul.mubr.msk.f32.gmra.mrb[14].mxu0 %vm1989_vm14, %v1956_v40 }
 0x26e   : > { %1599 = vrot.lane.b32.xlu0 %v5041_v19, %s5060_s27 }
 0x26f   : > { %v1713_v49 = vpop.permute.xlu1 %1712 }
 0x270   : > { %v1711_v53 = vpop.permute.xlu0 %1710  ;;  %1792 = vst.msk [vmem:[#allocation4 + $0x88] sm:$0xff] %vm1774_vm12, %v1713_v49 }
 0x271   : > { %1791 = vst.msk [vmem:[#allocation4 + $0x80] sm:$0xff] %vm1774_vm12, %v1711_v53  ;;  %1736 = vrot.lane.b32.xlu1 %v1277_v38, %s5061_s8 }
 0x272   : > { %1734 = vrot.lane.b32.xlu0 %v1275_v32, %s5061_s8 }
 0x273   : > { %v1847_v37 = vpop.permute.xlu1 %1846 }
 0x274   : > { %v1845_v15 = vpop.permute.xlu0 %1844  ;;  %1926 = vst.msk [vmem:[#allocation4 + $0x88] sm:$0xff] %vm1908_vm13, %v1847_v37 }
 0x275   : > { %1925 = vst.msk [vmem:[#allocation4 + $0x80] sm:$0xff] %vm1908_vm13, %v1845_v15  ;;  %1870 = vrot.lane.b32.xlu1 %v1411_v6, %s5062_s12 }
 0x276   : > { %1868 = vrot.lane.b32.xlu0 %v1409_v54, %s5062_s12 }
 0x277   : > { %v1451_v11 = vpop.permute.xlu1 %1450 }
 0x278   : > { %v1449_v23 = vpop.permute.xlu0 %1448  ;;  %1528 = vst.msk [vmem:[#allocation4 + $0x98] sm:$0xff] %vm1508_vm10, %v1451_v11 }
 0x279   : > { %1527 = vst.msk [vmem:[#allocation4 + $0x90] sm:$0xff] %vm1508_vm10, %v1449_v23  ;;  %1340 = vrot.lane.b32.xlu1 %v1277_v38, %s5058_s11 }
 0x27a   : > { %1338 = vrot.lane.b32.xlu0 %v1275_v32, %s5058_s11 }
 0x27b   : > { %v1582_v61 = vpop.permute.xlu1 %1581  ;;  %v1958_v57 = vld [vmem:[#allocation4 + $0x88] sm:$0xff] }
 0x27c   : > { %v1580_v44 = vpop.permute.xlu0 %1579  ;;  %v1957_v55 = vld [vmem:[#allocation4 + $0x80] sm:$0xff]  ;;  %1659 = vst.msk [vmem:[#allocation4 + $0x98] sm:$0xff] %vm1639_vm11, %v1582_v61 }
 0x27d   : > { %1658 = vst.msk [vmem:[#allocation4 + $0x90] sm:$0xff] %vm1639_vm11, %v1580_v44  ;;  %4836 = vmatprep.mubr.msk.f32.mxu0 %vm1989_vm14, %v1957_v55  ;;  %1474 = vrot.lane.b32.xlu1 %v1411_v6, %s5059_s20 }
 0x27e   : > { %1472 = vrot.lane.b32.xlu0 %v1409_v54, %s5059_s20  ;;  %4837 = vmatmul.mubr.msk.f32.gmra.mrb[16].mxu0 %vm1989_vm14, %v1958_v57 }
 0x27f   : > { %v1717_v52 = vpop.permute.xlu1 %1716 }
 0x280   : > { %v1715_v59 = vpop.permute.xlu0 %1714  ;;  %1794 = vst.msk [vmem:[#allocation4 + $0x98] sm:$0xff] %vm1774_vm12, %v1717_v52 }
 0x281   : > { %1793 = vst.msk [vmem:[#allocation4 + $0x90] sm:$0xff] %vm1774_vm12, %v1715_v59  ;;  %1605 = vrot.lane.b32.xlu1 %v639_v5, %s5060_s27  ;;  %v6745_v59 = vld [vmem:[%s8276_s3] ss:$0 sm:$0xff] }
 0x282   : > { %1603 = vrot.lane.b32.xlu0 %v638_v26, %s5060_s27 }
 0x283   : > { %v1851_v30 = vpop.permute.xlu1 %1850 }
 0x284   : > { %v1849_v1 = vpop.permute.xlu0 %1848  ;;  %1928 = vst.msk [vmem:[#allocation4 + $0x98] sm:$0xff] %vm1908_vm13, %v1851_v30 }
 0x285   : > { %1927 = vst.msk [vmem:[#allocation4 + $0x90] sm:$0xff] %vm1908_vm13, %v1849_v1  ;;  %1740 = vrot.lane.b32.xlu1 %v1677_v16, %s5061_s8 }
 0x286   : > { %1738 = vrot.lane.b32.xlu0 %v1675_v22, %s5061_s8  ;;  %s4716_s8 = sshll.u32 %s8445_s22, 6 }
 0x287   : > { %v1321_v18 = vpop.permute.xlu1 %1320  ;;  %s8250_s13 = scalar_lea.vmem %s8279_s6, %s4716_s8 }
 0x288   : > { %v1319_v62 = vpop.permute.xlu0 %1318  ;;  %1396 = vst.msk [vmem:[#allocation4 + $0xa8] sm:$0xff] %vm1374_vm9, %v1321_v18 }
 0x289   : > { %1395 = vst.msk [vmem:[#allocation4 + $0xa0] sm:$0xff] %vm1374_vm9, %v1319_v62  ;;  %1874 = vrot.lane.b32.xlu1 %v1811_v27, %s5062_s12 }
 0x28a   : > { %1872 = vrot.lane.b32.xlu0 %v1809_v3, %s5062_s12 }
 0x28b   : > { %v1455_v25 = vpop.permute.xlu1 %1454  ;;  %v1960_v0 = vld [vmem:[#allocation4 + $0x98] sm:$0xff] }
 0x28c   : > { %v1453_v47 = vpop.permute.xlu0 %1452  ;;  %v1959_v46 = vld [vmem:[#allocation4 + $0x90] sm:$0xff]  ;;  %1530 = vst.msk [vmem:[#allocation4 + $0xa8] sm:$0xff] %vm1508_vm10, %v1455_v25 }
 0x28d   : > { %1529 = vst.msk [vmem:[#allocation4 + $0xa0] sm:$0xff] %vm1508_vm10, %v1453_v47  ;;  %4839 = vmatprep.mubr.msk.f32.mxu0 %vm1989_vm14, %v1959_v46  ;;  %2712 = vrot.lane.b32.xlu1 %v2634_v43, %s5058_s11 }
 0x28e   : > { %4840 = vmatmul.mubr.msk.f32.gmra.mrb[18].mxu0 %vm1989_vm14, %v1960_v0  ;;  %2710 = vrot.lane.b32.xlu0 %v2632_v48, %s5058_s11 }
 0x28f   : > { %v1586_v8 = vpop.permute.xlu1 %1585 }
 0x290   : > { %v1584_v10 = vpop.permute.xlu0 %1583  ;;  %1661 = vst.msk [vmem:[#allocation4 + $0xa8] sm:$0xff] %vm1639_vm11, %v1586_v8 }
 0x291   : > { %1660 = vst.msk [vmem:[#allocation4 + $0xa0] sm:$0xff] %vm1639_vm11, %v1584_v10 }
 0x293   : > { %v1721_v2 = vpop.permute.xlu1 %1720 }
 0x294   : > { %v1719_v31 = vpop.permute.xlu0 %1718  ;;  %1796 = vst.msk [vmem:[#allocation4 + $0xa8] sm:$0xff] %vm1774_vm12, %v1721_v2 }
 0x295   : > { %1795 = vst.msk [vmem:[#allocation4 + $0xa0] sm:$0xff] %vm1774_vm12, %v1719_v31 }
 0x297   : > { %v1855_v42 = vpop.permute.xlu1 %1854 }
 0x298   : > { %v1853_v9 = vpop.permute.xlu0 %1852  ;;  %1930 = vst.msk [vmem:[#allocation4 + $0xa8] sm:$0xff] %vm1908_vm13, %v1855_v42 }
 0x299   : > { %1929 = vst.msk [vmem:[#allocation4 + $0xa0] sm:$0xff] %vm1908_vm13, %v1853_v9 }
 0x29b   : > { %v1325_v12 = vpop.permute.xlu1 %1324 }
 0x29c   : > { %v1323_v4 = vpop.permute.xlu0 %1322  ;;  %1398 = vst.msk [vmem:[#allocation4 + $0xb8] sm:$0xff] %vm1374_vm9, %v1325_v12 }
 0x29d   : > { %1397 = vst.msk [vmem:[#allocation4 + $0xb0] sm:$0xff] %vm1374_vm9, %v1323_v4 }
 0x29f   : > { %v1459_v24 = vpop.permute.xlu1 %1458  ;;  %v1962_v39 = vld [vmem:[#allocation4 + $0xa8] sm:$0xff] }
 0x2a0   : > { %v1457_v29 = vpop.permute.xlu0 %1456  ;;  %v1961_v40 = vld [vmem:[#allocation4 + $0xa0] sm:$0xff]  ;;  %1532 = vst.msk [vmem:[#allocation4 + $0xb8] sm:$0xff] %vm1508_vm10, %v1459_v24 }
 0x2a1   : > { %1531 = vst.msk [vmem:[#allocation4 + $0xb0] sm:$0xff] %vm1508_vm10, %v1457_v29  ;;  %4842 = vmatprep.mubr.msk.f32.mxu0 %vm1989_vm14, %v1961_v40 }
 0x2a2   : > { %4843 = vmatmul.mubr.msk.f32.gmra.mrb[20].mxu0 %vm1989_vm14, %v1962_v39 }
 0x2a3   : > { %v1590_v17 = vpop.permute.xlu1 %1589 }
 0x2a4   : > { %v1588_v19 = vpop.permute.xlu0 %1587  ;;  %1663 = vst.msk [vmem:[#allocation4 + $0xb8] sm:$0xff] %vm1639_vm11, %v1590_v17 }
 0x2a5   : > { %1662 = vst.msk [vmem:[#allocation4 + $0xb0] sm:$0xff] %vm1639_vm11, %v1588_v19 }
 0x2a7   : > { %v1725_v41 = vpop.permute.xlu1 %1724 }
 0x2a8   : > { %v1723_v34 = vpop.permute.xlu0 %1722  ;;  %1798 = vst.msk [vmem:[#allocation4 + $0xb8] sm:$0xff] %vm1774_vm12, %v1725_v41 }
 0x2a9   : > { %1797 = vst.msk [vmem:[#allocation4 + $0xb0] sm:$0xff] %vm1774_vm12, %v1723_v34 }
 0x2ab   : > { %v1859_v58 = vpop.permute.xlu1 %1858 }
 0x2ac   : > { %v1857_v49 = vpop.permute.xlu0 %1856  ;;  %1932 = vst.msk [vmem:[#allocation4 + $0xb8] sm:$0xff] %vm1908_vm13, %v1859_v58 }
 0x2ad   : > { %1931 = vst.msk [vmem:[#allocation4 + $0xb0] sm:$0xff] %vm1908_vm13, %v1857_v49 }
 0x2af   : > { %v1329_v53 = vpop.permute.xlu1 %1328 }
 0x2b0   : > { %v1327_v56 = vpop.permute.xlu0 %1326  ;;  %1400 = vst.msk [vmem:[#allocation4 + $0xc8] sm:$0xff] %vm1374_vm9, %v1329_v53 }
 0x2b1   : > { %1399 = vst.msk [vmem:[#allocation4 + $0xc0] sm:$0xff] %vm1374_vm9, %v1327_v56 }
 0x2b3   : > { %v1463_v38 = vpop.permute.xlu1 %1462  ;;  %v1964_v37 = vld [vmem:[#allocation4 + $0xb8] sm:$0xff] }
 0x2b4   : > { %v1461_v32 = vpop.permute.xlu0 %1460  ;;  %v1963_v35 = vld [vmem:[#allocation4 + $0xb0] sm:$0xff]  ;;  %1534 = vst.msk [vmem:[#allocation4 + $0xc8] sm:$0xff] %vm1508_vm10, %v1463_v38 }
 0x2b5   : > { %1533 = vst.msk [vmem:[#allocation4 + $0xc0] sm:$0xff] %vm1508_vm10, %v1461_v32  ;;  %4845 = vmatprep.mubr.msk.f32.mxu0 %vm1989_vm14, %v1963_v35 }
 0x2b6   : > { %4846 = vmatmul.mubr.msk.f32.gmra.mrb[22].mxu0 %vm1989_vm14, %v1964_v37 }
 0x2b7   : > { %v1594_v15 = vpop.permute.xlu1 %1593 }
 0x2b8   : > { %v1592_v6 = vpop.permute.xlu0 %1591  ;;  %1665 = vst.msk [vmem:[#allocation4 + $0xc8] sm:$0xff] %vm1639_vm11, %v1594_v15 }
 0x2b9   : > { %1664 = vst.msk [vmem:[#allocation4 + $0xc0] sm:$0xff] %vm1639_vm11, %v1592_v6 }
 0x2bb   : > { %v1729_v54 = vpop.permute.xlu1 %1728 }
 0x2bc   : > { %v1727_v11 = vpop.permute.xlu0 %1726  ;;  %1800 = vst.msk [vmem:[#allocation4 + $0xc8] sm:$0xff] %vm1774_vm12, %v1729_v54 }
 0x2bd   : > { %1799 = vst.msk [vmem:[#allocation4 + $0xc0] sm:$0xff] %vm1774_vm12, %v1727_v11 }
 0x2bf   : > { %v1863_v23 = vpop.permute.xlu1 %1862 }
 0x2c0   : > { %v1861_v5 = vpop.permute.xlu0 %1860  ;;  %1934 = vst.msk [vmem:[#allocation4 + $0xc8] sm:$0xff] %vm1908_vm13, %v1863_v23 }
 0x2c1   : > { %1933 = vst.msk [vmem:[#allocation4 + $0xc0] sm:$0xff] %vm1908_vm13, %v1861_v5 }
 0x2c3   : > { %v1333_v26 = vpop.permute.xlu1 %1332 }
 0x2c4   : > { %v1331_v61 = vpop.permute.xlu0 %1330  ;;  %1402 = vst.msk [vmem:[#allocation4 + $0xd8] sm:$0xff] %vm1374_vm9, %v1333_v26 }
 0x2c5   : > { %1401 = vst.msk [vmem:[#allocation4 + $0xd0] sm:$0xff] %vm1374_vm9, %v1331_v61 }
 0x2c7   : > { %v1467_v44 = vpop.permute.xlu1 %1466  ;;  %v1966_v50 = vld [vmem:[#allocation4 + $0xc8] sm:$0xff] }
 0x2c8   : > { %v1465_v55 = vpop.permute.xlu0 %1464  ;;  %v1965_v57 = vld [vmem:[#allocation4 + $0xc0] sm:$0xff]  ;;  %1536 = vst.msk [vmem:[#allocation4 + $0xd8] sm:$0xff] %vm1508_vm10, %v1467_v44 }
 0x2c9   : > { %1535 = vst.msk [vmem:[#allocation4 + $0xd0] sm:$0xff] %vm1508_vm10, %v1465_v55  ;;  %4848 = vmatprep.mubr.msk.f32.mxu0 %vm1989_vm14, %v1965_v57 }
 0x2ca   : > { %4849 = vmatmul.mubr.msk.f32.gmra.mrb[24].mxu0 %vm1989_vm14, %v1966_v50 }
 0x2cb   : > { %v1598_v20 = vpop.permute.xlu1 %1597 }
 0x2cc   : > { %v1596_v51 = vpop.permute.xlu0 %1595  ;;  %1667 = vst.msk [vmem:[#allocation4 + $0xd8] sm:$0xff] %vm1639_vm11, %v1598_v20 }
 0x2cd   : > { %1666 = vst.msk [vmem:[#allocation4 + $0xd0] sm:$0xff] %vm1639_vm11, %v1596_v51 }
 0x2cf   : > { %v1733_v36 = vpop.permute.xlu1 %1732 }
 0x2d0   : > { %v1731_v52 = vpop.permute.xlu0 %1730  ;;  %1802 = vst.msk [vmem:[#allocation4 + $0xd8] sm:$0xff] %vm1774_vm12, %v1733_v36 }
 0x2d1   : > { %1801 = vst.msk [vmem:[#allocation4 + $0xd0] sm:$0xff] %vm1774_vm12, %v1731_v52 }
 0x2d3   : > { %v1867_v63 = vpop.permute.xlu1 %1866 }
 0x2d4   : > { %v4814_v13 = vpop.f32.mrb[0].mxu0  ;;  %1936 = vst.msk [vmem:[#allocation4 + $0xd8] sm:$0xff] %vm1908_vm13, %v1867_v63  ;;  %v1865_v22 = vpop.permute.xlu0 %1864 }
 0x2d5   : > { %v2158_v16 = vadd.f32 %v4814_v13, %v6745_v59  ;;  %v2152_v14 = vpop.f32.mrb[1].mxu0  ;;  %1935 = vst.msk [vmem:[#allocation4 + $0xd0] sm:$0xff] %vm1908_vm13, %v1865_v22 }
 0x2d6   : > { %v2153_v30 = vadd.f32 %v6745_v59, %v2152_v14 }
 0x2d7   : > { %vm2312_vm1 = vcmp.ge.f32.partialorder %v2158_v16, 0.0  ;;  %v2344_v1 = vmul.f32 0.1, %v2158_v16  ;;  %v1337_v27 = vpop.permute.xlu1 %1336 }
 0x2d8   : > { %vm2311_vm2 = vcmp.ge.f32.partialorder %v2153_v30, 0.0  ;;  %v2343_v33 = vmul.f32 0.1, %v2153_v30  ;;  %1404 = vst.msk [vmem:[#allocation4 + $0xe8] sm:$0xff] %vm1374_vm9, %v1337_v27  ;;  %v1335_v45 = vpop.permute.xlu0 %1334  ;;  %v3811_v27 = vld [vmem:[%s8277_s4] sm:$0xff] }
 0x2d9   : > { %v2376_v3 = vsel %vm2312_vm1, %v2158_v16, %v2344_v1  ;;  %1403 = vst.msk [vmem:[#allocation4 + $0xe0] sm:$0xff] %vm1374_vm9, %v1335_v45 }
 0x2da   : > { %2465 = vst.msk [vmem:[#allocation3 + $0x21] sm:$0xff] %vm2407_vm15, %v2376_v3  ;;  %v2375_v60 = vsel %vm2311_vm2, %v2153_v30, %v2343_v33  ;;  %v3812_v3 = vld [vmem:[%s8277_s4 + $0x8] sm:$0xff] }
 0x2db   : > { %2464 = vst.msk [vmem:[#allocation3 + $0x19] sm:$0xff] %vm2407_vm15, %v2375_v60  ;;  %v1471_v18 = vpop.permute.xlu1 %1470  ;;  %v1968_v62 = vld [vmem:[#allocation4 + $0xd8] sm:$0xff]  ;;  %v4933_v45 = vpack.c.bf16 %v3812_v3, %v3811_v27 }
 0x2dc   : > { %1538 = vst.msk [vmem:[#allocation4 + $0xe8] sm:$0xff] %vm1508_vm10, %v1471_v18  ;;  %v1469_v21 = vpop.permute.xlu0 %1468  ;;  %v1967_v43 = vld [vmem:[#allocation4 + $0xd0] sm:$0xff]  ;;  %v5063_v18 = vmov 0.0|0.0  }
 0x2dd   : > { %1537 = vst.msk [vmem:[#allocation4 + $0xe0] sm:$0xff] %vm1508_vm10, %v1469_v21  ;;  %4851 = vmatprep.mubr.msk.f32.mxu0 %vm1989_vm14, %v1967_v43  ;;  %4988 = vmatprep.subr.bf16.mxu1 %v5063_v18  ;;  %v3814_v21 = vld [vmem:[%s8277_s4 + $0x18] sm:$0xff] }
 0x2de   : > { %4852 = vmatmul.mubr.msk.f32.gmra.mrb[26].mxu0 %vm1989_vm14, %v1968_v62  ;;  %v3813_v62 = vld [vmem:[%s8277_s4 + $0x10] sm:$0xff]  ;;  %4932 = vmatprep.subr.bf16.mxu0 %v5063_v18 }
 0x2df   : > { %v1602_v25 = vpop.permute.xlu1 %1601  ;;  %5004 = vmatpush1.bf16.msra.mxu1 %v4933_v45  ;;  %4934 = vmatpush1.bf16.msra.mxu0 %v4933_v45 }
 0x2e0   : > { %1669 = vst.msk [vmem:[#allocation4 + $0xe8] sm:$0xff] %vm1639_vm11, %v1602_v25  ;;  %v1600_v47 = vpop.permute.xlu0 %1599  ;;  %v4936_v25 = vpack.c.bf16 %v3814_v21, %v3813_v62  ;;  %4989 = vmatprep.subr.bf16.mxu1 %v5063_v18  ;;  %4935 = vmatprep.subr.bf16.mxu0 %v5063_v18 }
 0x2e1   : > { %v2501_v46 = vld [vmem:[#allocation3 + $0x28] sm:$0x3]  ;;  %1668 = vst.msk [vmem:[#allocation4 + $0xe0] sm:$0xff] %vm1639_vm11, %v1600_v47 }
 0x2e2   : > { %v6761_v0 = vld [vmem:[#allocation3 + $0x20] sm:$0xff]  ;;  %v2638_v48 = vrot.slane %v2501_v46, 1  ;;  %v6763_v8 = vld [vmem:[#allocation3 + $0x18] sm:$0xff]  ;;  %v3815_v46 = vld [vmem:[%s8277_s4 + $0x20] sm:$0xff] }
 0x2e3   : > { %v2636_v10 = vrot.slane %v6761_v0, 1  ;;  %2553 = vst.msk [vmem:[#allocation5 + $0x48] sm:$0xff] %vm2407_vm15, %v6761_v0  ;;  %v2635_v2 = vrot.slane %v6763_v8, 1  ;;  %2552 = vst.msk [vmem:[#allocation5 + $0x30] sm:$0xff] %vm2407_vm15, %v6763_v8  ;;  %v1737_v31 = vpop.permute.xlu1 %1736  ;;  %5005 = vmatpush1.bf16.msra.mxu1 %v4936_v25  ;;  %4937 = vmatpush1.bf16.msra.mxu0 %v4936_v25 }
 0x2e4   : > { %v4817_v42 = vpop.f32.mrb[2].mxu0  ;;  %1804 = vst.msk [vmem:[#allocation4 + $0xe8] sm:$0xff] %vm1774_vm12, %v1737_v31  ;;  %v1735_v9 = vpop.permute.xlu0 %1734  ;;  %4990 = vmatprep.subr.bf16.mxu1 %v5063_v18  ;;  %4938 = vmatprep.subr.bf16.mxu0 %v5063_v18 }
 0x2e5   : > { %v2168_v12 = vadd.f32 %v4817_v42, %v6745_v59  ;;  %v2162_v4 = vpop.f32.mrb[3].mxu0  ;;  %v2639_v24 = vsel %vm721_vm3, %v2636_v10, %v2638_v48  ;;  %v2637_v29 = vsel %vm721_vm3, %v2635_v2, %v2636_v10  ;;  %1803 = vst.msk [vmem:[#allocation4 + $0xe0] sm:$0xff] %vm1774_vm12, %v1735_v9  ;;  %v3816_v48 = vld [vmem:[%s8277_s4 + $0x28] sm:$0xff] }
 0x2e6   : > { %v2163_v40 = vadd.f32 %v6745_v59, %v2162_v4  ;;  %2716 = vrot.lane.b32.xlu1 %v2639_v24, %s5058_s11  ;;  %3218 = vst.msk [vmem:[#allocation5 + $0x20] sm:$0xff] %vm2407_vm15, %v2639_v24  ;;  %2714 = vrot.lane.b32.xlu0 %v2637_v29, %s5058_s11  ;;  %3217 = vst.msk [vmem:[#allocation5 + $0x8] sm:$0xff] %vm2407_vm15, %v2637_v29  ;;  %v4939_v31 = vpack.c.bf16 %v3816_v48, %v3815_v46 }
 0x2e7   : > { %vm2314_vm5 = vcmp.ge.f32.partialorder %v2168_v12, 0.0  ;;  %v2346_v39 = vmul.f32 0.1, %v2168_v12  ;;  %v1871_v19 = vpop.permute.xlu1 %1870 }
 0x2e8   : > { %vm2313_vm6 = vcmp.ge.f32.partialorder %v2163_v40, 0.0  ;;  %v2345_v17 = vmul.f32 0.1, %v2163_v40  ;;  %1938 = vst.msk [vmem:[#allocation4 + $0xe8] sm:$0xff] %vm1908_vm13, %v1871_v19  ;;  %v1869_v34 = vpop.permute.xlu0 %1868  ;;  %v3817_v19 = vld [vmem:[%s8277_s4 + $0x30] sm:$0xff]  ;;  %5006 = vmatpush1.bf16.msra.mxu1 %v4939_v31  ;;  %4940 = vmatpush1.bf16.msra.mxu0 %v4939_v31 }
 0x2e9   : > { %v2378_v41 = vsel %vm2314_vm5, %v2168_v12, %v2346_v39  ;;  %1937 = vst.msk [vmem:[#allocation4 + $0xe0] sm:$0xff] %vm1908_vm13, %v1869_v34  ;;  %4991 = vmatprep.subr.bf16.mxu1 %v5063_v18  ;;  %4941 = vmatprep.subr.bf16.mxu0 %v5063_v18 }
 0x2ea   : > { %2467 = vst.msk [vmem:[#allocation3 + $0x39] sm:$0xff] %vm2407_vm15, %v2378_v41  ;;  %v2377_v58 = vsel %vm2313_vm6, %v2163_v40, %v2345_v17  ;;  %v3818_v41 = vld [vmem:[%s8277_s4 + $0x38] sm:$0xff] }
 0x2eb   : > { %2466 = vst.msk [vmem:[#allocation3 + $0x31] sm:$0xff] %vm2407_vm15, %v2377_v58  ;;  %v1341_v49 = vpop.permute.xlu1 %1340 }
 0x2ec   : > { %1406 = vst.msk [vmem:[#allocation4 + $0xf8] sm:$0xff] %vm1374_vm9, %v1341_v49  ;;  %v1339_v53 = vpop.permute.xlu0 %1338 }
 0x2ed   : > { %1405 = vst.msk [vmem:[#allocation4 + $0xf0] sm:$0xff] %vm1374_vm9, %v1339_v53  ;;  %vm2806_vm9 = vcmask 523520  }
 0x2ef   : > { %v1475_v56 = vpop.permute.xlu1 %1474  ;;  %v1970_v38 = vld [vmem:[#allocation4 + $0xe8] sm:$0xff] }
 0x2f0   : > { %1540 = vst.msk [vmem:[#allocation4 + $0xf8] sm:$0xff] %vm1508_vm10, %v1475_v56  ;;  %v1473_v32 = vpop.permute.xlu0 %1472  ;;  %v1969_v35 = vld [vmem:[#allocation4 + $0xe0] sm:$0xff] }
 0x2f1   : > { %v2504_v37 = vld [vmem:[#allocation3 + $0x40] sm:$0x3]  ;;  %1539 = vst.msk [vmem:[#allocation4 + $0xf0] sm:$0xff] %vm1508_vm10, %v1473_v32  ;;  %4854 = vmatprep.mubr.msk.f32.mxu0 %vm1989_vm14, %v1969_v35  ;;  %v4942_v35 = vpack.c.bf16 %v3818_v41, %v3817_v19  ;;  %v3828_v19 = vld [vmem:[%s8277_s4 + $0x88] sm:$0xff] }
 0x2f2   : > { %v6790_v15 = vld [vmem:[#allocation3 + $0x38] sm:$0xff]  ;;  %v2643_v6 = vrot.slane %v2504_v37, 1  ;;  %v6792_v54 = vld [vmem:[#allocation3 + $0x30] sm:$0xff]  ;;  %v2852_v11 = vrot.slane %v2504_v37, 2  ;;  %4855 = vmatmul.mubr.msk.f32.gmra.mrb[28].mxu0 %vm1989_vm14, %v1970_v38 }
 0x2f3   : > { %v2641_v23 = vrot.slane %v6790_v15, 1  ;;  %2555 = vst.msk [vmem:[#allocation5 + $0x78] sm:$0xff] %vm2407_vm15, %v6790_v15  ;;  %v2640_v5 = vrot.slane %v6792_v54, 1  ;;  %2554 = vst.msk [vmem:[#allocation5 + $0x60] sm:$0xff] %vm2407_vm15, %v6792_v54  ;;  %v2850_v26 = vrot.slane %v6790_v15, 2  ;;  %v2849_v61 = vrot.slane %v6792_v54, 2  ;;  %v1606_v55 = vpop.permute.xlu1 %1605  ;;  %5007 = vmatpush1.bf16.msra.mxu1 %v4942_v35  ;;  %4943 = vmatpush1.bf16.msra.mxu0 %v4942_v35 }
 0x2f4   : > { %v4820_v44 = vpop.f32.mrb[4].mxu0  ;;  %1671 = vst.msk [vmem:[#allocation4 + $0xf8] sm:$0xff] %vm1639_vm11, %v1606_v55  ;;  %v1604_v52 = vpop.permute.xlu0 %1603  ;;  %4992 = vmatprep.subr.bf16.mxu1 %v5063_v18  ;;  %4944 = vmatprep.subr.bf16.mxu0 %v5063_v18 }
 0x2f5   : > { %v2178_v57 = vadd.f32 %v4820_v44, %v6745_v59  ;;  %v2172_v50 = vpop.f32.mrb[5].mxu0  ;;  %v6805_v20 = vsel %vm721_vm3, %v2641_v23, %v2643_v6  ;;  %v6808_v51 = vsel %vm721_vm3, %v2640_v5, %v2641_v23  ;;  %v6811_v36 = vsel %vm931_vm4, %v2850_v26, %v2852_v11  ;;  %1670 = vst.msk [vmem:[#allocation4 + $0xf0] sm:$0xff] %vm1639_vm11, %v1604_v52 }
 0x2f6   : > { %v2173_v63 = vadd.f32 %v6745_v59, %v2172_v50  ;;  %2720 = vrot.lane.b32.xlu1 %v6805_v20, %s5058_s11  ;;  %3220 = vst.msk [vmem:[#allocation5 + $0x50] sm:$0xff] %vm2407_vm15, %v6805_v20  ;;  %2718 = vrot.lane.b32.xlu0 %v6808_v51, %s5058_s11  ;;  %3219 = vst.msk [vmem:[#allocation5 + $0x38] sm:$0xff] %vm2407_vm15, %v6808_v51  ;;  %v6827_v13 = vsel %vm931_vm4, %v2849_v61, %v2850_v26  ;;  %v3819_v26 = vld [vmem:[%s8277_s4 + $0x40] sm:$0xff]  ;;  %v3820_v61 = vld [vmem:[%s8277_s4 + $0x48] sm:$0xff] }
 0x2f7   : > { %3684 = vst.msk [vmem:[#allocation5 + $0x28] sm:$0xff] %vm2407_vm15, %v6811_v36  ;;  %vm2316_vm7 = vcmp.ge.f32.partialorder %v2178_v57, 0.0  ;;  %v2348_v16 = vmul.f32 0.1, %v2178_v57  ;;  %3683 = vst.msk [vmem:[#allocation5 + $0x10] sm:$0xff] %vm2407_vm15, %v6827_v13  ;;  %v1741_v14 = vpop.permute.xlu1 %1740  ;;  %v4945_v55 = vpack.c.bf16 %v3820_v61, %v3819_v26  ;;  %v3822_v50 = vld [vmem:[%s8277_s4 + $0x58] sm:$0xff] }
 0x2f8   : > { %vm2315_vm8 = vcmp.ge.f32.partialorder %v2173_v63, 0.0  ;;  %v2347_v22 = vmul.f32 0.1, %v2173_v63  ;;  %1806 = vst.msk [vmem:[#allocation4 + $0xf8] sm:$0xff] %vm1774_vm12, %v1741_v14  ;;  %v1739_v1 = vpop.permute.xlu0 %1738 }
 0x2f9   : > { %v2380_v30 = vsel %vm2316_vm7, %v2178_v57, %v2348_v16  ;;  %1805 = vst.msk [vmem:[#allocation4 + $0xf0] sm:$0xff] %vm1774_vm12, %v1739_v1  ;;  %5008 = vmatpush1.bf16.msra.mxu1 %v4945_v55  ;;  %v3821_v57 = vld [vmem:[%s8277_s4 + $0x50] sm:$0xff]  ;;  %4946 = vmatpush1.bf16.msra.mxu0 %v4945_v55  ;;  %v3824_v16 = vld [vmem:[%s8277_s4 + $0x68] sm:$0xff] }
 0x2fa   : > { %2469 = vst.msk [vmem:[#allocation3 + $0x51] sm:$0xff] %vm2407_vm15, %v2380_v30  ;;  %v2379_v33 = vsel %vm2315_vm8, %v2173_v63, %v2347_v22  ;;  %4993 = vmatprep.subr.bf16.mxu1 %v5063_v18  ;;  %v4948_v52 = vpack.c.bf16 %v3822_v50, %v3821_v57  ;;  %v3823_v63 = vld [vmem:[%s8277_s4 + $0x60] sm:$0xff]  ;;  %4947 = vmatprep.subr.bf16.mxu0 %v5063_v18  ;;  %v3832_v50 = vld [vmem:[%s8277_s4 + $0xa8] sm:$0xff] }
 0x2fb   : > { %2468 = vst.msk [vmem:[#allocation3 + $0x49] sm:$0xff] %vm2407_vm15, %v2379_v33  ;;  %v1875_v60 = vpop.permute.xlu1 %1874  ;;  %v4951_v14 = vpack.c.bf16 %v3824_v16, %v3823_v63  ;;  %v3831_v57 = vld [vmem:[%s8277_s4 + $0xa0] sm:$0xff] }
 0x2fc   : > { %1940 = vst.msk [vmem:[#allocation4 + $0xf8] sm:$0xff] %vm1908_vm13, %v1875_v60  ;;  %v1873_v43 = vpop.permute.xlu0 %1872 }
 0x2fd   : > { %1939 = vst.msk [vmem:[#allocation4 + $0xf0] sm:$0xff] %vm1908_vm13, %v1873_v43  ;;  %5009 = vmatpush1.bf16.msra.mxu1 %v4948_v52  ;;  %4949 = vmatpush1.bf16.msra.mxu0 %v4948_v52 }
 0x2fe   : > { %4994 = vmatprep.subr.bf16.mxu1 %v5063_v18  ;;  %4950 = vmatprep.subr.bf16.mxu0 %v5063_v18 }
 0x2ff   : > { %v2713_v47 = vpop.permute.xlu1 %2712 }
 0x300   : > { %2808 = vst.msk [vmem:[#allocation5 + $0x18] sm:$0xff] %vm2806_vm9, %v2713_v47  ;;  %v2711_v2 = vpop.permute.xlu0 %2710 }
 0x301   : > { %v2507_v10 = vld [vmem:[#allocation3 + $0x58] sm:$0x3]  ;;  %2807 = vst.msk [vmem:[#allocation5] sm:$0xff] %vm2806_vm9, %v2711_v2  ;;  %5010 = vmatpush1.bf16.msra.mxu1 %v4951_v14  ;;  %4952 = vmatpush1.bf16.msra.mxu0 %v4951_v14 }
 0x302   : > { %v6860_v42 = vld [vmem:[#allocation3 + $0x50] sm:$0xff]  ;;  %v2648_v9 = vrot.slane %v2507_v10, 1  ;;  %v6862_v12 = vld [vmem:[#allocation3 + $0x48] sm:$0xff]  ;;  %v2857_v4 = vrot.slane %v2507_v10, 2  ;;  %4995 = vmatprep.subr.bf16.mxu1 %v5063_v18  ;;  %4953 = vmatprep.subr.bf16.mxu0 %v5063_v18 }
 0x303   : > { %v2646_v24 = vrot.slane %v6860_v42, 1  ;;  %2557 = vst.msk [vmem:[#allocation5 + $0xa8] sm:$0xff] %vm2407_vm15, %v6860_v42  ;;  %v2645_v29 = vrot.slane %v6862_v12, 1  ;;  %2556 = vst.msk [vmem:[#allocation5 + $0x90] sm:$0xff] %vm2407_vm15, %v6862_v12  ;;  %v2855_v40 = vrot.slane %v6860_v42, 2  ;;  %v2854_v39 = vrot.slane %v6862_v12, 2 }
 0x304   : > { %v4823_v17 = vpop.f32.mrb[6].mxu0  ;;  %v1971_v5 = vld [vmem:[#allocation4 + $0xf0] sm:$0xff]  ;;  %v1972_v44 = vld [vmem:[#allocation4 + $0xf8] sm:$0xff] }
 0x305   : > { %v2188_v34 = vadd.f32 %v4823_v17, %v6745_v59  ;;  %v2182_v58 = vpop.f32.mrb[7].mxu0  ;;  %v6883_v49 = vsel %vm721_vm3, %v2646_v24, %v2648_v9  ;;  %v6886_v53 = vsel %vm721_vm3, %v2645_v29, %v2646_v24  ;;  %v6889_v56 = vsel %vm931_vm4, %v2855_v40, %v2857_v4  ;;  %4857 = vmatprep.mubr.msk.f32.mxu0 %vm1989_vm14, %v1971_v5  ;;  %v3825_v4 = vld [vmem:[%s8277_s4 + $0x70] sm:$0xff]  ;;  %v3826_v24 = vld [vmem:[%s8277_s4 + $0x78] sm:$0xff]  ;;  %v3827_v17 = vld [vmem:[%s8277_s4 + $0x80] sm:$0xff] }
 0x306   : > { %v2183_v38 = vadd.f32 %v6745_v59, %v2182_v58  ;;  %2724 = vrot.lane.b32.xlu1 %v6883_v49, %s5058_s11  ;;  %3222 = vst.msk [vmem:[#allocation5 + $0x80] sm:$0xff] %vm2407_vm15, %v6883_v49  ;;  %2722 = vrot.lane.b32.xlu0 %v6886_v53, %s5058_s11  ;;  %3221 = vst.msk [vmem:[#allocation5 + $0x68] sm:$0xff] %vm2407_vm15, %v6886_v53  ;;  %v6903_v32 = vsel %vm931_vm4, %v2854_v39, %v2855_v40  ;;  %v3830_v58 = vld [vmem:[%s8277_s4 + $0x98] sm:$0xff] }
 0x307   : > { %3686 = vst.msk [vmem:[#allocation5 + $0x58] sm:$0xff] %vm2407_vm15, %v6889_v56  ;;  %vm2318_vm10 = vcmp.ge.f32.partialorder %v2188_v34, 0.0  ;;  %v2350_v37 = vmul.f32 0.1, %v2188_v34  ;;  %3685 = vst.msk [vmem:[#allocation5 + $0x40] sm:$0xff] %vm2407_vm15, %v6903_v32  ;;  %4858 = vmatmul.mubr.msk.f32.gmra.mrb[30].mxu0 %vm1989_vm14, %v1972_v44  ;;  %v4954_v40 = vpack.c.bf16 %v3826_v24, %v3825_v4  ;;  %v4957_v41 = vpack.c.bf16 %v3828_v19, %v3827_v17  ;;  %v3837_v24 = vld [vmem:[%s8277_s4 + $0xd0] sm:$0xff] }
 0x308   : > { %vm2317_vm11 = vcmp.ge.f32.partialorder %v2183_v38, 0.0  ;;  %v2349_v6 = vmul.f32 0.1, %v2183_v38 }
 0x309   : > { %v2382_v11 = vsel %vm2318_vm10, %v2188_v34, %v2350_v37  ;;  %5011 = vmatpush1.bf16.msra.mxu1 %v4954_v40  ;;  %4955 = vmatpush1.bf16.msra.mxu0 %v4954_v40  ;;  %v3829_v34 = vld [vmem:[%s8277_s4 + $0x90] sm:$0xff] }
 0x30a   : > { %2471 = vst.msk [vmem:[#allocation3 + $0x69] sm:$0xff] %vm2407_vm15, %v2382_v11  ;;  %v2381_v23 = vsel %vm2317_vm11, %v2183_v38, %v2349_v6  ;;  %4996 = vmatprep.subr.bf16.mxu1 %v5063_v18  ;;  %4956 = vmatprep.subr.bf16.mxu0 %v5063_v18  ;;  %v4960_v35 = vpack.c.bf16 %v3830_v58, %v3829_v34 }
 0x30b   : > { %2470 = vst.msk [vmem:[#allocation3 + $0x61] sm:$0xff] %vm2407_vm15, %v2381_v23 }
 0x30d   : > { %5012 = vmatpush1.bf16.msra.mxu1 %v4957_v41  ;;  %4958 = vmatpush1.bf16.msra.mxu0 %v4957_v41 }
 0x30e   : > { %4997 = vmatprep.subr.bf16.mxu1 %v5063_v18  ;;  %4959 = vmatprep.subr.bf16.mxu0 %v5063_v18 }
 0x310   : > { %v4826_v30 = vpop.f32.mrb[8].mxu0 }
 0x311   : > { %v2510_v22 = vld [vmem:[#allocation3 + $0x70] sm:$0x3]  ;;  %v2198_v45 = vadd.f32 %v4826_v30, %v6745_v59  ;;  %v2192_v60 = vpop.f32.mrb[9].mxu0  ;;  %5013 = vmatpush1.bf16.msra.mxu1 %v4960_v35  ;;  %4961 = vmatpush1.bf16.msra.mxu0 %v4960_v35 }
 0x312   : > { %v6935_v1 = vld [vmem:[#allocation3 + $0x68] sm:$0xff]  ;;  %v2653_v33 = vrot.slane %v2510_v22, 1  ;;  %v6937_v27 = vld [vmem:[#allocation3 + $0x60] sm:$0xff]  ;;  %v2862_v3 = vrot.slane %v2510_v22, 2  ;;  %v2193_v25 = vadd.f32 %v6745_v59, %v2192_v60  ;;  %4998 = vmatprep.subr.bf16.mxu1 %v5063_v18  ;;  %4962 = vmatprep.subr.bf16.mxu0 %v5063_v18 }
 0x313   : > { %v2651_v62 = vrot.slane %v6935_v1, 1  ;;  %2559 = vst.msk [vmem:[#allocation5 + $0xd8] sm:$0xff] %vm2407_vm15, %v6935_v1  ;;  %v2650_v21 = vrot.slane %v6937_v27, 1  ;;  %2558 = vst.msk [vmem:[#allocation5 + $0xc0] sm:$0xff] %vm2407_vm15, %v6937_v27  ;;  %v2859_v43 = vrot.slane %v6937_v27, 2  ;;  %v2860_v47 = vrot.slane %v6935_v1, 2 }
 0x314   : > { %vm2320_vm12 = vcmp.ge.f32.partialorder %v2198_v45, 0.0  ;;  %v2352_v46 = vmul.f32 0.1, %v2198_v45  ;;  %vm2319_vm13 = vcmp.ge.f32.partialorder %v2193_v25, 0.0  ;;  %v2351_v2 = vmul.f32 0.1, %v2193_v25 }
 0x315   : > { %v6952_v48 = vsel %vm721_vm3, %v2651_v62, %v2653_v33  ;;  %v6955_v10 = vsel %vm721_vm3, %v2650_v21, %v2651_v62  ;;  %v6966_v31 = vsel %vm931_vm4, %v2859_v43, %v2860_v47  ;;  %v6969_v9 = vsel %vm931_vm4, %v2860_v47, %v2862_v3  ;;  %v3833_v62 = vld [vmem:[%s8277_s4 + $0xb0] sm:$0xff]  ;;  %v3834_v21 = vld [vmem:[%s8277_s4 + $0xb8] sm:$0xff] }
 0x316   : > { %2728 = vrot.lane.b32.xlu1 %v6952_v48, %s5058_s11  ;;  %3224 = vst.msk [vmem:[#allocation5 + $0xb0] sm:$0xff] %vm2407_vm15, %v6952_v48  ;;  %2726 = vrot.lane.b32.xlu0 %v6955_v10, %s5058_s11  ;;  %3223 = vst.msk [vmem:[#allocation5 + $0x98] sm:$0xff] %vm2407_vm15, %v6955_v10  ;;  %v2384_v29 = vsel %vm2320_vm12, %v2198_v45, %v2352_v46  ;;  %v2383_v39 = vsel %vm2319_vm13, %v2193_v25, %v2351_v2  ;;  %v3835_v46 = vld [vmem:[%s8277_s4 + $0xc0] sm:$0xff]  ;;  %v3836_v2 = vld [vmem:[%s8277_s4 + $0xc8] sm:$0xff] }
 0x317   : > { %3687 = vst.msk [vmem:[#allocation5 + $0x70] sm:$0xff] %vm2407_vm15, %v6966_v31  ;;  %3688 = vst.msk [vmem:[#allocation5 + $0x88] sm:$0xff] %vm2407_vm15, %v6969_v9  ;;  %v4963_v3 = vpack.c.bf16 %v3832_v50, %v3831_v57  ;;  %v4966_v25 = vpack.c.bf16 %v3834_v21, %v3833_v62  ;;  %v4969_v4 = vpack.c.bf16 %v3836_v2, %v3835_v46  ;;  %v3842_v62 = vld [vmem:[%s8277_s4 + $0xf8] sm:$0xff] }
 0x318   : > { %2473 = vst.msk [vmem:[#allocation3 + $0x81] sm:$0xff] %vm2407_vm15, %v2384_v29  ;;  %2472 = vst.msk [vmem:[#allocation3 + $0x79] sm:$0xff] %vm2407_vm15, %v2383_v39  ;;  %v3838_v29 = vld [vmem:[%s8277_s4 + $0xd8] sm:$0xff] }
 0x319   : > { %5014 = vmatpush1.bf16.msra.mxu1 %v4963_v3  ;;  %4964 = vmatpush1.bf16.msra.mxu0 %v4963_v3  ;;  %v4972_v39 = vpack.c.bf16 %v3838_v29, %v3837_v24 }
 0x31a   : > { %4999 = vmatprep.subr.bf16.mxu1 %v5063_v18  ;;  %4965 = vmatprep.subr.bf16.mxu0 %v5063_v18 }
 0x31d   : > { %5015 = vmatpush1.bf16.msra.mxu1 %v4966_v25  ;;  %4967 = vmatpush1.bf16.msra.mxu0 %v4966_v25 }
 0x31e   : > { %5000 = vmatprep.subr.bf16.mxu1 %v5063_v18  ;;  %4968 = vmatprep.subr.bf16.mxu0 %v5063_v18 }
 0x31f   : > { %v2513_v38 = vld [vmem:[#allocation3 + $0x88] sm:$0x3]  ;;  %v7001_v37 = vld [vmem:[#allocation3 + $0x80] sm:$0xff]  ;;  %v7003_v11 = vld [vmem:[#allocation3 + $0x78] sm:$0xff] }
 0x320   : > { %v2658_v6 = vrot.slane %v2513_v38, 1  ;;  %v2867_v23 = vrot.slane %v2513_v38, 2  ;;  %v2656_v5 = vrot.slane %v7001_v37, 1  ;;  %2561 = vst.msk [vmem:[#allocation5 + $0x108] sm:$0xff] %vm2407_vm15, %v7001_v37  ;;  %v2655_v26 = vrot.slane %v7003_v11, 1  ;;  %2560 = vst.msk [vmem:[#allocation5 + $0xf0] sm:$0xff] %vm2407_vm15, %v7003_v11 }
 0x321   : > { %v2864_v61 = vrot.slane %v7003_v11, 2  ;;  %v2865_v44 = vrot.slane %v7001_v37, 2  ;;  %v4829_v55 = vpop.f32.mrb[10].mxu0  ;;  %5016 = vmatpush1.bf16.msra.mxu1 %v4969_v4  ;;  %4970 = vmatpush1.bf16.msra.mxu0 %v4969_v4 }
 0x322   : > { %v2208_v52 = vadd.f32 %v4829_v55, %v6745_v59  ;;  %v2202_v63 = vpop.f32.mrb[11].mxu0  ;;  %v7023_v16 = vsel %vm721_vm3, %v2656_v5, %v2658_v6  ;;  %v7026_v22 = vsel %vm721_vm3, %v2655_v26, %v2656_v5  ;;  %5001 = vmatprep.subr.bf16.mxu1 %v5063_v18  ;;  %4971 = vmatprep.subr.bf16.mxu0 %v5063_v18  ;;  %v3839_v5 = vld [vmem:[%s8277_s4 + $0xe0] sm:$0xff]  ;;  %v3840_v26 = vld [vmem:[%s8277_s4 + $0xe8] sm:$0xff] }
 0x323   : > { %v7029_v14 = vsel %vm931_vm4, %v2864_v61, %v2865_v44  ;;  %v2203_v30 = vadd.f32 %v6745_v59, %v2202_v63  ;;  %2732 = vrot.lane.b32.xlu1 %v7023_v16, %s5058_s11  ;;  %3226 = vst.msk [vmem:[#allocation5 + $0xe0] sm:$0xff] %vm2407_vm15, %v7023_v16  ;;  %2730 = vrot.lane.b32.xlu0 %v7026_v22, %s5058_s11  ;;  %3225 = vst.msk [vmem:[#allocation5 + $0xc8] sm:$0xff] %vm2407_vm15, %v7026_v22 }
 0x324   : > { %3689 = vst.msk [vmem:[#allocation5 + $0xa0] sm:$0xff] %vm2407_vm15, %v7029_v14  ;;  %v7043_v33 = vsel %vm931_vm4, %v2865_v44, %v2867_v23  ;;  %vm2322_vm14 = vcmp.ge.f32.partialorder %v2208_v52, 0.0  ;;  %v2354_v45 = vmul.f32 0.1, %v2208_v52 }
 0x325   : > { %3690 = vst.msk [vmem:[#allocation5 + $0xb8] sm:$0xff] %vm2407_vm15, %v7043_v33  ;;  %vm2321_vm0 = vcmp.ge.f32.partialorder %v2203_v30, 0.0  ;;  %v2353_v60 = vmul.f32 0.1, %v2203_v30  ;;  %5017 = vmatpush1.bf16.msra.mxu1 %v4972_v39  ;;  %4973 = vmatpush1.bf16.msra.mxu0 %v4972_v39 }
 0x326   : > { %v2386_v43 = vsel %vm2322_vm14, %v2208_v52, %v2354_v45  ;;  %5002 = vmatprep.subr.bf16.mxu1 %v5063_v18  ;;  %4974 = vmatprep.subr.bf16.mxu0 %v5063_v18 }
 0x327   : > { %2475 = vst.msk [vmem:[#allocation3 + $0x99] sm:$0xff] %vm2407_vm15, %v2386_v43  ;;  %v2385_v47 = vsel %vm2321_vm0, %v2203_v30, %v2353_v60  ;;  %v4975_v30 = vpack.c.bf16 %v3840_v26, %v3839_v5  ;;  %v3841_v60 = vld [vmem:[%s8277_s4 + $0xf0] sm:$0xff] }
 0x328   : > { %2474 = vst.msk [vmem:[#allocation3 + $0x91] sm:$0xff] %vm2407_vm15, %v2385_v47  ;;  %v4978_v43 = vpack.c.bf16 %v3842_v62, %v3841_v60 }
 0x329   : > { %5018 = vmatpush1.bf16.msra.mxu1 %v4975_v30  ;;  %4976 = vmatpush1.bf16.msra.mxu0 %v4975_v30 }
 0x32a   : > { %5003 = vmatprep.subr.bf16.mxu1 %v5063_v18  ;;  %4977 = vmatprep.subr.bf16.mxu0 %v5063_v18 }
 0x32d   : > { %5019 = vmatpush1.bf16.msra.mxu1 %v4978_v43  ;;  %4979 = vmatpush1.bf16.msra.mxu0 %v4978_v43 }
 0x32e   : > { %v2516_v40 = vld [vmem:[#allocation3 + $0xa0] sm:$0x3] }
 0x32f   : > { %v7073_v17 = vld [vmem:[#allocation3 + $0x98] sm:$0xff]  ;;  %v2663_v19 = vrot.slane %v2516_v40, 1  ;;  %v7075_v41 = vld [vmem:[#allocation3 + $0x90] sm:$0xff]  ;;  %v2872_v34 = vrot.slane %v2516_v40, 2 }
 0x330   : > { %v2661_v58 = vrot.slane %v7073_v17, 1  ;;  %2563 = vst.msk [vmem:[#allocation5 + $0x138] sm:$0xff] %vm2407_vm15, %v7073_v17  ;;  %v2660_v38 = vrot.slane %v7075_v41, 1  ;;  %2562 = vst.msk [vmem:[#allocation5 + $0x120] sm:$0xff] %vm2407_vm15, %v7075_v41  ;;  %v2869_v35 = vrot.slane %v7075_v41, 2  ;;  %v2870_v6 = vrot.slane %v7073_v17, 2 }
 0x331   : > { %v4832_v23 = vpop.f32.mrb[12].mxu0 }
 0x332   : > { %v2218_v61 = vadd.f32 %v4832_v23, %v6745_v59  ;;  %v2212_v44 = vpop.f32.mrb[13].mxu0  ;;  %v7094_v55 = vsel %vm721_vm3, %v2661_v58, %v2663_v19  ;;  %v7097_v57 = vsel %vm721_vm3, %v2660_v38, %v2661_v58  ;;  %v7100_v50 = vsel %vm931_vm4, %v2869_v35, %v2870_v6 }
 0x333   : > { %v2213_v52 = vadd.f32 %v6745_v59, %v2212_v44  ;;  %2736 = vrot.lane.b32.xlu1 %v7094_v55, %s5058_s11  ;;  %3228 = vst.msk [vmem:[#allocation5 + $0x110] sm:$0xff] %vm2407_vm15, %v7094_v55  ;;  %2734 = vrot.lane.b32.xlu0 %v7097_v57, %s5058_s11  ;;  %3227 = vst.msk [vmem:[#allocation5 + $0xf8] sm:$0xff] %vm2407_vm15, %v7097_v57  ;;  %v7115_v63 = vsel %vm931_vm4, %v2870_v6, %v2872_v34 }
 0x334   : > { %3691 = vst.msk [vmem:[#allocation5 + $0xd0] sm:$0xff] %vm2407_vm15, %v7100_v50  ;;  %vm2324_vm1 = vcmp.ge.f32.partialorder %v2218_v61, 0.0  ;;  %v2356_v3 = vmul.f32 0.1, %v2218_v61  ;;  %3692 = vst.msk [vmem:[#allocation5 + $0xe8] sm:$0xff] %vm2407_vm15, %v7115_v63 }
 0x335   : > { %vm2323_vm2 = vcmp.ge.f32.partialorder %v2213_v52, 0.0  ;;  %v2355_v45 = vmul.f32 0.1, %v2213_v52 }
 0x336   : > { %v2388_v21 = vsel %vm2324_vm1, %v2218_v61, %v2356_v3 }
 0x337   : > { %2477 = vst.msk [vmem:[#allocation3 + $0xb1] sm:$0xff] %vm2407_vm15, %v2388_v21  ;;  %v2387_v25 = vsel %vm2323_vm2, %v2213_v52, %v2355_v45  ;;  %3394 = vrot.lane.b32.xlu1 %v6935_v1, %s5062_s12  ;;  %3264 = vrot.lane.b32.xlu0 %v6889_v56, %s5058_s11 }
 0x338   : > { %2476 = vst.msk [vmem:[#allocation3 + $0xa9] sm:$0xff] %vm2407_vm15, %v2387_v25 }
 0x33b   : > { %3528 = vrot.lane.b32.xlu1 %v6952_v48, %s5064_s19  ;;  %2929 = vrot.lane.b32.xlu0 %v6811_v36, %s5062_s12 }
 0x33e   : > { %v2519_v47 = vld [vmem:[#allocation3 + $0xb8] sm:$0x3] }
 0x33f   : > { %3266 = vrot.lane.b32.xlu1 %v6966_v31, %s5058_s11  ;;  %3060 = vrot.lane.b32.xlu0 %v6860_v42, %s5064_s19  ;;  %v7142_v46 = vld [vmem:[#allocation3 + $0xa8] sm:$0xff]  ;;  %v7144_v2 = vld [vmem:[#allocation3 + $0xb0] sm:$0xff]  ;;  %v2668_v18 = vrot.slane %v2519_v47, 1  ;;  %v2877_v4 = vrot.slane %v2519_v47, 2 }
 0x340   : > { %2564 = vst.msk [vmem:[#allocation5 + $0x150] sm:$0xff] %vm2407_vm15, %v7142_v46  ;;  %v2665_v48 = vrot.slane %v7142_v46, 1  ;;  %v2666_v24 = vrot.slane %v7144_v2, 1  ;;  %2565 = vst.msk [vmem:[#allocation5 + $0x168] sm:$0xff] %vm2407_vm15, %v7144_v2  ;;  %v2874_v29 = vrot.slane %v7142_v46, 2  ;;  %v2875_v40 = vrot.slane %v7144_v2, 2 }
 0x341   : > { %v4835_v39 = vpop.f32.mrb[14].mxu0 }
 0x342   : > { %v2228_v19 = vadd.f32 %v4835_v39, %v6745_v59  ;;  %v2222_v34 = vpop.f32.mrb[15].mxu0  ;;  %v7156_v58 = vsel %vm721_vm3, %v2665_v48, %v2666_v24  ;;  %v7159_v38 = vsel %vm721_vm3, %v2666_v24, %v2668_v18  ;;  %v7162_v35 = vsel %vm931_vm4, %v2874_v29, %v2875_v40 }
 0x343   : > { %v2223_v6 = vadd.f32 %v6745_v59, %v2222_v34  ;;  %2931 = vrot.lane.b32.xlu1 %v6903_v32, %s5062_s12  ;;  %3396 = vrot.lane.b32.xlu0 %v7003_v11, %s5062_s12  ;;  %3229 = vst.msk [vmem:[#allocation5 + $0x128] sm:$0xff] %vm2407_vm15, %v7156_v58  ;;  %3230 = vst.msk [vmem:[#allocation5 + $0x140] sm:$0xff] %vm2407_vm15, %v7159_v38  ;;  %v7176_v23 = vsel %vm931_vm4, %v2875_v40, %v2877_v4 }
 0x344   : > { %3693 = vst.msk [vmem:[#allocation5 + $0x100] sm:$0xff] %vm2407_vm15, %v7162_v35  ;;  %vm2326_vm5 = vcmp.ge.f32.partialorder %v2228_v19, 0.0  ;;  %v2358_v5 = vmul.f32 0.1, %v2228_v19  ;;  %3694 = vst.msk [vmem:[#allocation5 + $0x118] sm:$0xff] %vm2407_vm15, %v7176_v23 }
 0x345   : > { %vm2325_vm6 = vcmp.ge.f32.partialorder %v2223_v6, 0.0  ;;  %v2357_v26 = vmul.f32 0.1, %v2223_v6 }
 0x346   : > { %v2390_v61 = vsel %vm2326_vm5, %v2228_v19, %v2358_v5  ;;  %vm3015_vm5 = vcmask 785920  }
 0x347   : > { %2479 = vst.msk [vmem:[#allocation3 + $0xc9] sm:$0xff] %vm2407_vm15, %v2390_v61  ;;  %v2389_v44 = vsel %vm2325_vm6, %v2223_v6, %v2357_v26  ;;  %3062 = vrot.lane.b32.xlu1 %v6937_v27, %s5064_s19  ;;  %3530 = vrot.lane.b32.xlu0 %v7026_v22, %s5064_s19  ;;  %vm3146_vm6 = vcmask 1048320  }
 0x348   : > { %2478 = vst.msk [vmem:[#allocation3 + $0xc1] sm:$0xff] %vm2407_vm15, %v2389_v44 }
 0x34b   : > { %3398 = vrot.lane.b32.xlu1 %v7001_v37, %s5062_s12  ;;  %3268 = vrot.lane.b32.xlu0 %v6969_v9, %s5058_s11 }
 0x34e   : > { %v2522_v52 = vld [vmem:[#allocation3 + $0xd0] sm:$0x3] }
 0x34f   : > { %3532 = vrot.lane.b32.xlu1 %v7023_v16, %s5064_s19  ;;  %2933 = vrot.lane.b32.xlu0 %v6889_v56, %s5062_s12  ;;  %v7194_v30 = vld [vmem:[#allocation3 + $0xc0] sm:$0xff]  ;;  %v7196_v3 = vld [vmem:[#allocation3 + $0xc8] sm:$0xff]  ;;  %v2673_v22 = vrot.slane %v2522_v52, 1  ;;  %v2882_v45 = vrot.slane %v2522_v52, 2 }
 0x350   : > { %2566 = vst.msk [vmem:[#allocation5 + $0x180] sm:$0xff] %vm2407_vm15, %v7194_v30  ;;  %v2670_v60 = vrot.slane %v7194_v30, 1  ;;  %v2671_v62 = vrot.slane %v7196_v3, 1  ;;  %2567 = vst.msk [vmem:[#allocation5 + $0x198] sm:$0xff] %vm2407_vm15, %v7196_v3  ;;  %v2879_v16 = vrot.slane %v7194_v30, 2  ;;  %v2880_v56 = vrot.slane %v7196_v3, 2 }
 0x351   : > { %v4838_v21 = vpop.f32.mrb[16].mxu0 }
 0x352   : > { %v2238_v43 = vadd.f32 %v4838_v21, %v6745_v59  ;;  %v2232_v25 = vpop.f32.mrb[17].mxu0  ;;  %v7208_v47 = vsel %vm721_vm3, %v2670_v60, %v2671_v62  ;;  %v7211_v18 = vsel %vm721_vm3, %v2671_v62, %v2673_v22  ;;  %v7214_v4 = vsel %vm931_vm4, %v2879_v16, %v2880_v56 }
 0x353   : > { %v2233_v48 = vadd.f32 %v6745_v59, %v2232_v25  ;;  %3270 = vrot.lane.b32.xlu1 %v7029_v14, %s5058_s11  ;;  %3064 = vrot.lane.b32.xlu0 %v6935_v1, %s5064_s19  ;;  %3231 = vst.msk [vmem:[#allocation5 + $0x158] sm:$0xff] %vm2407_vm15, %v7208_v47  ;;  %3232 = vst.msk [vmem:[#allocation5 + $0x170] sm:$0xff] %vm2407_vm15, %v7211_v18  ;;  %v7228_v24 = vsel %vm931_vm4, %v2880_v56, %v2882_v45 }
 0x354   : > { %3695 = vst.msk [vmem:[#allocation5 + $0x130] sm:$0xff] %vm2407_vm15, %v7214_v4  ;;  %vm2328_vm7 = vcmp.ge.f32.partialorder %v2238_v43, 0.0  ;;  %v2360_v29 = vmul.f32 0.1, %v2238_v43  ;;  %3696 = vst.msk [vmem:[#allocation5 + $0x148] sm:$0xff] %vm2407_vm15, %v7228_v24 }
 0x355   : > { %vm2327_vm8 = vcmp.ge.f32.partialorder %v2233_v48, 0.0  ;;  %v2359_v40 = vmul.f32 0.1, %v2233_v48 }
 0x356   : > { %v2392_v1 = vsel %vm2328_vm7, %v2238_v43, %v2360_v29 }
 0x357   : > { %2481 = vst.msk [vmem:[#allocation3 + $0xe1] sm:$0xff] %vm2407_vm15, %v2392_v1  ;;  %v2391_v39 = vsel %vm2327_vm8, %v2233_v48, %v2359_v40  ;;  %2935 = vrot.lane.b32.xlu1 %v6966_v31, %s5062_s12  ;;  %3400 = vrot.lane.b32.xlu0 %v7075_v41, %s5062_s12  ;;  %v2844_v1 = vrot.slane %v6763_v8, 2 }
 0x358   : > { %v2717_v19 = vpop.permute.xlu1 %2716  ;;  %v2715_v34 = vpop.permute.xlu0 %2714  ;;  %2480 = vst.msk [vmem:[#allocation3 + $0xd9] sm:$0xff] %vm2407_vm15, %v2391_v39  ;;  %v2845_v39 = vrot.slane %v6761_v0, 2 }
 0x359   : > { %2810 = vst.msk [vmem:[#allocation5 + $0x48] sm:$0xff] %vm2806_vm9, %v2717_v19  ;;  %2809 = vst.msk [vmem:[#allocation5 + $0x30] sm:$0xff] %vm2806_vm9, %v2715_v34 }
 0x35b   : > { %3066 = vrot.lane.b32.xlu1 %v7003_v11, %s5064_s19  ;;  %3534 = vrot.lane.b32.xlu0 %v7097_v57, %s5064_s19 }
 0x35e   : > { %v2525_v6 = vld [vmem:[#allocation3 + $0xe8] sm:$0x3] }
 0x35f   : > { %3402 = vrot.lane.b32.xlu1 %v7073_v17, %s5062_s12  ;;  %3272 = vrot.lane.b32.xlu0 %v7043_v33, %s5058_s11  ;;  %v7248_v31 = vld [vmem:[#allocation3 + $0xd8] sm:$0xff]  ;;  %v7250_v5 = vld [vmem:[#allocation3 + $0xe0] sm:$0xff]  ;;  %v2678_v26 = vrot.slane %v2525_v6, 1  ;;  %v2887_v61 = vrot.slane %v2525_v6, 2 }
 0x360   : > { %2568 = vst.msk [vmem:[#allocation5 + $0x1b0] sm:$0xff] %vm2407_vm15, %v7248_v31  ;;  %v2675_v11 = vrot.slane %v7248_v31, 1  ;;  %v2676_v57 = vrot.slane %v7250_v5, 1  ;;  %2569 = vst.msk [vmem:[#allocation5 + $0x1c8] sm:$0xff] %vm2407_vm15, %v7250_v5  ;;  %v2884_v52 = vrot.slane %v7248_v31, 2  ;;  %v2885_v22 = vrot.slane %v7250_v5, 2 }
 0x361   : > { %v4841_v44 = vpop.f32.mrb[18].mxu0 }
 0x362   : > { %v2248_v45 = vadd.f32 %v4841_v44, %v6745_v59  ;;  %v2242_v60 = vpop.f32.mrb[19].mxu0  ;;  %v7263_v16 = vsel %vm721_vm3, %v2675_v11, %v2676_v57  ;;  %v7266_v56 = vsel %vm721_vm3, %v2676_v57, %v2678_v26  ;;  %v7269_v21 = vsel %vm931_vm4, %v2884_v52, %v2885_v22 }
 0x363   : > { %v2243_v62 = vadd.f32 %v6745_v59, %v2242_v60  ;;  %3536 = vrot.lane.b32.xlu1 %v7094_v55, %s5064_s19  ;;  %2937 = vrot.lane.b32.xlu0 %v6969_v9, %s5062_s12  ;;  %3233 = vst.msk [vmem:[#allocation5 + $0x188] sm:$0xff] %vm2407_vm15, %v7263_v16  ;;  %3234 = vst.msk [vmem:[#allocation5 + $0x1a0] sm:$0xff] %vm2407_vm15, %v7266_v56  ;;  %v7282_v59 = vsel %vm931_vm4, %v2885_v22, %v2887_v61  ;;  %v2839_v11 = vrot.slane %v6624_v7, 2 }
 0x364   : > { %vm2330_vm10 = vcmp.ge.f32.partialorder %v2248_v45, 0.0  ;;  %v2362_v43 = vmul.f32 0.1, %v2248_v45  ;;  %3697 = vst.msk [vmem:[#allocation5 + $0x160] sm:$0xff] %vm2407_vm15, %v7269_v21  ;;  %3698 = vst.msk [vmem:[#allocation5 + $0x178] sm:$0xff] %vm2407_vm15, %v7282_v59  ;;  %v7333_v60 = vsel %vm931_vm4, %v2844_v1, %v2845_v39 }
 0x365   : > { %vm2329_vm11 = vcmp.ge.f32.partialorder %v2243_v62, 0.0  ;;  %v2361_v25 = vmul.f32 0.1, %v2243_v62 }
 0x366   : > { %v2394_v55 = vsel %vm2330_vm10, %v2248_v45, %v2362_v43  ;;  %v7353_v43 = vld [vmem:[%s8276_s3] ss:$0 sm:$0xff] }
 0x367   : > { %2483 = vst.msk [vmem:[#allocation3 + $0xf9] sm:$0xff] %vm2407_vm15, %v2394_v55  ;;  %v2393_v9 = vsel %vm2329_vm11, %v2243_v62, %v2361_v25  ;;  %3274 = vrot.lane.b32.xlu1 %v7100_v50, %s5058_s11  ;;  %3068 = vrot.lane.b32.xlu0 %v7001_v37, %s5064_s19 }
 0x368   : > { %2482 = vst.msk [vmem:[#allocation3 + $0xf1] sm:$0xff] %vm2407_vm15, %v2393_v9  ;;  %v2721_v48 = vpop.permute.xlu1 %2720  ;;  %v2719_v29 = vpop.permute.xlu0 %2718 }
 0x369   : > { %2812 = vst.msk [vmem:[#allocation5 + $0x78] sm:$0xff] %vm2806_vm9, %v2721_v48  ;;  %2811 = vst.msk [vmem:[#allocation5 + $0x60] sm:$0xff] %vm2806_vm9, %v2719_v29 }
 0x36b   : > { %2939 = vrot.lane.b32.xlu1 %v7029_v14, %s5062_s12  ;;  %3404 = vrot.lane.b32.xlu0 %v7142_v46, %s5062_s12 }
 0x36e   : > { %v2528_v40 = vld [vmem:[#allocation3 + $0x100] sm:$0x3] }
 0x36f   : > { %v7300_v19 = vld [vmem:[#allocation3 + $0xf0] sm:$0xff]  ;;  %v7302_v37 = vld [vmem:[#allocation3 + $0xf8] sm:$0xff]  ;;  %v2683_v34 = vrot.slane %v2528_v40, 1  ;;  %v2892_v6 = vrot.slane %v2528_v40, 2  ;;  %3070 = vrot.lane.b32.xlu1 %v7075_v41, %s5064_s19  ;;  %3538 = vrot.lane.b32.xlu0 %v7156_v58, %s5064_s19  ;;  %v2840_v41 = vrot.slane %v6622_v28, 2 }
 0x370   : > { %2570 = vst.msk [vmem:[#allocation5 + $0x1e0] sm:$0xff] %vm2407_vm15, %v7300_v19  ;;  %v2680_v14 = vrot.slane %v7300_v19, 1  ;;  %v2681_v26 = vrot.slane %v7302_v37, 1  ;;  %2571 = vst.msk [vmem:[#allocation5 + $0x1f8] sm:$0xff] %vm2407_vm15, %v7302_v37  ;;  %v2889_v61 = vrot.slane %v7300_v19, 2  ;;  %v2890_v44 = vrot.slane %v7302_v37, 2 }
 0x371   : > { %v2841_v62 = vsel %vm931_vm4, %v2839_v11, %v2840_v41 }
 0x372   : > { %v7319_v57 = vsel %vm721_vm3, %v2680_v14, %v2681_v26  ;;  %v7322_v52 = vsel %vm721_vm3, %v2681_v26, %v2683_v34  ;;  %v7325_v22 = vsel %vm931_vm4, %v2889_v61, %v2890_v44  ;;  %v7328_v45 = vsel %vm931_vm4, %v2890_v44, %v2892_v6  ;;  %v5043_v26 = vld [vmem:[#allocation3 + $0x28] sm:$0x3] }
 0x373   : > { %3235 = vst.msk [vmem:[#allocation5 + $0x1b8] sm:$0xff] %vm2407_vm15, %v7319_v57  ;;  %3236 = vst.msk [vmem:[#allocation5 + $0x1d0] sm:$0xff] %vm2407_vm15, %v7322_v52  ;;  %3276 = vrot.lane.b32.xlu1 %v7115_v63, %s5058_s11  ;;  %3254 = vrot.lane.b32.xlu0 %v7333_v60, %s5058_s11  ;;  %v2847_v61 = vrot.slane %v5043_v26, 2 }
 0x374   : > { %3699 = vst.msk [vmem:[#allocation5 + $0x190] sm:$0xff] %vm2407_vm15, %v7325_v22  ;;  %3700 = vst.msk [vmem:[#allocation5 + $0x1a8] sm:$0xff] %vm2407_vm15, %v7328_v45 }
 0x375   : > { %v4844_v7 = vpop.f32.mrb[20].mxu0 }
 0x376   : > { %v2258_v25 = vadd.f32 %v7353_v43, %v4844_v7  ;;  %v2252_v55 = vpop.f32.mrb[21].mxu0 }
 0x377   : > { %v2253_v9 = vadd.f32 %v7353_v43, %v2252_v55  ;;  %2919 = vrot.lane.b32.xlu1 %v2841_v62, %s5062_s12  ;;  %3384 = vrot.lane.b32.xlu0 %v6792_v54, %s5062_s12  ;;  %v5044_v55 = vld [vmem:[#allocation3 + $0x10] sm:$0x3] }
 0x378   : > { %vm2332_vm12 = vcmp.ge.f32.partialorder %v2258_v25, 0.0  ;;  %v2364_v48 = vmul.f32 0.1, %v2258_v25  ;;  %v2725_v29 = vpop.permute.xlu1 %2724  ;;  %v2723_v40 = vpop.permute.xlu0 %2722 }
 0x379   : > { %vm2331_vm13 = vcmp.ge.f32.partialorder %v2253_v9, 0.0  ;;  %v2363_v1 = vmul.f32 0.1, %v2253_v9  ;;  %2814 = vst.msk [vmem:[#allocation5 + $0xa8] sm:$0xff] %vm2806_vm9, %v2725_v29  ;;  %2813 = vst.msk [vmem:[#allocation5 + $0x90] sm:$0xff] %vm2806_vm9, %v2723_v40 }
 0x37a   : > { %v2396_v34 = vsel %vm2332_vm12, %v2258_v25, %v2364_v48 }
 0x37b   : > { %2485 = vst.msk [vmem:[#allocation3 + $0x111] sm:$0xff] %vm2407_vm15, %v2396_v34  ;;  %v2395_v6 = vsel %vm2331_vm13, %v2253_v9, %v2363_v1  ;;  %3518 = vrot.lane.b32.xlu1 %v6808_v51, %s5064_s19  ;;  %3406 = vrot.lane.b32.xlu0 %v7144_v2, %s5062_s12  ;;  %v2842_v9 = vrot.slane %v5044_v55, 2  ;;  %v7403_v1 = vsel %vm931_vm4, %v2845_v39, %v2847_v61 }
 0x37c   : > { %2484 = vst.msk [vmem:[#allocation3 + $0x109] sm:$0xff] %vm2407_vm15, %v2395_v6 }
 0x37f   : > { %3050 = vrot.lane.b32.xlu1 %v6763_v8, %s5064_s19  ;;  %2941 = vrot.lane.b32.xlu0 %v7043_v33, %s5062_s12 }
 0x382   : > { %v2531_v14 = vld [vmem:[#allocation3 + $0x118] sm:$0x3] }
 0x383   : > { %v7372_v44 = vld [vmem:[#allocation3 + $0x108] sm:$0xff]  ;;  %v7374_v11 = vld [vmem:[#allocation3 + $0x110] sm:$0xff]  ;;  %v2688_v7 = vrot.slane %v2531_v14, 1  ;;  %v2897_v62 = vrot.slane %v2531_v14, 2  ;;  %3072 = vrot.lane.b32.xlu1 %v7073_v17, %s5064_s19  ;;  %3540 = vrot.lane.b32.xlu0 %v7159_v38, %s5064_s19  ;;  %v2843_v14 = vsel %vm931_vm4, %v2840_v41, %v2842_v9 }
 0x384   : > { %2572 = vst.msk [vmem:[#allocation5 + $0x210] sm:$0xff] %vm2407_vm15, %v7372_v44  ;;  %v2685_v8 = vrot.slane %v7372_v44, 1  ;;  %v2686_v51 = vrot.slane %v7374_v11, 1  ;;  %2573 = vst.msk [vmem:[#allocation5 + $0x228] sm:$0xff] %vm2407_vm15, %v7374_v11  ;;  %v2894_v33 = vrot.slane %v7372_v44, 2  ;;  %v2895_v25 = vrot.slane %v7374_v11, 2 }
 0x386   : > { %v7389_v17 = vsel %vm721_vm3, %v2685_v8, %v2686_v51  ;;  %v7392_v48 = vsel %vm721_vm3, %v2686_v51, %v2688_v7  ;;  %v7395_v29 = vsel %vm931_vm4, %v2894_v33, %v2895_v25  ;;  %v7398_v40 = vsel %vm931_vm4, %v2895_v25, %v2897_v62 }
 0x387   : > { %3237 = vst.msk [vmem:[#allocation5 + $0x1e8] sm:$0xff] %vm2407_vm15, %v7389_v17  ;;  %3238 = vst.msk [vmem:[#allocation5 + $0x200] sm:$0xff] %vm2407_vm15, %v7392_v48  ;;  %3278 = vrot.lane.b32.xlu1 %v7162_v35, %s5058_s11  ;;  %3256 = vrot.lane.b32.xlu0 %v7403_v1, %s5058_s11 }
 0x388   : > { %3701 = vst.msk [vmem:[#allocation5 + $0x1c0] sm:$0xff] %vm2407_vm15, %v7395_v29  ;;  %3702 = vst.msk [vmem:[#allocation5 + $0x1d8] sm:$0xff] %vm2407_vm15, %v7398_v40  ;;  %v2729_v39 = vpop.permute.xlu1 %2728  ;;  %v2727_v34 = vpop.permute.xlu0 %2726 }
 0x389   : > { %2816 = vst.msk [vmem:[#allocation5 + $0xd8] sm:$0xff] %vm2806_vm9, %v2729_v39  ;;  %2815 = vst.msk [vmem:[#allocation5 + $0xc0] sm:$0xff] %vm2806_vm9, %v2727_v34  ;;  %v4847_v6 = vpop.f32.mrb[22].mxu0 }
 0x38a   : > { %v2268_v26 = vadd.f32 %v7353_v43, %v4847_v6  ;;  %v2262_v61 = vpop.f32.mrb[23].mxu0 }
 0x38b   : > { %v2263_v7 = vadd.f32 %v7353_v43, %v2262_v61  ;;  %2921 = vrot.lane.b32.xlu1 %v2843_v14, %s5062_s12  ;;  %3386 = vrot.lane.b32.xlu0 %v6790_v15, %s5062_s12 }
 0x38c   : > { %vm2334_vm14 = vcmp.ge.f32.partialorder %v2268_v26, 0.0  ;;  %v2366_v62 = vmul.f32 0.1, %v2268_v26 }
 0x38d   : > { %vm2333_vm0 = vcmp.ge.f32.partialorder %v2263_v7, 0.0  ;;  %v2365_v8 = vmul.f32 0.1, %v2263_v7 }
 0x38e   : > { %v2398_v51 = vsel %vm2334_vm14, %v2268_v26, %v2366_v62 }
 0x38f   : > { %2487 = vst.msk [vmem:[#allocation3 + $0x129] sm:$0xff] %vm2407_vm15, %v2398_v51  ;;  %v2397_v28 = vsel %vm2333_vm0, %v2263_v7, %v2365_v8  ;;  %3520 = vrot.lane.b32.xlu1 %v6805_v20, %s5064_s19  ;;  %3408 = vrot.lane.b32.xlu0 %v7194_v30, %s5062_s12 }
 0x390   : > { %2486 = vst.msk [vmem:[#allocation3 + $0x121] sm:$0xff] %vm2407_vm15, %v2397_v28 }
 0x393   : > { %3052 = vrot.lane.b32.xlu1 %v6761_v0, %s5064_s19  ;;  %2943 = vrot.lane.b32.xlu0 %v7100_v50, %s5062_s12 }
 0x395   : > { %v2733_v41 = vpop.permute.xlu1 %2732  ;;  %v2731_v33 = vpop.permute.xlu0 %2730 }
 0x396   : > { %v2534_v25 = vld [vmem:[#allocation3 + $0x130] sm:$0x3]  ;;  %2818 = vst.msk [vmem:[#allocation5 + $0x108] sm:$0xff] %vm2806_vm9, %v2733_v41  ;;  %2817 = vst.msk [vmem:[#allocation5 + $0xf0] sm:$0xff] %vm2806_vm9, %v2731_v33 }
 0x397   : > { %v7439_v55 = vld [vmem:[#allocation3 + $0x120] sm:$0xff]  ;;  %v7441_v9 = vld [vmem:[#allocation3 + $0x128] sm:$0xff]  ;;  %v2693_v20 = vrot.slane %v2534_v25, 1  ;;  %v2902_v39 = vrot.slane %v2534_v25, 2  ;;  %3074 = vrot.lane.b32.xlu1 %v7142_v46, %s5064_s19  ;;  %3542 = vrot.lane.b32.xlu0 %v7208_v47, %s5064_s19 }
 0x398   : > { %2574 = vst.msk [vmem:[#allocation5 + $0x240] sm:$0xff] %vm2407_vm15, %v7439_v55  ;;  %v2690_v0 = vrot.slane %v7439_v55, 1  ;;  %v2691_v50 = vrot.slane %v7441_v9, 1  ;;  %2575 = vst.msk [vmem:[#allocation5 + $0x258] sm:$0xff] %vm2407_vm15, %v7441_v9  ;;  %v2899_v34 = vrot.slane %v7439_v55, 2  ;;  %v2900_v6 = vrot.slane %v7441_v9, 2 }
 0x39a   : > { %v7456_v14 = vsel %vm721_vm3, %v2690_v0, %v2691_v50  ;;  %v7459_v46 = vsel %vm721_vm3, %v2691_v50, %v2693_v20  ;;  %v7462_v26 = vsel %vm931_vm4, %v2899_v34, %v2900_v6  ;;  %v7465_v61 = vsel %vm931_vm4, %v2900_v6, %v2902_v39 }
 0x39b   : > { %3239 = vst.msk [vmem:[#allocation5 + $0x218] sm:$0xff] %vm2407_vm15, %v7456_v14  ;;  %3240 = vst.msk [vmem:[#allocation5 + $0x230] sm:$0xff] %vm2407_vm15, %v7459_v46  ;;  %3280 = vrot.lane.b32.xlu1 %v7176_v23, %s5058_s11  ;;  %3258 = vrot.lane.b32.xlu0 %v6827_v13, %s5058_s11 }
 0x39c   : > { %3703 = vst.msk [vmem:[#allocation5 + $0x1f0] sm:$0xff] %vm2407_vm15, %v7462_v26  ;;  %3704 = vst.msk [vmem:[#allocation5 + $0x208] sm:$0xff] %vm2407_vm15, %v7465_v61 }
 0x39d   : > { %v4850_v7 = vpop.f32.mrb[24].mxu0 }
 0x39e   : > { %v2278_v62 = vadd.f32 %v7353_v43, %v4850_v7  ;;  %v2272_v8 = vpop.f32.mrb[25].mxu0 }
 0x39f   : > { %v2273_v51 = vadd.f32 %v7353_v43, %v2272_v8  ;;  %2923 = vrot.lane.b32.xlu1 %v7333_v60, %s5062_s12  ;;  %3388 = vrot.lane.b32.xlu0 %v6862_v12, %s5062_s12 }
 0x3a0   : > { %vm2336_vm1 = vcmp.ge.f32.partialorder %v2278_v62, 0.0  ;;  %v2368_v28 = vmul.f32 0.1, %v2278_v62 }
 0x3a1   : > { %vm2335_vm2 = vcmp.ge.f32.partialorder %v2273_v51, 0.0  ;;  %v2367_v41 = vmul.f32 0.1, %v2273_v51 }
 0x3a2   : > { %v2400_v33 = vsel %vm2336_vm1, %v2278_v62, %v2368_v28 }
 0x3a3   : > { %2489 = vst.msk [vmem:[#allocation3 + $0x141] sm:$0xff] %vm2407_vm15, %v2400_v33  ;;  %v2399_v25 = vsel %vm2335_vm2, %v2273_v51, %v2367_v41  ;;  %3522 = vrot.lane.b32.xlu1 %v6886_v53, %s5064_s19  ;;  %3410 = vrot.lane.b32.xlu0 %v7196_v3, %s5062_s12 }
 0x3a4   : > { %2488 = vst.msk [vmem:[#allocation3 + $0x139] sm:$0xff] %vm2407_vm15, %v2399_v25 }
 0x3a5   : > { %v2737_v20 = vpop.permute.xlu1 %2736  ;;  %v2735_v39 = vpop.permute.xlu0 %2734 }
 0x3a6   : > { %2820 = vst.msk [vmem:[#allocation5 + $0x138] sm:$0xff] %vm2806_vm9, %v2737_v20  ;;  %2819 = vst.msk [vmem:[#allocation5 + $0x120] sm:$0xff] %vm2806_vm9, %v2735_v39 }
 0x3a7   : > { %3054 = vrot.lane.b32.xlu1 %v6792_v54, %s5064_s19  ;;  %2945 = vrot.lane.b32.xlu0 %v7115_v63, %s5062_s12 }
 0x3a9   : > { %v3395_v60 = vpop.permute.xlu1 %3394  ;;  %v3265_v0 = vpop.permute.xlu0 %3264 }
 0x3aa   : > { %v2537_v50 = vld [vmem:[#allocation3 + $0x148] sm:$0x3]  ;;  %3355 = vst.msk [vmem:[#allocation5 + $0x80] sm:$0xff] %vm2806_vm9, %v3265_v0 }
 0x3ab   : > { %v7498_v53 = vld [vmem:[#allocation3 + $0x138] sm:$0xff]  ;;  %v7500_v34 = vld [vmem:[#allocation3 + $0x140] sm:$0xff]  ;;  %v2698_v6 = vrot.slane %v2537_v50, 1  ;;  %v2907_v7 = vrot.slane %v2537_v50, 2  ;;  %3076 = vrot.lane.b32.xlu1 %v7144_v2, %s5064_s19  ;;  %3544 = vrot.lane.b32.xlu0 %v7211_v18, %s5064_s19  ;;  %3485 = vst.msk [vmem:[#allocation5 + $0x80] sm:$0xff] %vm3015_vm5, %v3395_v60 }
 0x3ac   : > { %2576 = vst.msk [vmem:[#allocation5 + $0x270] sm:$0xff] %vm2407_vm15, %v7498_v53  ;;  %v2695_v54 = vrot.slane %v7498_v53, 1  ;;  %v2696_v63 = vrot.slane %v7500_v34, 1  ;;  %2577 = vst.msk [vmem:[#allocation5 + $0x288] sm:$0xff] %vm2407_vm15, %v7500_v34  ;;  %v2904_v62 = vrot.slane %v7498_v53, 2  ;;  %v2905_v8 = vrot.slane %v7500_v34, 2 }
 0x3ad   : > { %v3529_v2 = vpop.permute.xlu1 %3528  ;;  %v2930_v51 = vpop.permute.xlu0 %2929 }
 0x3ae   : > { %v7516_v28 = vsel %vm721_vm3, %v2695_v54, %v2696_v63  ;;  %v7519_v41 = vsel %vm721_vm3, %v2696_v63, %v2698_v6  ;;  %v7522_v33 = vsel %vm931_vm4, %v2904_v62, %v2905_v8  ;;  %v7525_v25 = vsel %vm931_vm4, %v2905_v8, %v2907_v7  ;;  %3619 = vst.msk [vmem:[#allocation5 + $0x80] sm:$0xff] %vm3146_vm6, %v3529_v2 }
 0x3af   : > { %3021 = vst.msk [vmem:[#allocation5 + $0x78] sm:$0xff] %vm3015_vm5, %v2930_v51  ;;  %3282 = vrot.lane.b32.xlu1 %v7214_v4, %s5058_s11  ;;  %3260 = vrot.lane.b32.xlu0 %v6811_v36, %s5058_s11 }
 0x3b0   : > { %3241 = vst.msk [vmem:[#allocation5 + $0x248] sm:$0xff] %vm2407_vm15, %v7516_v28  ;;  %3242 = vst.msk [vmem:[#allocation5 + $0x260] sm:$0xff] %vm2407_vm15, %v7519_v41 }
 0x3b1   : > { %3705 = vst.msk [vmem:[#allocation5 + $0x220] sm:$0xff] %vm2407_vm15, %v7522_v33  ;;  %3706 = vst.msk [vmem:[#allocation5 + $0x238] sm:$0xff] %vm2407_vm15, %v7525_v25  ;;  %v4853_v20 = vpop.f32.mrb[26].mxu0  ;;  %v3267_v39 = vpop.permute.xlu1 %3266 }
 0x3b2   : > { %v2288_v60 = vadd.f32 %v7353_v43, %v4853_v20  ;;  %3356 = vst.msk [vmem:[#allocation5 + $0x98] sm:$0xff] %vm2806_vm9, %v3267_v39  ;;  %v3061_v0 = vpop.permute.xlu0 %3060  ;;  %v2282_v50 = vpop.f32.mrb[27].mxu0 }
 0x3b3   : > { %3152 = vst.msk [vmem:[#allocation5 + $0x78] sm:$0xff] %vm3146_vm6, %v3061_v0  ;;  %v2283_v6 = vadd.f32 %v7353_v43, %v2282_v50  ;;  %2738 = vrot.lane.b32.xlu1 %v7156_v58, %s5058_s11  ;;  %3390 = vrot.lane.b32.xlu0 %v6860_v42, %s5062_s12 }
 0x3b4   : > { %vm2338_vm7 = vcmp.ge.f32.partialorder %v2288_v60, 0.0  ;;  %v2370_v36 = vmul.f32 0.1, %v2288_v60 }
 0x3b5   : > { %vm2337_vm8 = vcmp.ge.f32.partialorder %v2283_v6, 0.0  ;;  %v2369_v7 = vmul.f32 0.1, %v2283_v6  ;;  %v2932_v54 = vpop.permute.xlu1 %2931  ;;  %v3731_v63 = vld [vmem:[#allocation5 + $0x80] sm:$0xff] }
 0x3b6   : > { %v2402_v62 = vsel %vm2338_vm7, %v2288_v60, %v2370_v36  ;;  %3022 = vst.msk [vmem:[#allocation5 + $0x90] sm:$0xff] %vm3015_vm5, %v2932_v54  ;;  %v3397_v8 = vpop.permute.xlu0 %3396  ;;  %4039 = vmatprep.mubr.f32.mxu1 %v3731_v63 }
 0x3b7   : > { %2491 = vst.msk [vmem:[#allocation3 + $0x159] sm:$0xff] %vm2407_vm15, %v2402_v62  ;;  %v2401_v2 = vsel %vm2337_vm8, %v2283_v6, %v2369_v7  ;;  %3412 = vrot.lane.b32.xlu1 %v7248_v31, %s5062_s12  ;;  %2925 = vrot.lane.b32.xlu0 %v7403_v1, %s5062_s12 }
 0x3b8   : > { %3486 = vst.msk [vmem:[#allocation5 + $0x98] sm:$0xff] %vm3015_vm5, %v3397_v8 }
 0x3b9   : > { %2490 = vst.msk [vmem:[#allocation3 + $0x151] sm:$0xff] %vm2407_vm15, %v2401_v2  ;;  %v3063_v42 = vpop.permute.xlu1 %3062 }
 0x3ba   : > { %3153 = vst.msk [vmem:[#allocation5 + $0x90] sm:$0xff] %vm3146_vm6, %v3063_v42  ;;  %v3531_v58 = vpop.permute.xlu0 %3530  ;;  %v3730_v51 = vld [vmem:[#allocation5 + $0x78] sm:$0xff] }
 0x3bb   : > { %3620 = vst.msk [vmem:[#allocation5 + $0x98] sm:$0xff] %vm3146_vm6, %v3531_v58  ;;  %4040 = vmatmul.mubr.f32.vlgmr.msra.gmra.mrb[0].mxu1 %v3730_v51  ;;  %2947 = vrot.lane.b32.xlu1 %v7162_v35, %s5062_s12 }
 0x3bc   : > { %3524 = vrot.lane.b32.xlu0 %v6883_v49, %s5064_s19 }
 0x3bd   : > { %v3399_v20 = vpop.permute.xlu1 %3398 }
 0x3be   : > { %v3269_v39 = vpop.permute.xlu0 %3268  ;;  %v2540_v60 = vld [vmem:[#allocation3 + $0x160] sm:$0x3] }
 0x3bf   : > { %3357 = vst.msk [vmem:[#allocation5 + $0xb0] sm:$0xff] %vm2806_vm9, %v3269_v39  ;;  %3546 = vrot.lane.b32.xlu1 %v7263_v16, %s5064_s19  ;;  %v2703_v50 = vrot.slane %v2540_v60, 1  ;;  %v2912_v6 = vrot.slane %v2540_v60, 2 }
 0x3c0   : > { %v7566_v1 = vld [vmem:[#allocation3 + $0x150] sm:$0xff]  ;;  %v7568_v0 = vld [vmem:[#allocation3 + $0x158] sm:$0xff]  ;;  %3487 = vst.msk [vmem:[#allocation5 + $0xb0] sm:$0xff] %vm3015_vm5, %v3399_v20  ;;  %3056 = vrot.lane.b32.xlu0 %v6790_v15, %s5064_s19 }
 0x3c1   : > { %2578 = vst.msk [vmem:[#allocation5 + $0x2a0] sm:$0xff] %vm2407_vm15, %v7566_v1  ;;  %v2700_v49 = vrot.slane %v7566_v1, 1  ;;  %v2701_v35 = vrot.slane %v7568_v0, 1  ;;  %2579 = vst.msk [vmem:[#allocation5 + $0x2b8] sm:$0xff] %vm2407_vm15, %v7568_v0  ;;  %v2909_v36 = vrot.slane %v7566_v1, 2  ;;  %v2910_v7 = vrot.slane %v7568_v0, 2  ;;  %v3533_v54 = vpop.permute.xlu1 %3532 }
 0x3c2   : > { %v3733_v63 = vld [vmem:[#allocation5 + $0x90] sm:$0xff]  ;;  %3621 = vst.msk [vmem:[#allocation5 + $0xb0] sm:$0xff] %vm3146_vm6, %v3533_v54  ;;  %v2934_v62 = vpop.permute.xlu0 %2933  ;;  %v3734_v15 = vld [vmem:[#allocation5 + $0x98] sm:$0xff] }
 0x3c3   : > { %v7583_v8 = vsel %vm721_vm3, %v2700_v49, %v2701_v35  ;;  %v7586_v2 = vsel %vm721_vm3, %v2701_v35, %v2703_v50  ;;  %v7589_v42 = vsel %vm931_vm4, %v2909_v36, %v2910_v7  ;;  %v7592_v58 = vsel %vm931_vm4, %v2910_v7, %v2912_v6  ;;  %3023 = vst.msk [vmem:[#allocation5 + $0xa8] sm:$0xff] %vm3015_vm5, %v2934_v62  ;;  %v3844_v49 = vld [vmem:[%s8277_s4 + $0x108] sm:$0xff] }
 0x3c4   : > { %4044 = vmatprep.mubr.f32.mxu1 %v3734_v15  ;;  %3262 = vrot.lane.b32.xlu1 %v6903_v32, %s5058_s11  ;;  %3243 = vst.msk [vmem:[#allocation5 + $0x278] sm:$0xff] %vm2407_vm15, %v7583_v8  ;;  %3244 = vst.msk [vmem:[#allocation5 + $0x290] sm:$0xff] %vm2407_vm15, %v7586_v2 }
 0x3c5   : > { %3707 = vst.msk [vmem:[#allocation5 + $0x250] sm:$0xff] %vm2407_vm15, %v7589_v42  ;;  %3708 = vst.msk [vmem:[#allocation5 + $0x268] sm:$0xff] %vm2407_vm15, %v7592_v58  ;;  %3078 = vrot.lane.b32.xlu0 %v7194_v30, %s5064_s19  ;;  %4045 = vmatmul.mubr.f32.gmra.mrb[2].mxu1 %v3733_v63  ;;  %v4856_v51 = vpop.f32.mrb[28].mxu0  ;;  %v3271_v20 = vpop.permute.xlu1 %3270  ;;  %v3843_v30 = vld [vmem:[%s8277_s4 + $0x100] sm:$0xff] }
 0x3c6   : > { %v2298_v32 = vadd.f32 %v7353_v43, %v4856_v51  ;;  %3358 = vst.msk [vmem:[#allocation5 + $0xc8] sm:$0xff] %vm2806_vm9, %v3271_v20  ;;  %v3065_v39 = vpop.permute.xlu0 %3064  ;;  %v2292_v60 = vpop.f32.mrb[29].mxu0  ;;  %v7621_v54 = vpack.c.bf16 %v3844_v49, %v3843_v30 }
 0x3c7   : > { %3154 = vst.msk [vmem:[#allocation5 + $0xa8] sm:$0xff] %vm3146_vm6, %v3065_v39  ;;  %v2293_v50 = vadd.f32 %v7353_v43, %v2292_v60 }
 0x3c8   : > { %3392 = vrot.lane.b32.xlu1 %v6937_v27, %s5062_s12  ;;  %vm2340_vm10 = vcmp.ge.f32.partialorder %v2298_v32, 0.0  ;;  %v2372_v6 = vmul.f32 0.1, %v2298_v32  ;;  %4981 = vmatprep.subr.bf16.mxu0 %v7621_v54 }
 0x3c9   : > { %3284 = vrot.lane.b32.xlu0 %v7228_v24, %s5058_s11  ;;  %vm2339_vm11 = vcmp.ge.f32.partialorder %v2293_v50, 0.0  ;;  %v2371_v35 = vmul.f32 0.1, %v2293_v50  ;;  %v2936_v36 = vpop.permute.xlu1 %2935  ;;  %v3737_v7 = vld [vmem:[#allocation5 + $0xb0] sm:$0xff] }
 0x3ca   : > { %v2404_v27 = vsel %vm2340_vm10, %v2298_v32, %v2372_v6  ;;  %3024 = vst.msk [vmem:[#allocation5 + $0xc0] sm:$0xff] %vm3015_vm5, %v2936_v36  ;;  %v3401_v63 = vpop.permute.xlu0 %3400  ;;  %4049 = vmatprep.mubr.f32.mxu1 %v3737_v7 }
 0x3cb   : > { %2493 = vst.msk [vmem:[#allocation3 + $0x171] sm:$0xff] %vm2407_vm15, %v2404_v27  ;;  %v2403_v62 = vsel %vm2339_vm11, %v2293_v50, %v2371_v35 }
 0x3cc   : > { %3488 = vst.msk [vmem:[#allocation5 + $0xc8] sm:$0xff] %vm3015_vm5, %v3401_v63  ;;  %2927 = vrot.lane.b32.xlu1 %v6827_v13, %s5062_s12 }
 0x3cd   : > { %2492 = vst.msk [vmem:[#allocation3 + $0x169] sm:$0xff] %vm2407_vm15, %v2403_v62  ;;  %2740 = vrot.lane.b32.xlu0 %v7159_v38, %s5058_s11  ;;  %v3067_v15 = vpop.permute.xlu1 %3066 }
 0x3ce   : > { %3155 = vst.msk [vmem:[#allocation5 + $0xc0] sm:$0xff] %vm3146_vm6, %v3067_v15  ;;  %v3535_v51 = vpop.permute.xlu0 %3534  ;;  %v3736_v20 = vld [vmem:[#allocation5 + $0xa8] sm:$0xff] }
 0x3cf   : > { %3622 = vst.msk [vmem:[#allocation5 + $0xc8] sm:$0xff] %vm3146_vm6, %v3535_v51  ;;  %4050 = vmatmul.mubr.f32.gmra.mrb[4].mxu1 %v3736_v20 }
 0x3d0   : > { %3526 = vrot.lane.b32.xlu1 %v6955_v10, %s5064_s19 }
 0x3d1   : > { %3414 = vrot.lane.b32.xlu0 %v7250_v5, %s5062_s12  ;;  %v3403_v13 = vpop.permute.xlu1 %3402 }
 0x3d2   : > { %v3273_v32 = vpop.permute.xlu0 %3272  ;;  %v2543_v39 = vld [vmem:[#allocation3 + $0x178] sm:$0x3] }
 0x3d3   : > { %3359 = vst.msk [vmem:[#allocation5 + $0xe0] sm:$0xff] %vm2806_vm9, %v3273_v32  ;;  %v2708_v50 = vrot.slane %v2543_v39, 1  ;;  %v2917_v6 = vrot.slane %v2543_v39, 2 }
 0x3d4   : > { %3058 = vrot.lane.b32.xlu1 %v6862_v12, %s5064_s19  ;;  %v7641_v38 = vld [vmem:[#allocation3 + $0x168] sm:$0xff]  ;;  %v7643_v60 = vld [vmem:[#allocation3 + $0x170] sm:$0xff]  ;;  %3489 = vst.msk [vmem:[#allocation5 + $0xe0] sm:$0xff] %vm3015_vm5, %v3403_v13 }
 0x3d5   : > { %2949 = vrot.lane.b32.xlu0 %v7176_v23, %s5062_s12  ;;  %2580 = vst.msk [vmem:[#allocation5 + $0x2d0] sm:$0xff] %vm2407_vm15, %v7641_v38  ;;  %v2705_v10 = vrot.slane %v7641_v38, 1  ;;  %v2706_v30 = vrot.slane %v7643_v60, 1  ;;  %2581 = vst.msk [vmem:[#allocation5 + $0x2e8] sm:$0xff] %vm2407_vm15, %v7643_v60  ;;  %v2914_v12 = vrot.slane %v7641_v38, 2  ;;  %v2915_v49 = vrot.slane %v7643_v60, 2  ;;  %v3537_v35 = vpop.permute.xlu1 %3536 }
 0x3d6   : > { %v3739_v36 = vld [vmem:[#allocation5 + $0xc0] sm:$0xff]  ;;  %3623 = vst.msk [vmem:[#allocation5 + $0xe0] sm:$0xff] %vm3146_vm6, %v3537_v35  ;;  %v2938_v7 = vpop.permute.xlu0 %2937  ;;  %v3740_v23 = vld [vmem:[#allocation5 + $0xc8] sm:$0xff] }
 0x3d7   : > { %v7658_v27 = vsel %vm721_vm3, %v2705_v10, %v2706_v30  ;;  %v7661_v63 = vsel %vm721_vm3, %v2706_v30, %v2708_v50  ;;  %v7664_v62 = vsel %vm931_vm4, %v2914_v12, %v2915_v49  ;;  %v7667_v15 = vsel %vm931_vm4, %v2915_v49, %v2917_v6  ;;  %3025 = vst.msk [vmem:[#allocation5 + $0xd8] sm:$0xff] %vm3015_vm5, %v2938_v7 }
 0x3d8   : > { %4054 = vmatprep.mubr.f32.mxu1 %v3740_v23  ;;  %3080 = vrot.lane.b32.xlu1 %v7196_v3, %s5064_s19  ;;  %3245 = vst.msk [vmem:[#allocation5 + $0x2a8] sm:$0xff] %vm2407_vm15, %v7658_v27  ;;  %3246 = vst.msk [vmem:[#allocation5 + $0x2c0] sm:$0xff] %vm2407_vm15, %v7661_v63 }
 0x3d9   : > { %3709 = vst.msk [vmem:[#allocation5 + $0x280] sm:$0xff] %vm2407_vm15, %v7664_v62  ;;  %3710 = vst.msk [vmem:[#allocation5 + $0x298] sm:$0xff] %vm2407_vm15, %v7667_v15  ;;  %3548 = vrot.lane.b32.xlu0 %v7266_v56, %s5064_s19  ;;  %4055 = vmatmul.mubr.f32.gmra.mrb[6].mxu1 %v3739_v36  ;;  %v3275_v51 = vpop.permute.xlu1 %3274 }
 0x3da   : > { %3360 = vst.msk [vmem:[#allocation5 + $0xf8] sm:$0xff] %vm2806_vm9, %v3275_v51  ;;  %v3069_v3 = vpop.permute.xlu0 %3068  ;;  %v4859_v39 = vpop.f32.mrb[30].mxu0 }
 0x3db   : > { %3156 = vst.msk [vmem:[#allocation5 + $0xd8] sm:$0xff] %vm3146_vm6, %v3069_v3  ;;  %v2308_v50 = vadd.f32 %v7353_v43, %v4859_v39  ;;  %v2302_v6 = vpop.f32.mrb[31].mxu0 }
 0x3dc   : > { %2742 = vrot.lane.b32.xlu1 %v7208_v47, %s5058_s11  ;;  %v2303_v47 = vadd.f32 %v7353_v43, %v2302_v6 }
 0x3dd   : > { %3286 = vrot.lane.b32.xlu0 %v7269_v21, %s5058_s11  ;;  %v2940_v20 = vpop.permute.xlu1 %2939  ;;  %v3743_v13 = vld [vmem:[#allocation5 + $0xe0] sm:$0xff]  ;;  %vm2342_vm12 = vcmp.ge.f32.partialorder %v2308_v50, 0.0  ;;  %v2374_v30 = vmul.f32 0.1, %v2308_v50 }
 0x3de   : > { %3026 = vst.msk [vmem:[#allocation5 + $0xf0] sm:$0xff] %vm3015_vm5, %v2940_v20  ;;  %v3405_v32 = vpop.permute.xlu0 %3404  ;;  %4059 = vmatprep.mubr.f32.mxu1 %v3743_v13  ;;  %vm2341_vm13 = vcmp.ge.f32.partialorder %v2303_v47, 0.0  ;;  %v2373_v35 = vmul.f32 0.1, %v2303_v47 }
 0x3df   : > { %3490 = vst.msk [vmem:[#allocation5 + $0xf8] sm:$0xff] %vm3015_vm5, %v3405_v32 }
 0x3e0   : > { %2951 = vrot.lane.b32.xlu1 %v7214_v4, %s5062_s12  ;;  %v2406_v4 = vsel %vm2342_vm12, %v2308_v50, %v2374_v30  ;;  %v2405_v43 = vsel %vm2341_vm13, %v2303_v47, %v2373_v35 }
 0x3e1   : > { %3416 = vrot.lane.b32.xlu0 %v7300_v19, %s5062_s12  ;;  %v3071_v10 = vpop.permute.xlu1 %3070  ;;  %2495 = vst.msk [vmem:[#allocation3 + $0x189] sm:$0xff] %vm2407_vm15, %v2406_v4  ;;  %2494 = vst.msk [vmem:[#allocation3 + $0x181] sm:$0xff] %vm2407_vm15, %v2405_v43 }
 0x3e2   : > { %3157 = vst.msk [vmem:[#allocation5 + $0xf0] sm:$0xff] %vm3146_vm6, %v3071_v10  ;;  %v3539_v12 = vpop.permute.xlu0 %3538  ;;  %v3742_v49 = vld [vmem:[#allocation5 + $0xd8] sm:$0xff] }
 0x3e3   : > { %3624 = vst.msk [vmem:[#allocation5 + $0xf8] sm:$0xff] %vm3146_vm6, %v3539_v12  ;;  %4060 = vmatmul.mubr.f32.gmra.mrb[8].mxu1 %v3742_v49 }
 0x3e4   : > { %3082 = vrot.lane.b32.xlu1 %v7248_v31, %s5064_s19 }
 0x3e5   : > { %3550 = vrot.lane.b32.xlu0 %v7319_v57, %s5064_s19  ;;  %v3277_v36 = vpop.permute.xlu1 %3276 }
 0x3e6   : > { %3361 = vst.msk [vmem:[#allocation5 + $0x110] sm:$0xff] %vm2806_vm9, %v3277_v36  ;;  %v3255_v7 = vpop.permute.xlu0 %3254 }
 0x3e7   : > { %3350 = vst.msk [vmem:[#allocation5 + $0x8] sm:$0xff] %vm2806_vm9, %v3255_v7 }
 0x3e8   : > { %2744 = vrot.lane.b32.xlu1 %v7211_v18, %s5058_s11  ;;  %v7716_v20 = vld [vmem:[#allocation3 + $0x180] sm:$0xff]  ;;  %v7718_v13 = vld [vmem:[#allocation3 + $0x188] sm:$0xff]  ;;  %v2546_v32 = vld [vmem:[#allocation3 + $0x190] sm:$0x3] }
 0x3e9   : > { %3288 = vrot.lane.b32.xlu0 %v7282_v59, %s5058_s11  ;;  %v2920_v31 = vpop.permute.xlu1 %2919  ;;  %v3745_v23 = vld [vmem:[#allocation5 + $0xf0] sm:$0xff]  ;;  %v3180_v50 = vrot.slane %v7716_v20, 1  ;;  %v3249_v6 = vrot.slane %v7716_v20, 2  ;;  %v3181_v47 = vrot.slane %v7718_v13, 1  ;;  %v3252_v10 = vrot.slane %v2546_v32, 2 }
 0x3ea   : > { %3016 = vst.msk [vmem:[#allocation5] sm:$0xff] %vm3015_vm5, %v2920_v31  ;;  %v3385_v51 = vpop.permute.xlu0 %3384  ;;  %v3746_v3 = vld [vmem:[#allocation5 + $0xf8] sm:$0xff]  ;;  %v3250_v30 = vrot.slane %v7718_v13, 2  ;;  %v3845_v31 = vld [vmem:[%s8277_s4 + $0x110] sm:$0xff] }
 0x3eb   : > { %3480 = vst.msk [vmem:[#allocation5 + $0x8] sm:$0xff] %vm3015_vm5, %v3385_v51  ;;  %4064 = vmatprep.mubr.f32.mxu1 %v3746_v3  ;;  %v7731_v12 = vsel %vm721_vm3, %v3180_v50, %v3181_v47 }
 0x3ec   : > { %2953 = vrot.lane.b32.xlu1 %v7228_v24, %s5062_s12  ;;  %4065 = vmatmul.mubr.f32.gmra.mrb[10].mxu1 %v3745_v23  ;;  %v3183_v24 = vrot.slane %v2546_v32, 1  ;;  %3247 = vst.msk [vmem:[#allocation5 + $0x2d8] sm:$0xff] %vm2407_vm15, %v7731_v12  ;;  %v7744_v4 = vsel %vm931_vm4, %v3250_v30, %v3252_v10  ;;  %v3846_v23 = vld [vmem:[%s8277_s4 + $0x118] sm:$0xff]  ;;  %v7793_v10 = vld [vmem:[#allocation3 + $0x1a0] sm:$0xff] }
 0x3ed   : > { %3418 = vrot.lane.b32.xlu0 %v7302_v37, %s5062_s12  ;;  %v3519_v18 = vpop.permute.xlu1 %3518  ;;  %3712 = vst.msk [vmem:[#allocation5 + $0x2c8] sm:$0xff] %vm2407_vm15, %v7744_v4 }
 0x3ee   : > { %3614 = vst.msk [vmem:[#allocation5 + $0x8] sm:$0xff] %vm3146_vm6, %v3519_v18  ;;  %v3407_v39 = vpop.permute.xlu0 %3406  ;;  %v7734_v49 = vsel %vm721_vm3, %v3181_v47, %v3183_v24  ;;  %v7791_v24 = vld [vmem:[#allocation3 + $0x198] sm:$0xff] }
 0x3ef   : > { %3491 = vst.msk [vmem:[#allocation5 + $0x110] sm:$0xff] %vm3015_vm5, %v3407_v39 }
 0x3f0   : > { %3084 = vrot.lane.b32.xlu1 %v7250_v5, %s5064_s19  ;;  %3248 = vst.msk [vmem:[#allocation5 + $0x2f0] sm:$0xff] %vm2407_vm15, %v7734_v49  ;;  %v7741_v5 = vsel %vm931_vm4, %v3249_v6, %v3250_v30  ;;  %v3647_v30 = vrot.slane %v7793_v10, 2 }
 0x3f1   : > { %3552 = vrot.lane.b32.xlu0 %v7322_v52, %s5064_s19  ;;  %v3051_v35 = vpop.permute.xlu1 %3050  ;;  %3711 = vst.msk [vmem:[#allocation5 + $0x2b0] sm:$0xff] %vm2407_vm15, %v7741_v5 }
 0x3f2   : > { %3147 = vst.msk [vmem:[#allocation5] sm:$0xff] %vm3146_vm6, %v3051_v35  ;;  %v2942_v43 = vpop.permute.xlu0 %2941 }
 0x3f3   : > { %3027 = vst.msk [vmem:[#allocation5 + $0x108] sm:$0xff] %vm3015_vm5, %v2942_v43 }
 0x3f4   : > { %2746 = vrot.lane.b32.xlu1 %v7263_v16, %s5058_s11  ;;  %v4984_v16 = vpack.c.bf16 %v3846_v23, %v3845_v31 }
 0x3f5   : > { %3290 = vrot.lane.b32.xlu0 %v7325_v22, %s5058_s11  ;;  %v3073_v36 = vpop.permute.xlu1 %3072  ;;  %v3716_v7 = vld [vmem:[#allocation5 + $0x8] sm:$0xff] }
 0x3f6   : > { %3158 = vst.msk [vmem:[#allocation5 + $0x108] sm:$0xff] %vm3146_vm6, %v3073_v36  ;;  %v3541_v51 = vpop.permute.xlu0 %3540  ;;  %4014 = vmatprep.mubr.f32.mxu0 %v3716_v7 }
 0x3f7   : > { %3625 = vst.msk [vmem:[#allocation5 + $0x110] sm:$0xff] %vm3146_vm6, %v3541_v51 }
 0x3f8   : > { %2955 = vrot.lane.b32.xlu1 %v7269_v21, %s5062_s12 }
 0x3f9   : > { %3420 = vrot.lane.b32.xlu0 %v7372_v44, %s5062_s12  ;;  %v3279_v3 = vpop.permute.xlu1 %3278  ;;  %v3715_v18 = vld [vmem:[#allocation5] sm:$0xff] }
 0x3fa   : > { %3362 = vst.msk [vmem:[#allocation5 + $0x128] sm:$0xff] %vm2806_vm9, %v3279_v3  ;;  %v3257_v32 = vpop.permute.xlu0 %3256  ;;  %4015 = vmatmul.mubr.f32.vlgmr.msra.gmra.mrb[32].mxu0 %v3715_v18 }
 0x3fb   : > { %3351 = vst.msk [vmem:[#allocation5 + $0x20] sm:$0xff] %vm2806_vm9, %v3257_v32  ;;  %4983 = vmatpush3.bf16.msra.mxu0 %v7621_v54  ;;  %v7823_v32 = vld [vmem:[#allocation3 + $0x1a8] sm:$0x3] }
 0x3fc   : > { %3086 = vrot.lane.b32.xlu1 %v7300_v19, %s5064_s19  ;;  %4985 = vmatprep.subr.bf16.mxu0 %v4984_v16 }
 0x3fd   : > { %3554 = vrot.lane.b32.xlu0 %v7389_v17, %s5064_s19  ;;  %v2922_v21 = vpop.permute.xlu1 %2921  ;;  %v3748_v39 = vld [vmem:[#allocation5 + $0x108] sm:$0xff] }
 0x3fe   : > { %3017 = vst.msk [vmem:[#allocation5 + $0x18] sm:$0xff] %vm3015_vm5, %v2922_v21  ;;  %v3387_v50 = vpop.permute.xlu0 %3386  ;;  %v3749_v6 = vld [vmem:[#allocation5 + $0x110] sm:$0xff] }
 0x3ff   : > { %3481 = vst.msk [vmem:[#allocation5 + $0x20] sm:$0xff] %vm3015_vm5, %v3387_v50  ;;  %4069 = vmatprep.mubr.f32.mxu1 %v3749_v6  ;;  %4987 = vmatpush3.bf16.msra.mxu0 %v4984_v16 }
 0x400   : > { %2748 = vrot.lane.b32.xlu1 %v7266_v56, %s5058_s11  ;;  %4070 = vmatmul.mubr.f32.gmra.mrb[12].mxu1 %v3748_v39 }
 0x401   : > { %3292 = vrot.lane.b32.xlu0 %v7328_v45, %s5058_s11  ;;  %v3521_v19 = vpop.permute.xlu1 %3520 }
 0x402   : > { %3615 = vst.msk [vmem:[#allocation5 + $0x20] sm:$0xff] %vm3146_vm6, %v3521_v19  ;;  %v3409_v54 = vpop.permute.xlu0 %3408 }
 0x403   : > { %3492 = vst.msk [vmem:[#allocation5 + $0x128] sm:$0xff] %vm3015_vm5, %v3409_v54 }
 0x404   : > { %2957 = vrot.lane.b32.xlu1 %v7282_v59, %s5062_s12  ;;  %v3646_v59 = vrot.slane %v7791_v24, 2 }
 0x405   : > { %3422 = vrot.lane.b32.xlu0 %v7374_v11, %s5062_s12  ;;  %v3053_v47 = vpop.permute.xlu1 %3052 }
 0x406   : > { %3148 = vst.msk [vmem:[#allocation5 + $0x18] sm:$0xff] %vm3146_vm6, %v3053_v47  ;;  %v2944_v56 = vpop.permute.xlu0 %2943  ;;  %v3648_v7 = vsel %vm931_vm4, %v3646_v59, %v3647_v30 }
 0x407   : > { %3028 = vst.msk [vmem:[#allocation5 + $0x120] sm:$0xff] %vm3015_vm5, %v2944_v56 }
 0x408   : > { %3088 = vrot.lane.b32.xlu1 %v7302_v37, %s5064_s19  ;;  %3713 = vst.msk [vmem:[#allocation5 + $0x2e0] sm:$0xff] %vm2407_vm15, %v3648_v7 }
 0x409   : > { %3556 = vrot.lane.b32.xlu0 %v7392_v48, %s5064_s19  ;;  %v3075_v35 = vpop.permute.xlu1 %3074  ;;  %v3719_v43 = vld [vmem:[#allocation5 + $0x20] sm:$0xff] }
 0x40a   : > { %3159 = vst.msk [vmem:[#allocation5 + $0x120] sm:$0xff] %vm3146_vm6, %v3075_v35  ;;  %v3543_v36 = vpop.permute.xlu0 %3542  ;;  %4019 = vmatprep.mubr.f32.mxu0 %v3719_v43 }
 0x40b   : > { %3626 = vst.msk [vmem:[#allocation5 + $0x128] sm:$0xff] %vm3146_vm6, %v3543_v36 }
 0x40c   : > { %2750 = vrot.lane.b32.xlu1 %v7319_v57, %s5058_s11 }
 0x40d   : > { %3294 = vrot.lane.b32.xlu0 %v7395_v29, %s5058_s11  ;;  %v3281_v37 = vpop.permute.xlu1 %3280  ;;  %v3718_v31 = vld [vmem:[#allocation5 + $0x18] sm:$0xff] }
 0x40e   : > { %3363 = vst.msk [vmem:[#allocation5 + $0x140] sm:$0xff] %vm2806_vm9, %v3281_v37  ;;  %v3259_v23 = vpop.permute.xlu0 %3258  ;;  %4020 = vmatmul.mubr.f32.gmra.mrb[34].mxu0 %v3718_v31 }
 0x40f   : > { %3352 = vst.msk [vmem:[#allocation5 + $0x38] sm:$0xff] %vm2806_vm9, %v3259_v23 }
 0x410   : > { %2959 = vrot.lane.b32.xlu1 %v7325_v22, %s5062_s12 }
 0x411   : > { %3424 = vrot.lane.b32.xlu0 %v7439_v55, %s5062_s12  ;;  %v2924_v57 = vpop.permute.xlu1 %2923  ;;  %v3751_v51 = vld [vmem:[#allocation5 + $0x120] sm:$0xff] }
 0x412   : > { %3018 = vst.msk [vmem:[#allocation5 + $0x30] sm:$0xff] %vm3015_vm5, %v2924_v57  ;;  %v3389_v16 = vpop.permute.xlu0 %3388  ;;  %v3752_v3 = vld [vmem:[#allocation5 + $0x128] sm:$0xff] }
 0x413   : > { %3482 = vst.msk [vmem:[#allocation5 + $0x38] sm:$0xff] %vm3015_vm5, %v3389_v16  ;;  %4074 = vmatprep.mubr.f32.mxu1 %v3752_v3 }
 0x414   : > { %3090 = vrot.lane.b32.xlu1 %v7372_v44, %s5064_s19  ;;  %4075 = vmatmul.mubr.f32.gmra.mrb[14].mxu1 %v3751_v51  ;;  %v3649_v44 = vrot.slane %v7823_v32, 2 }
 0x415   : > { %3558 = vrot.lane.b32.xlu0 %v7456_v14, %s5064_s19  ;;  %v3523_v22 = vpop.permute.xlu1 %3522 }
 0x416   : > { %3616 = vst.msk [vmem:[#allocation5 + $0x38] sm:$0xff] %vm3146_vm6, %v3523_v22  ;;  %v3411_v18 = vpop.permute.xlu0 %3410  ;;  %v3650_v50 = vsel %vm931_vm4, %v3647_v30, %v3649_v44 }
 0x417   : > { %3493 = vst.msk [vmem:[#allocation5 + $0x140] sm:$0xff] %vm3015_vm5, %v3411_v18 }
 0x418   : > { %2752 = vrot.lane.b32.xlu1 %v7322_v52, %s5058_s11  ;;  %3714 = vst.msk [vmem:[#allocation5 + $0x2f8] sm:$0xff] %vm2407_vm15, %v3650_v50  ;;  %v3717_v50 = vld [vmem:[#allocation5 + $0x10] sm:$0xff] }
 0x419   : > { %3296 = vrot.lane.b32.xlu0 %v7398_v40, %s5058_s11  ;;  %v3055_v21 = vpop.permute.xlu1 %3054 }
 0x41a   : > { %3149 = vst.msk [vmem:[#allocation5 + $0x30] sm:$0xff] %vm3146_vm6, %v3055_v21  ;;  %v2946_v39 = vpop.permute.xlu0 %2945 }
 0x41b   : > { %3029 = vst.msk [vmem:[#allocation5 + $0x138] sm:$0xff] %vm3015_vm5, %v2946_v39 }
 0x41c   : > { %2961 = vrot.lane.b32.xlu1 %v7328_v45, %s5062_s12 }
 0x41d   : > { %3426 = vrot.lane.b32.xlu0 %v7441_v9, %s5062_s12  ;;  %v3077_v52 = vpop.permute.xlu1 %3076  ;;  %v3722_v6 = vld [vmem:[#allocation5 + $0x38] sm:$0xff] }
 0x41e   : > { %3160 = vst.msk [vmem:[#allocation5 + $0x138] sm:$0xff] %vm3146_vm6, %v3077_v52  ;;  %v3545_v19 = vpop.permute.xlu0 %3544  ;;  %4024 = vmatprep.mubr.f32.mxu0 %v3722_v6  ;;  %v3720_v52 = vld [vmem:[#allocation5 + $0x28] sm:$0xff] }
 0x41f   : > { %3627 = vst.msk [vmem:[#allocation5 + $0x140] sm:$0xff] %vm3146_vm6, %v3545_v19 }
 0x420   : > { %3092 = vrot.lane.b32.xlu1 %v7374_v11, %s5064_s19 }
 0x421   : > { %3560 = vrot.lane.b32.xlu0 %v7459_v46, %s5064_s19  ;;  %v3283_v45 = vpop.permute.xlu1 %3282  ;;  %v3721_v54 = vld [vmem:[#allocation5 + $0x30] sm:$0xff] }
 0x422   : > { %3364 = vst.msk [vmem:[#allocation5 + $0x158] sm:$0xff] %vm2806_vm9, %v3283_v45  ;;  %v3261_v47 = vpop.permute.xlu0 %3260  ;;  %4025 = vmatmul.mubr.f32.gmra.mrb[36].mxu0 %v3721_v54 }
 0x423   : > { %3353 = vst.msk [vmem:[#allocation5 + $0x50] sm:$0xff] %vm2806_vm9, %v3261_v47  ;;  %v3726_v47 = vld [vmem:[#allocation5 + $0x58] sm:$0xff] }
 0x424   : > { %2754 = vrot.lane.b32.xlu1 %v7389_v17, %s5058_s11 }
 0x425   : > { %3298 = vrot.lane.b32.xlu0 %v7462_v26, %s5058_s11  ;;  %v2739_v56 = vpop.permute.xlu1 %2738  ;;  %v3754_v59 = vld [vmem:[#allocation5 + $0x138] sm:$0xff] }
 0x426   : > { %2821 = vst.msk [vmem:[#allocation5 + $0x150] sm:$0xff] %vm2806_vm9, %v2739_v56  ;;  %v3391_v11 = vpop.permute.xlu0 %3390  ;;  %v3755_v30 = vld [vmem:[#allocation5 + $0x140] sm:$0xff] }
 0x427   : > { %3483 = vst.msk [vmem:[#allocation5 + $0x50] sm:$0xff] %vm3015_vm5, %v3391_v11  ;;  %4079 = vmatprep.mubr.f32.mxu1 %v3755_v30  ;;  %v3732_v11 = vld [vmem:[#allocation5 + $0x88] sm:$0xff] }
 0x428   : > { %2963 = vrot.lane.b32.xlu1 %v7395_v29, %s5062_s12  ;;  %4080 = vmatmul.mubr.f32.gmra.mrb[16].mxu1 %v3754_v59  ;;  %v3729_v59 = vld [vmem:[#allocation5 + $0x70] sm:$0xff] }
 0x429   : > { %3428 = vrot.lane.b32.xlu0 %v7498_v53, %s5062_s12  ;;  %v3413_v17 = vpop.permute.xlu1 %3412 }
 0x42a   : > { %3494 = vst.msk [vmem:[#allocation5 + $0x158] sm:$0xff] %vm3015_vm5, %v3413_v17  ;;  %v2926_v35 = vpop.permute.xlu0 %2925  ;;  %v3735_v17 = vld [vmem:[#allocation5 + $0xa0] sm:$0xff] }
 0x42b   : > { %3019 = vst.msk [vmem:[#allocation5 + $0x48] sm:$0xff] %vm3015_vm5, %v2926_v35  ;;  %v3738_v35 = vld [vmem:[#allocation5 + $0xb8] sm:$0xff] }
 0x42c   : > { %3094 = vrot.lane.b32.xlu1 %v7439_v55, %s5064_s19 }
 0x42d   : > { %3562 = vrot.lane.b32.xlu0 %v7516_v28, %s5064_s19  ;;  %v2948_v43 = vpop.permute.xlu1 %2947 }
 0x42e   : > { %3030 = vst.msk [vmem:[#allocation5 + $0x150] sm:$0xff] %vm3015_vm5, %v2948_v43  ;;  %v3525_v29 = vpop.permute.xlu0 %3524 }
 0x42f   : > { %3617 = vst.msk [vmem:[#allocation5 + $0x50] sm:$0xff] %vm3146_vm6, %v3525_v29 }
 0x430   : > { %2756 = vrot.lane.b32.xlu1 %v7392_v48, %s5058_s11 }
 0x431   : > { %3300 = vrot.lane.b32.xlu0 %v7465_v61, %s5058_s11  ;;  %v3547_v36 = vpop.permute.xlu1 %3546 }
 0x432   : > { %3628 = vst.msk [vmem:[#allocation5 + $0x158] sm:$0xff] %vm3146_vm6, %v3547_v36  ;;  %v3057_v7 = vpop.permute.xlu0 %3056 }
 0x433   : > { %3150 = vst.msk [vmem:[#allocation5 + $0x48] sm:$0xff] %vm3146_vm6, %v3057_v7 }
 0x434   : > { %2965 = vrot.lane.b32.xlu1 %v7398_v40, %s5062_s12 }
 0x435   : > { %3430 = vrot.lane.b32.xlu0 %v7500_v34, %s5062_s12 }
 0x436   : > { %v3263_v55 = vpop.permute.xlu1 %3262  ;;  %v3725_v48 = vld [vmem:[#allocation5 + $0x50] sm:$0xff] }
 0x437   : > { %3354 = vst.msk [vmem:[#allocation5 + $0x68] sm:$0xff] %vm2806_vm9, %v3263_v55  ;;  %v3079_v37 = vpop.permute.xlu0 %3078  ;;  %4029 = vmatprep.mubr.f32.mxu0 %v3725_v48  ;;  %v3744_v55 = vld [vmem:[#allocation5 + $0xe8] sm:$0xff]  ;;  %v3747_v48 = vld [vmem:[#allocation5 + $0x100] sm:$0xff] }
 0x438   : > { %3161 = vst.msk [vmem:[#allocation5 + $0x150] sm:$0xff] %vm3146_vm6, %v3079_v37  ;;  %3096 = vrot.lane.b32.xlu1 %v7441_v9, %s5064_s19 }
 0x439   : > { %3564 = vrot.lane.b32.xlu0 %v7519_v41, %s5064_s19  ;;  %v3758_v23 = vld [vmem:[#allocation5 + $0x158] sm:$0xff] }
 0x43a   : > { %v3393_v31 = vpop.permute.xlu1 %3392  ;;  %v3724_v57 = vld [vmem:[#allocation5 + $0x48] sm:$0xff]  ;;  %4084 = vmatprep.mubr.f32.mxu1 %v3758_v23 }
 0x43b   : > { %3484 = vst.msk [vmem:[#allocation5 + $0x68] sm:$0xff] %vm3015_vm5, %v3393_v31  ;;  %v3285_v40 = vpop.permute.xlu0 %3284  ;;  %4030 = vmatmul.mubr.f32.gmra.mrb[38].mxu0 %v3724_v57  ;;  %v3750_v31 = vld [vmem:[#allocation5 + $0x118] sm:$0xff]  ;;  %v3756_v57 = vld [vmem:[#allocation5 + $0x148] sm:$0xff] }
 0x43c   : > { %3365 = vst.msk [vmem:[#allocation5 + $0x170] sm:$0xff] %vm2806_vm9, %v3285_v40  ;;  %2758 = vrot.lane.b32.xlu1 %v7456_v14, %s5058_s11  ;;  %v3753_v40 = vld [vmem:[#allocation5 + $0x130] sm:$0xff] }
 0x43d   : > { %3302 = vrot.lane.b32.xlu0 %v7522_v33, %s5058_s11 }
 0x43e   : > { %v2928_v9 = vpop.permute.xlu1 %2927 }
 0x43f   : > { %3020 = vst.msk [vmem:[#allocation5 + $0x60] sm:$0xff] %vm3015_vm5, %v2928_v9  ;;  %v2741_v51 = vpop.permute.xlu0 %2740  ;;  %v3757_v16 = vld [vmem:[#allocation5 + $0x150] sm:$0xff] }
 0x440   : > { %2822 = vst.msk [vmem:[#allocation5 + $0x168] sm:$0xff] %vm2806_vm9, %v2741_v51  ;;  %4085 = vmatmul.mubr.f32.gmra.mrb[18].mxu1 %v3757_v16  ;;  %2967 = vrot.lane.b32.xlu1 %v7462_v26, %s5062_s12 }
 0x441   : > { %3432 = vrot.lane.b32.xlu0 %v7566_v1, %s5062_s12 }
 0x442   : > { %v3527_v3 = vpop.permute.xlu1 %3526 }
 0x443   : > { %3618 = vst.msk [vmem:[#allocation5 + $0x68] sm:$0xff] %vm3146_vm6, %v3527_v3  ;;  %v3415_v14 = vpop.permute.xlu0 %3414 }
 0x444   : > { %3495 = vst.msk [vmem:[#allocation5 + $0x170] sm:$0xff] %vm3015_vm5, %v3415_v14  ;;  %3098 = vrot.lane.b32.xlu1 %v7498_v53, %s5064_s19  ;;  %v3762_v14 = vld [vmem:[#allocation5 + $0x178] sm:$0xff] }
 0x445   : > { %3566 = vrot.lane.b32.xlu0 %v7583_v8, %s5064_s19 }
 0x446   : > { %v3059_v22 = vpop.permute.xlu1 %3058 }
 0x447   : > { %3151 = vst.msk [vmem:[#allocation5 + $0x60] sm:$0xff] %vm3146_vm6, %v3059_v22  ;;  %v2950_v18 = vpop.permute.xlu0 %2949 }
 0x448   : > { %3031 = vst.msk [vmem:[#allocation5 + $0x168] sm:$0xff] %vm3015_vm5, %v2950_v18  ;;  %2760 = vrot.lane.b32.xlu1 %v7459_v46, %s5058_s11  ;;  %v3765_v18 = vld [vmem:[#allocation5 + $0x190] sm:$0xff] }
 0x449   : > { %3304 = vrot.lane.b32.xlu0 %v7525_v25, %s5058_s11 }
 0x44a   : > { %v3081_v26 = vpop.permute.xlu1 %3080  ;;  %v3728_v44 = vld [vmem:[#allocation5 + $0x68] sm:$0xff] }
 0x44b   : > { %3162 = vst.msk [vmem:[#allocation5 + $0x168] sm:$0xff] %vm3146_vm6, %v3081_v26  ;;  %v3549_v53 = vpop.permute.xlu0 %3548  ;;  %4034 = vmatprep.mubr.f32.mxu0 %v3728_v44  ;;  %v3768_v26 = vld [vmem:[#allocation5 + $0x1a8] sm:$0xff] }
 0x44c   : > { %3629 = vst.msk [vmem:[#allocation5 + $0x170] sm:$0xff] %vm3146_vm6, %v3549_v53  ;;  %2969 = vrot.lane.b32.xlu1 %v7465_v61, %s5062_s12  ;;  %v3771_v53 = vld [vmem:[#allocation5 + $0x1c0] sm:$0xff] }
 0x44d   : > { %3434 = vrot.lane.b32.xlu0 %v7568_v0, %s5062_s12 }
 0x44e   : > { %v2743_v21 = vpop.permute.xlu1 %2742  ;;  %v3727_v39 = vld [vmem:[#allocation5 + $0x60] sm:$0xff] }
 0x44f   : > { %2823 = vst.msk [vmem:[#allocation5 + $0x180] sm:$0xff] %vm2806_vm9, %v2743_v21  ;;  %v3287_v46 = vpop.permute.xlu0 %3286  ;;  %4035 = vmatmul.mubr.f32.gmra.mrb[40].mxu0 %v3727_v39  ;;  %v3774_v21 = vld [vmem:[#allocation5 + $0x1d8] sm:$0xff] }
 0x450   : > { %3366 = vst.msk [vmem:[#allocation5 + $0x188] sm:$0xff] %vm2806_vm9, %v3287_v46  ;;  %3100 = vrot.lane.b32.xlu1 %v7500_v34, %s5064_s19  ;;  %4868 = vmatprep.mubr.msk.f32.mxu0 %vm2407_vm15, %v3717_v50  ;;  %v3723_v34 = vld [vmem:[#allocation5 + $0x40] sm:$0xff] }
 0x451   : > { %3568 = vrot.lane.b32.xlu0 %v7586_v2, %s5064_s19 }
 0x452   : > { %v2952_v61 = vpop.permute.xlu1 %2951  ;;  %v3760_v6 = vld [vmem:[#allocation5 + $0x168] sm:$0xff] }
 0x453   : > { %3032 = vst.msk [vmem:[#allocation5 + $0x180] sm:$0xff] %vm3015_vm5, %v2952_v61  ;;  %v3417_v19 = vpop.permute.xlu0 %3416  ;;  %v3761_v45 = vld [vmem:[#allocation5 + $0x170] sm:$0xff]  ;;  %4869 = vmatmul.mubr.msk.f32.vlgmr.msra.gmra.mrb[42].mxu0 %vm2407_vm15, %v3720_v52  ;;  %v3780_v61 = vld [vmem:[#allocation5 + $0x208] sm:$0xff] }
 0x454   : > { %3496 = vst.msk [vmem:[#allocation5 + $0x188] sm:$0xff] %vm3015_vm5, %v3417_v19  ;;  %4089 = vmatprep.mubr.f32.mxu1 %v3761_v45  ;;  %2762 = vrot.lane.b32.xlu1 %v7516_v28, %s5058_s11  ;;  %v3786_v19 = vld [vmem:[#allocation5 + $0x238] sm:$0xff] }
 0x455   : > { %3306 = vrot.lane.b32.xlu0 %v7589_v42, %s5058_s11  ;;  %4090 = vmatmul.mubr.f32.gmra.mrb[20].mxu1 %v3760_v6  ;;  %v3783_v6 = vld [vmem:[#allocation5 + $0x220] sm:$0xff] }
 0x456   : > { %4871 = vmatprep.mubr.msk.f32.mxu0 %vm2407_vm15, %v3723_v34  ;;  %v3083_v54 = vpop.permute.xlu1 %3082  ;;  %v3789_v34 = vld [vmem:[#allocation5 + $0x250] sm:$0xff] }
 0x457   : > { %3163 = vst.msk [vmem:[#allocation5 + $0x180] sm:$0xff] %vm3146_vm6, %v3083_v54  ;;  %v3551_v56 = vpop.permute.xlu0 %3550  ;;  %4872 = vmatmul.mubr.msk.f32.gmra.mrb[44].mxu0 %vm2407_vm15, %v3726_v47  ;;  %v3792_v54 = vld [vmem:[#allocation5 + $0x268] sm:$0xff] }
 0x458   : > { %3630 = vst.msk [vmem:[#allocation5 + $0x188] sm:$0xff] %vm3146_vm6, %v3551_v56  ;;  %2971 = vrot.lane.b32.xlu1 %v7522_v33, %s5062_s12  ;;  %4874 = vmatprep.mubr.msk.f32.mxu0 %vm2407_vm15, %v3729_v59 }
 0x459   : > { %3436 = vrot.lane.b32.xlu0 %v7641_v38, %s5062_s12 }
 0x45a   : > { %v2745_v28 = vpop.permute.xlu1 %2744 }
 0x45b   : > { %2824 = vst.msk [vmem:[#allocation5 + $0x198] sm:$0xff] %vm2806_vm9, %v2745_v28  ;;  %v3289_v30 = vpop.permute.xlu0 %3288  ;;  %4875 = vmatmul.mubr.msk.f32.gmra.mrb[46].mxu0 %vm2407_vm15, %v3732_v11  ;;  %v3798_v28 = vld [vmem:[#allocation5 + $0x298] sm:$0xff]  ;;  %v3513_v11 = vrot.slane %v7791_v24, 1 }
 0x45c   : > { %3367 = vst.msk [vmem:[#allocation5 + $0x1a0] sm:$0xff] %vm2806_vm9, %v3289_v30  ;;  %3102 = vrot.lane.b32.xlu1 %v7566_v1, %s5064_s19  ;;  %4877 = vmatprep.mubr.msk.f32.mxu0 %vm2407_vm15, %v3735_v17  ;;  %v3741_v1 = vld [vmem:[#allocation5 + $0xd0] sm:$0xff]  ;;  %v3514_v30 = vrot.slane %v7793_v10, 1 }
 0x45d   : > { %3570 = vrot.lane.b32.xlu0 %v7658_v27, %s5064_s19 }
 0x45e   : > { %v2954_v33 = vpop.permute.xlu1 %2953  ;;  %v3763_v43 = vld [vmem:[#allocation5 + $0x180] sm:$0xff] }
 0x45f   : > { %3033 = vst.msk [vmem:[#allocation5 + $0x198] sm:$0xff] %vm3015_vm5, %v2954_v33  ;;  %v3419_v29 = vpop.permute.xlu0 %3418  ;;  %v3764_v36 = vld [vmem:[#allocation5 + $0x188] sm:$0xff]  ;;  %4878 = vmatmul.mubr.msk.f32.gmra.mrb[48].mxu0 %vm2407_vm15, %v3738_v35  ;;  %v3801_v33 = vld [vmem:[#allocation5 + $0x2b0] sm:$0xff] }
 0x460   : > { %3497 = vst.msk [vmem:[#allocation5 + $0x1a0] sm:$0xff] %vm3015_vm5, %v3419_v29  ;;  %4094 = vmatprep.mubr.f32.mxu1 %v3764_v36  ;;  %2764 = vrot.lane.b32.xlu1 %v7519_v41, %s5058_s11  ;;  %v3804_v35 = vld [vmem:[#allocation5 + $0x2c8] sm:$0xff] }
 0x461   : > { %3308 = vrot.lane.b32.xlu0 %v7592_v58, %s5058_s11  ;;  %4095 = vmatmul.mubr.f32.gmra.mrb[22].mxu1 %v3763_v43  ;;  %v3515_v43 = vsel %vm721_vm3, %v3513_v11, %v3514_v30 }
 0x462   : > { %4880 = vmatprep.mubr.msk.f32.mxu0 %vm2407_vm15, %v3741_v1  ;;  %v3085_v7 = vpop.permute.xlu1 %3084 }
 0x463   : > { %3164 = vst.msk [vmem:[#allocation5 + $0x198] sm:$0xff] %vm3146_vm6, %v3085_v7  ;;  %v3553_v37 = vpop.permute.xlu0 %3552  ;;  %4881 = vmatmul.mubr.msk.f32.gmra.mrb[50].mxu0 %vm2407_vm15, %v3744_v55 }
 0x464   : > { %3631 = vst.msk [vmem:[#allocation5 + $0x1a0] sm:$0xff] %vm3146_vm6, %v3553_v37  ;;  %2973 = vrot.lane.b32.xlu1 %v7525_v25, %s5062_s12  ;;  %4883 = vmatprep.mubr.msk.f32.mxu0 %vm2407_vm15, %v3747_v48  ;;  %v3516_v48 = vrot.slane %v7823_v32, 1 }
 0x465   : > { %3438 = vrot.lane.b32.xlu0 %v7643_v60, %s5062_s12 }
 0x466   : > { %v2747_v41 = vpop.permute.xlu1 %2746 }
 0x467   : > { %2825 = vst.msk [vmem:[#allocation5 + $0x1b0] sm:$0xff] %vm2806_vm9, %v2747_v41  ;;  %v3291_v23 = vpop.permute.xlu0 %3290  ;;  %4884 = vmatmul.mubr.msk.f32.gmra.mrb[52].mxu0 %vm2407_vm15, %v3750_v31 }
 0x468   : > { %3368 = vst.msk [vmem:[#allocation5 + $0x1b8] sm:$0xff] %vm2806_vm9, %v3291_v23  ;;  %3104 = vrot.lane.b32.xlu1 %v7568_v0, %s5064_s19  ;;  %4886 = vmatprep.mubr.msk.f32.mxu0 %vm2407_vm15, %v3753_v40  ;;  %v3759_v0 = vld [vmem:[#allocation5 + $0x160] sm:$0xff] }
 0x469   : > { %3572 = vrot.lane.b32.xlu0 %v7661_v63, %s5064_s19 }
 0x46a   : > { %v2956_v25 = vpop.permute.xlu1 %2955  ;;  %v3766_v9 = vld [vmem:[#allocation5 + $0x198] sm:$0xff] }
 0x46b   : > { %3034 = vst.msk [vmem:[#allocation5 + $0x1b0] sm:$0xff] %vm3015_vm5, %v2956_v25  ;;  %v3421_v51 = vpop.permute.xlu0 %3420  ;;  %v3767_v16 = vld [vmem:[#allocation5 + $0x1a0] sm:$0xff]  ;;  %4887 = vmatmul.mubr.msk.f32.gmra.mrb[54].mxu0 %vm2407_vm15, %v3756_v57 }
 0x46c   : > { %3498 = vst.msk [vmem:[#allocation5 + $0x1b8] sm:$0xff] %vm3015_vm5, %v3421_v51  ;;  %4099 = vmatprep.mubr.f32.mxu1 %v3767_v16  ;;  %2766 = vrot.lane.b32.xlu1 %v7583_v8, %s5058_s11 }
 0x46d   : > { %3310 = vrot.lane.b32.xlu0 %v7664_v62, %s5058_s11  ;;  %4100 = vmatmul.mubr.f32.gmra.mrb[24].mxu1 %v3766_v9 }
 0x46e   : > { %4889 = vmatprep.mubr.msk.f32.mxu0 %vm2407_vm15, %v3759_v0  ;;  %v3087_v3 = vpop.permute.xlu1 %3086 }
 0x46f   : > { %3165 = vst.msk [vmem:[#allocation5 + $0x1b0] sm:$0xff] %vm3146_vm6, %v3087_v3  ;;  %v3555_v22 = vpop.permute.xlu0 %3554  ;;  %4890 = vmatmul.mubr.msk.f32.gmra.mrb[56].mxu0 %vm2407_vm15, %v3762_v14 }
 0x470   : > { %3632 = vst.msk [vmem:[#allocation5 + $0x1b8] sm:$0xff] %vm3146_vm6, %v3555_v22  ;;  %2975 = vrot.lane.b32.xlu1 %v7589_v42, %s5062_s12  ;;  %4892 = vmatprep.mubr.msk.f32.mxu0 %vm2407_vm15, %v3765_v18 }
 0x471   : > { %3440 = vrot.lane.b32.xlu0 %v7716_v20, %s5062_s12 }
 0x472   : > { %v2749_v8 = vpop.permute.xlu1 %2748 }
 0x473   : > { %2826 = vst.msk [vmem:[#allocation5 + $0x1c8] sm:$0xff] %vm2806_vm9, %v2749_v8  ;;  %v3293_v44 = vpop.permute.xlu0 %3292  ;;  %4893 = vmatmul.mubr.msk.f32.gmra.mrb[58].mxu0 %vm2407_vm15, %v3768_v26 }
 0x474   : > { %3369 = vst.msk [vmem:[#allocation5 + $0x1d0] sm:$0xff] %vm2806_vm9, %v3293_v44  ;;  %3106 = vrot.lane.b32.xlu1 %v7641_v38, %s5064_s19  ;;  %4895 = vmatprep.mubr.msk.f32.mxu0 %vm2407_vm15, %v3771_v53  ;;  %v3777_v38 = vld [vmem:[#allocation5 + $0x1f0] sm:$0xff] }
 0x475   : > { %3574 = vrot.lane.b32.xlu0 %v7731_v12, %s5064_s19 }
 0x476   : > { %v2958_v42 = vpop.permute.xlu1 %2957  ;;  %v3769_v39 = vld [vmem:[#allocation5 + $0x1b0] sm:$0xff] }
 0x477   : > { %3035 = vst.msk [vmem:[#allocation5 + $0x1c8] sm:$0xff] %vm3015_vm5, %v2958_v42  ;;  %v3423_v46 = vpop.permute.xlu0 %3422  ;;  %v3770_v50 = vld [vmem:[#allocation5 + $0x1b8] sm:$0xff]  ;;  %4896 = vmatmul.mubr.msk.f32.gmra.mrb[60].mxu0 %vm2407_vm15, %v3774_v21 }
 0x478   : > { %3499 = vst.msk [vmem:[#allocation5 + $0x1d0] sm:$0xff] %vm3015_vm5, %v3423_v46  ;;  %4104 = vmatprep.mubr.f32.mxu1 %v3770_v50  ;;  %2768 = vrot.lane.b32.xlu1 %v7586_v2, %s5058_s11 }
 0x479   : > { %3312 = vrot.lane.b32.xlu0 %v7667_v15, %s5058_s11  ;;  %4105 = vmatmul.mubr.f32.gmra.mrb[26].mxu1 %v3769_v39 }
 0x47a   : > { %4898 = vmatprep.mubr.msk.f32.mxu0 %vm2407_vm15, %v3777_v38  ;;  %v3089_v12 = vpop.permute.xlu1 %3088 }
 0x47b   : > { %3166 = vst.msk [vmem:[#allocation5 + $0x1c8] sm:$0xff] %vm3146_vm6, %v3089_v12  ;;  %v3557_v52 = vpop.permute.xlu0 %3556  ;;  %4899 = vmatmul.mubr.msk.f32.gmra.mrb[62].mxu0 %vm2407_vm15, %v3780_v61 }
 0x47c   : > { %3633 = vst.msk [vmem:[#allocation5 + $0x1d0] sm:$0xff] %vm3146_vm6, %v3557_v52  ;;  %2977 = vrot.lane.b32.xlu1 %v7592_v58, %s5062_s12  ;;  %4901 = vmatprep.mubr.msk.f32.mxu0 %vm2407_vm15, %v3783_v6 }
 0x47d   : > { %3442 = vrot.lane.b32.xlu0 %v7718_v13, %s5062_s12 }
 0x47e   : > { %v2751_v2 = vpop.permute.xlu1 %2750 }
 0x47f   : > { %2827 = vst.msk [vmem:[#allocation5 + $0x1e0] sm:$0xff] %vm2806_vm9, %v2751_v2  ;;  %v3295_v45 = vpop.permute.xlu0 %3294  ;;  %4902 = vmatmul.mubr.msk.f32.gmra.mrb[64].mxu0 %vm2407_vm15, %v3786_v19 }
 0x480   : > { %3370 = vst.msk [vmem:[#allocation5 + $0x1e8] sm:$0xff] %vm2806_vm9, %v3295_v45  ;;  %3108 = vrot.lane.b32.xlu1 %v7643_v60, %s5064_s19  ;;  %4904 = vmatprep.mubr.msk.f32.mxu0 %vm2407_vm15, %v3789_v34  ;;  %v3795_v60 = vld [vmem:[#allocation5 + $0x280] sm:$0xff] }
 0x481   : > { %3576 = vrot.lane.b32.xlu0 %v7734_v49, %s5064_s19 }
 0x482   : > { %v2960_v58 = vpop.permute.xlu1 %2959  ;;  %v3772_v47 = vld [vmem:[#allocation5 + $0x1c8] sm:$0xff] }
 0x483   : > { %3036 = vst.msk [vmem:[#allocation5 + $0x1e0] sm:$0xff] %vm3015_vm5, %v2960_v58  ;;  %v3425_v56 = vpop.permute.xlu0 %3424  ;;  %v3773_v59 = vld [vmem:[#allocation5 + $0x1d0] sm:$0xff]  ;;  %4905 = vmatmul.mubr.msk.f32.gmra.mrb[66].mxu0 %vm2407_vm15, %v3792_v54 }
 0x484   : > { %3500 = vst.msk [vmem:[#allocation5 + $0x1e8] sm:$0xff] %vm3015_vm5, %v3425_v56  ;;  %4109 = vmatprep.mubr.f32.mxu1 %v3773_v59  ;;  %2770 = vrot.lane.b32.xlu1 %v7658_v27, %s5058_s11  ;;  %v3807_v27 = vld [vmem:[#allocation5 + $0x2e0] sm:$0xff] }
 0x485   : > { %3314 = vrot.lane.b32.xlu0 %v7741_v5, %s5058_s11  ;;  %4110 = vmatmul.mubr.f32.gmra.mrb[28].mxu1 %v3772_v47 }
 0x486   : > { %4907 = vmatprep.mubr.msk.f32.mxu0 %vm2407_vm15, %v3795_v60  ;;  %v3091_v49 = vpop.permute.xlu1 %3090 }
 0x487   : > { %3167 = vst.msk [vmem:[#allocation5 + $0x1e0] sm:$0xff] %vm3146_vm6, %v3091_v49  ;;  %v3559_v17 = vpop.permute.xlu0 %3558  ;;  %4908 = vmatmul.mubr.msk.f32.gmra.mrb[68].mxu0 %vm2407_vm15, %v3798_v28 }
 0x488   : > { %3634 = vst.msk [vmem:[#allocation5 + $0x1e8] sm:$0xff] %vm3146_vm6, %v3559_v17  ;;  %2979 = vrot.lane.b32.xlu1 %v7664_v62, %s5062_s12  ;;  %4910 = vmatprep.mubr.msk.f32.mxu0 %vm2407_vm15, %v3801_v33  ;;  %v3810_v62 = vld [vmem:[#allocation5 + $0x2f8] sm:$0xff] }
 0x489   : > { %3444 = vrot.lane.b32.xlu0 %v7791_v24, %s5062_s12 }
 0x48a   : > { %v2753_v5 = vpop.permute.xlu1 %2752 }
 0x48b   : > { %2828 = vst.msk [vmem:[#allocation5 + $0x1f8] sm:$0xff] %vm2806_vm9, %v2753_v5  ;;  %v3297_v29 = vpop.permute.xlu0 %3296  ;;  %4911 = vmatmul.mubr.msk.f32.gmra.mrb[70].mxu0 %vm2407_vm15, %v3804_v35 }
 0x48c   : > { %3371 = vst.msk [vmem:[#allocation5 + $0x200] sm:$0xff] %vm2806_vm9, %v3297_v29  ;;  %3110 = vrot.lane.b32.xlu1 %v7716_v20, %s5064_s19  ;;  %4913 = vmatprep.mubr.msk.f32.mxu0 %vm2407_vm15, %v3807_v27 }
 0x48d   : > { %3578 = vrot.lane.b32.xlu0 %v3515_v43, %s5064_s19 }
 0x48e   : > { %v2962_v24 = vpop.permute.xlu1 %2961  ;;  %v3775_v36 = vld [vmem:[#allocation5 + $0x1e0] sm:$0xff]  ;;  %v8038_v1 = vpop.f32.mrb[0].mxu1 }
 0x48f   : > { %3037 = vst.msk [vmem:[#allocation5 + $0x1f8] sm:$0xff] %vm3015_vm5, %v2962_v24  ;;  %v3427_v7 = vpop.permute.xlu0 %3426  ;;  %v3776_v55 = vld [vmem:[#allocation5 + $0x1e8] sm:$0xff]  ;;  %4914 = vmatmul.mubr.msk.f32.gmra.mrb[72].mxu0 %vm2407_vm15, %v3810_v62  ;;  %v4043_v37 = vpop.f32.mrb[1].mxu1 }
 0x490   : > { %3501 = vst.msk [vmem:[#allocation5 + $0x200] sm:$0xff] %vm3015_vm5, %v3427_v7  ;;  %4114 = vmatprep.mubr.f32.mxu1 %v3776_v55  ;;  %2772 = vrot.lane.b32.xlu1 %v7661_v63, %s5058_s11  ;;  %v3517_v63 = vsel %vm721_vm3, %v3514_v30, %v3516_v48 }
 0x491   : > { %3316 = vrot.lane.b32.xlu0 %v7744_v4, %s5058_s11  ;;  %4115 = vmatmul.mubr.f32.gmra.mrb[30].mxu1 %v3775_v36 }
 0x492   : > { %v3093_v20 = vpop.permute.xlu1 %3092 }
 0x493   : > { %3168 = vst.msk [vmem:[#allocation5 + $0x1f8] sm:$0xff] %vm3146_vm6, %v3093_v20  ;;  %v3561_v41 = vpop.permute.xlu0 %3560 }
 0x494   : > { %3635 = vst.msk [vmem:[#allocation5 + $0x200] sm:$0xff] %vm3146_vm6, %v3561_v41  ;;  %2981 = vrot.lane.b32.xlu1 %v7667_v15, %s5062_s12 }
 0x495   : > { %3446 = vrot.lane.b32.xlu0 %v7793_v10, %s5062_s12 }
 0x496   : > { %v2755_v31 = vpop.permute.xlu1 %2754 }
 0x497   : > { %2829 = vst.msk [vmem:[#allocation5 + $0x210] sm:$0xff] %vm2806_vm9, %v2755_v31  ;;  %v3299_v4 = vpop.permute.xlu0 %3298 }
 0x498   : > { %3372 = vst.msk [vmem:[#allocation5 + $0x218] sm:$0xff] %vm2806_vm9, %v3299_v4  ;;  %v8056_v32 = vpop.f32.mrb[2].mxu1  ;;  %3112 = vrot.lane.b32.xlu1 %v7718_v13, %s5064_s19 }
 0x499   : > { %v4048_v23 = vpop.f32.mrb[3].mxu1  ;;  %3580 = vrot.lane.b32.xlu0 %v3517_v63, %s5064_s19 }
 0x49a   : > { %v2964_v15 = vpop.permute.xlu1 %2963  ;;  %v3778_v40 = vld [vmem:[#allocation5 + $0x1f8] sm:$0xff] }
 0x49b   : > { %3038 = vst.msk [vmem:[#allocation5 + $0x210] sm:$0xff] %vm3015_vm5, %v2964_v15  ;;  %v3429_v10 = vpop.permute.xlu0 %3428  ;;  %v3779_v25 = vld [vmem:[#allocation5 + $0x200] sm:$0xff] }
 0x49c   : > { %3502 = vst.msk [vmem:[#allocation5 + $0x218] sm:$0xff] %vm3015_vm5, %v3429_v10  ;;  %4119 = vmatprep.mubr.f32.mxu1 %v3779_v25 }
 0x49d   : > { %4120 = vmatmul.mubr.f32.gmra.mrb[32].mxu1 %v3778_v40 }
 0x49e   : > { %v3095_v57 = vpop.permute.xlu1 %3094 }
 0x49f   : > { %3169 = vst.msk [vmem:[#allocation5 + $0x210] sm:$0xff] %vm3146_vm6, %v3095_v57  ;;  %v3563_v9 = vpop.permute.xlu0 %3562 }
 0x4a0   : > { %3636 = vst.msk [vmem:[#allocation5 + $0x218] sm:$0xff] %vm3146_vm6, %v3563_v9 }
 0x4a2   : > { %v2757_v13 = vpop.permute.xlu1 %2756  ;;  %v8066_v51 = vpop.f32.mrb[4].mxu1 }
 0x4a3   : > { %2830 = vst.msk [vmem:[#allocation5 + $0x228] sm:$0xff] %vm2806_vm9, %v2757_v13  ;;  %v3301_v16 = vpop.permute.xlu0 %3300  ;;  %v4053_v0 = vpop.f32.mrb[5].mxu1 }
 0x4a4   : > { %3373 = vst.msk [vmem:[#allocation5 + $0x230] sm:$0xff] %vm2806_vm9, %v3301_v16 }
 0x4a6   : > { %v2966_v3 = vpop.permute.xlu1 %2965  ;;  %v3781_v14 = vld [vmem:[#allocation5 + $0x210] sm:$0xff] }
 0x4a7   : > { %3039 = vst.msk [vmem:[#allocation5 + $0x228] sm:$0xff] %vm3015_vm5, %v2966_v3  ;;  %v3431_v22 = vpop.permute.xlu0 %3430  ;;  %v3782_v18 = vld [vmem:[#allocation5 + $0x218] sm:$0xff] }
 0x4a8   : > { %3503 = vst.msk [vmem:[#allocation5 + $0x230] sm:$0xff] %vm3015_vm5, %v3431_v22  ;;  %4124 = vmatprep.mubr.f32.mxu1 %v3782_v18 }
 0x4a9   : > { %4125 = vmatmul.mubr.f32.gmra.mrb[34].mxu1 %v3781_v14 }
 0x4aa   : > { %v3097_v8 = vpop.permute.xlu1 %3096 }
 0x4ab   : > { %3170 = vst.msk [vmem:[#allocation5 + $0x228] sm:$0xff] %vm3146_vm6, %v3097_v8  ;;  %v3565_v26 = vpop.permute.xlu0 %3564 }
 0x4ac   : > { %3637 = vst.msk [vmem:[#allocation5 + $0x230] sm:$0xff] %vm3146_vm6, %v3565_v26  ;;  %v8073_v44 = vpop.f32.mrb[6].mxu1 }
 0x4ad   : > { %v4058_v53 = vpop.f32.mrb[7].mxu1 }
 0x4ae   : > { %v2759_v42 = vpop.permute.xlu1 %2758 }
 0x4af   : > { %2831 = vst.msk [vmem:[#allocation5 + $0x240] sm:$0xff] %vm2806_vm9, %v2759_v42  ;;  %v3303_v21 = vpop.permute.xlu0 %3302 }
 0x4b0   : > { %3374 = vst.msk [vmem:[#allocation5 + $0x248] sm:$0xff] %vm2806_vm9, %v3303_v21 }
 0x4b2   : > { %v2968_v39 = vpop.permute.xlu1 %2967  ;;  %v3784_v46 = vld [vmem:[#allocation5 + $0x228] sm:$0xff] }
 0x4b3   : > { %3040 = vst.msk [vmem:[#allocation5 + $0x240] sm:$0xff] %vm3015_vm5, %v2968_v39  ;;  %v3433_v50 = vpop.permute.xlu0 %3432  ;;  %v3785_v38 = vld [vmem:[#allocation5 + $0x230] sm:$0xff] }
 0x4b4   : > { %3504 = vst.msk [vmem:[#allocation5 + $0x248] sm:$0xff] %vm3015_vm5, %v3433_v50  ;;  %4129 = vmatprep.mubr.f32.mxu1 %v3785_v38 }
 0x4b5   : > { %4130 = vmatmul.mubr.f32.gmra.mrb[36].mxu1 %v3784_v46 }
 0x4b6   : > { %v3099_v12 = vpop.permute.xlu1 %3098  ;;  %v8080_v61 = vpop.f32.mrb[8].mxu1 }
 0x4b7   : > { %3171 = vst.msk [vmem:[#allocation5 + $0x240] sm:$0xff] %vm3146_vm6, %v3099_v12  ;;  %v3567_v52 = vpop.permute.xlu0 %3566  ;;  %v4063_v6 = vpop.f32.mrb[9].mxu1 }
 0x4b8   : > { %3638 = vst.msk [vmem:[#allocation5 + $0x248] sm:$0xff] %vm3146_vm6, %v3567_v52 }
 0x4ba   : > { %v2761_v2 = vpop.permute.xlu1 %2760 }
 0x4bb   : > { %2832 = vst.msk [vmem:[#allocation5 + $0x258] sm:$0xff] %vm2806_vm9, %v2761_v2  ;;  %v3305_v19 = vpop.permute.xlu0 %3304 }
 0x4bc   : > { %3375 = vst.msk [vmem:[#allocation5 + $0x260] sm:$0xff] %vm2806_vm9, %v3305_v19 }
 0x4be   : > { %v2970_v45 = vpop.permute.xlu1 %2969  ;;  %v3787_v34 = vld [vmem:[#allocation5 + $0x240] sm:$0xff] }
 0x4bf   : > { %3041 = vst.msk [vmem:[#allocation5 + $0x258] sm:$0xff] %vm3015_vm5, %v2970_v45  ;;  %v3435_v58 = vpop.permute.xlu0 %3434  ;;  %v3788_v54 = vld [vmem:[#allocation5 + $0x248] sm:$0xff]  ;;  %v8087_v47 = vpop.f32.mrb[10].mxu1 }
 0x4c0   : > { %3505 = vst.msk [vmem:[#allocation5 + $0x260] sm:$0xff] %vm3015_vm5, %v3435_v58  ;;  %4134 = vmatprep.mubr.f32.mxu1 %v3788_v54  ;;  %v4068_v56 = vpop.f32.mrb[11].mxu1 }
 0x4c1   : > { %4135 = vmatmul.mubr.f32.gmra.mrb[38].mxu1 %v3787_v34 }
 0x4c2   : > { %v3101_v59 = vpop.permute.xlu1 %3100 }
 0x4c3   : > { %3172 = vst.msk [vmem:[#allocation5 + $0x258] sm:$0xff] %vm3146_vm6, %v3101_v59  ;;  %v3569_v60 = vpop.permute.xlu0 %3568 }
 0x4c4   : > { %3639 = vst.msk [vmem:[#allocation5 + $0x260] sm:$0xff] %vm3146_vm6, %v3569_v60 }
 0x4c6   : > { %v2763_v49 = vpop.permute.xlu1 %2762 }
 0x4c7   : > { %2833 = vst.msk [vmem:[#allocation5 + $0x270] sm:$0xff] %vm2806_vm9, %v2763_v49  ;;  %v3307_v28 = vpop.permute.xlu0 %3306 }
 0x4c8   : > { %3376 = vst.msk [vmem:[#allocation5 + $0x278] sm:$0xff] %vm2806_vm9, %v3307_v28 }
 0x4ca   : > { %v2972_v11 = vpop.permute.xlu1 %2971  ;;  %v3790_v30 = vld [vmem:[#allocation5 + $0x258] sm:$0xff] }
 0x4cb   : > { %3042 = vst.msk [vmem:[#allocation5 + $0x270] sm:$0xff] %vm3015_vm5, %v2972_v11  ;;  %v3437_v17 = vpop.permute.xlu0 %3436  ;;  %v3791_v33 = vld [vmem:[#allocation5 + $0x260] sm:$0xff] }
 0x4cc   : > { %3506 = vst.msk [vmem:[#allocation5 + $0x278] sm:$0xff] %vm3015_vm5, %v3437_v17  ;;  %4139 = vmatprep.mubr.f32.mxu1 %v3791_v33 }
 0x4cd   : > { %4140 = vmatmul.mubr.f32.gmra.mrb[40].mxu1 %v3790_v30  ;;  %v8095_v5 = vpop.f32.mrb[32].mxu0 }
 0x4ce   : > { %v3103_v27 = vpop.permute.xlu1 %3102  ;;  %v4018_v43 = vpop.f32.mrb[33].mxu0 }
 0x4cf   : > { %3173 = vst.msk [vmem:[#allocation5 + $0x270] sm:$0xff] %vm3146_vm6, %v3103_v27  ;;  %v3571_v35 = vpop.permute.xlu0 %3570 }
 0x4d0   : > { %3640 = vst.msk [vmem:[#allocation5 + $0x278] sm:$0xff] %vm3146_vm6, %v3571_v35 }
 0x4d2   : > { %v2765_v29 = vpop.permute.xlu1 %2764 }
 0x4d3   : > { %2834 = vst.msk [vmem:[#allocation5 + $0x288] sm:$0xff] %vm2806_vm9, %v2765_v29  ;;  %v3309_v62 = vpop.permute.xlu0 %3308  ;;  %v8101_v24 = vpop.f32.mrb[12].mxu1 }
 0x4d4   : > { %3377 = vst.msk [vmem:[#allocation5 + $0x290] sm:$0xff] %vm2806_vm9, %v3309_v62  ;;  %v4073_v36 = vpop.f32.mrb[13].mxu1  ;;  %v8142_v62 = vld [vmem:[%s8278_s5] ss:$0 sm:$0xff] }
 0x4d6   : > { %v2974_v7 = vpop.permute.xlu1 %2973  ;;  %v3793_v55 = vld [vmem:[#allocation5 + $0x270] sm:$0xff] }
 0x4d7   : > { %3043 = vst.msk [vmem:[#allocation5 + $0x288] sm:$0xff] %vm3015_vm5, %v2974_v7  ;;  %v3439_v37 = vpop.permute.xlu0 %3438  ;;  %v3794_v20 = vld [vmem:[#allocation5 + $0x278] sm:$0xff]  ;;  %v4017_v7 = vadd.f32 %v8142_v62, %v8095_v5  ;;  %v4042_v5 = vadd.f32 %v8142_v62, %v8038_v1 }
 0x4d8   : > { %3507 = vst.msk [vmem:[#allocation5 + $0x290] sm:$0xff] %vm3015_vm5, %v3439_v37  ;;  %4144 = vmatprep.mubr.f32.mxu1 %v3794_v20 }
 0x4d9   : > { %4145 = vmatmul.mubr.f32.gmra.mrb[42].mxu1 %v3793_v55 }
 0x4da   : > { %v3105_v48 = vpop.permute.xlu1 %3104 }
 0x4db   : > { %3174 = vst.msk [vmem:[#allocation5 + $0x288] sm:$0xff] %vm3146_vm6, %v3105_v48  ;;  %v3573_v41 = vpop.permute.xlu0 %3572 }
 0x4dc   : > { %3641 = vst.msk [vmem:[#allocation5 + $0x290] sm:$0xff] %vm3146_vm6, %v3573_v41 }
 0x4de   : > { %v2767_v31 = vpop.permute.xlu1 %2766 }
 0x4df   : > { %2835 = vst.msk [vmem:[#allocation5 + $0x2a0] sm:$0xff] %vm2806_vm9, %v2767_v31  ;;  %v3311_v63 = vpop.permute.xlu0 %3310 }
 0x4e0   : > { %3378 = vst.msk [vmem:[#allocation5 + $0x2a8] sm:$0xff] %vm2806_vm9, %v3311_v63 }
 0x4e1   : > { %v8109_v23 = vpop.f32.mrb[34].mxu0 }
 0x4e2   : > { %v2976_v4 = vpop.permute.xlu1 %2975  ;;  %v3796_v15 = vld [vmem:[#allocation5 + $0x288] sm:$0xff]  ;;  %v4023_v10 = vpop.f32.mrb[35].mxu0  ;;  %v4022_v36 = vadd.f32 %v8142_v62, %v8109_v23 }
 0x4e3   : > { %3044 = vst.msk [vmem:[#allocation5 + $0x2a0] sm:$0xff] %vm3015_vm5, %v2976_v4  ;;  %v3441_v40 = vpop.permute.xlu0 %3440  ;;  %v3797_v25 = vld [vmem:[#allocation5 + $0x290] sm:$0xff] }
 0x4e4   : > { %3508 = vst.msk [vmem:[#allocation5 + $0x2a8] sm:$0xff] %vm3015_vm5, %v3441_v40  ;;  %4149 = vmatprep.mubr.f32.mxu1 %v3797_v25 }
 0x4e5   : > { %4150 = vmatmul.mubr.f32.gmra.mrb[44].mxu1 %v3796_v15 }
 0x4e6   : > { %v3107_v57 = vpop.permute.xlu1 %3106 }
 0x4e7   : > { %3175 = vst.msk [vmem:[#allocation5 + $0x2a0] sm:$0xff] %vm3146_vm6, %v3107_v57  ;;  %v3575_v9 = vpop.permute.xlu0 %3574  ;;  %v8115_v13 = vpop.f32.mrb[14].mxu1 }
 0x4e8   : > { %3642 = vst.msk [vmem:[#allocation5 + $0x2a8] sm:$0xff] %vm3146_vm6, %v3575_v9  ;;  %v4078_v16 = vpop.f32.mrb[15].mxu1 }
 0x4ea   : > { %v2769_v0 = vpop.permute.xlu1 %2768 }
 0x4eb   : > { %2836 = vst.msk [vmem:[#allocation5 + $0x2b8] sm:$0xff] %vm2806_vm9, %v2769_v0  ;;  %v3313_v3 = vpop.permute.xlu0 %3312 }
 0x4ec   : > { %3379 = vst.msk [vmem:[#allocation5 + $0x2c0] sm:$0xff] %vm2806_vm9, %v3313_v3 }
 0x4ee   : > { %v2978_v14 = vpop.permute.xlu1 %2977  ;;  %v3799_v22 = vld [vmem:[#allocation5 + $0x2a0] sm:$0xff] }
 0x4ef   : > { %3045 = vst.msk [vmem:[#allocation5 + $0x2b8] sm:$0xff] %vm3015_vm5, %v2978_v14  ;;  %v3443_v18 = vpop.permute.xlu0 %3442  ;;  %v3800_v8 = vld [vmem:[#allocation5 + $0x2a8] sm:$0xff] }
 0x4f0   : > { %3509 = vst.msk [vmem:[#allocation5 + $0x2c0] sm:$0xff] %vm3015_vm5, %v3443_v18  ;;  %4154 = vmatprep.mubr.f32.mxu1 %v3800_v8 }
 0x4f1   : > { %4155 = vmatmul.mubr.f32.gmra.mrb[46].mxu1 %v3799_v22 }
 0x4f2   : > { %v3109_v26 = vpop.permute.xlu1 %3108 }
 0x4f3   : > { %3176 = vst.msk [vmem:[#allocation5 + $0x2b8] sm:$0xff] %vm3146_vm6, %v3109_v26  ;;  %v3577_v53 = vpop.permute.xlu0 %3576  ;;  %v4052_v26 = vadd.f32 %v8142_v62, %v8066_v51  ;;  %v4057_v51 = vadd.f32 %v8142_v62, %v8073_v44 }
 0x4f4   : > { %3643 = vst.msk [vmem:[#allocation5 + $0x2c0] sm:$0xff] %vm3146_vm6, %v3577_v53  ;;  %v4047_v53 = vadd.f32 %v8142_v62, %v8056_v32 }
 0x4f5   : > { %v4026_v21 = vpop.f32.mrb[36].mxu0 }
 0x4f6   : > { %v2771_v42 = vpop.permute.xlu1 %2770  ;;  %v4028_v46 = vpop.f32.mrb[37].mxu0  ;;  %v4027_v4 = vadd.f32 %v8142_v62, %v4026_v21 }
 0x4f7   : > { %2837 = vst.msk [vmem:[#allocation5 + $0x2d0] sm:$0xff] %vm2806_vm9, %v2771_v42  ;;  %v3315_v39 = vpop.permute.xlu0 %3314 }
 0x4f8   : > { %3380 = vst.msk [vmem:[#allocation5 + $0x2d8] sm:$0xff] %vm2806_vm9, %v3315_v39 }
 0x4fa   : > { %v2980_v50 = vpop.permute.xlu1 %2979  ;;  %v3802_v38 = vld [vmem:[#allocation5 + $0x2b8] sm:$0xff] }
 0x4fb   : > { %3046 = vst.msk [vmem:[#allocation5 + $0x2d0] sm:$0xff] %vm3015_vm5, %v2980_v50  ;;  %v3445_v12 = vpop.permute.xlu0 %3444  ;;  %v3803_v52 = vld [vmem:[#allocation5 + $0x2c0] sm:$0xff]  ;;  %v8127_v6 = vpop.f32.mrb[16].mxu1 }
 0x4fc   : > { %3510 = vst.msk [vmem:[#allocation5 + $0x2d8] sm:$0xff] %vm3015_vm5, %v3445_v12  ;;  %4159 = vmatprep.mubr.f32.mxu1 %v3803_v52  ;;  %v4083_v2 = vpop.f32.mrb[17].mxu1  ;;  %v4062_v12 = vadd.f32 %v8142_v62, %v8080_v61  ;;  %v4067_v61 = vadd.f32 %v8142_v62, %v8087_v47 }
 0x4fd   : > { %4160 = vmatmul.mubr.f32.gmra.mrb[48].mxu1 %v3802_v38 }
 0x4fe   : > { %v3111_v19 = vpop.permute.xlu1 %3110 }
 0x4ff   : > { %3177 = vst.msk [vmem:[#allocation5 + $0x2d0] sm:$0xff] %vm3146_vm6, %v3111_v19  ;;  %v3579_v45 = vpop.permute.xlu0 %3578 }
 0x500   : > { %3644 = vst.msk [vmem:[#allocation5 + $0x2d8] sm:$0xff] %vm3146_vm6, %v3579_v45 }
 0x502   : > { %v2773_v34 = vpop.permute.xlu1 %2772 }
 0x503   : > { %2838 = vst.msk [vmem:[#allocation5 + $0x2e8] sm:$0xff] %vm2806_vm9, %v2773_v34  ;;  %v3317_v58 = vpop.permute.xlu0 %3316 }
 0x504   : > { %3381 = vst.msk [vmem:[#allocation5 + $0x2f0] sm:$0xff] %vm2806_vm9, %v3317_v58 }
 0x506   : > { %v2982_v54 = vpop.permute.xlu1 %2981  ;;  %v3805_v56 = vld [vmem:[#allocation5 + $0x2d0] sm:$0xff] }
 0x507   : > { %3047 = vst.msk [vmem:[#allocation5 + $0x2e8] sm:$0xff] %vm3015_vm5, %v2982_v54  ;;  %v3447_v59 = vpop.permute.xlu0 %3446  ;;  %v3806_v60 = vld [vmem:[#allocation5 + $0x2d8] sm:$0xff]  ;;  %v4072_v54 = vadd.f32 %v8142_v62, %v8101_v24  ;;  %v4077_v24 = vadd.f32 %v8142_v62, %v8115_v13 }
 0x508   : > { %3511 = vst.msk [vmem:[#allocation5 + $0x2f0] sm:$0xff] %vm3015_vm5, %v3447_v59  ;;  %4164 = vmatprep.mubr.f32.mxu1 %v3806_v60 }
 0x509   : > { %4165 = vmatmul.mubr.f32.gmra.mrb[50].mxu1 %v3805_v56 }
 0x50a   : > { %v3113_v49 = vpop.permute.xlu1 %3112 }
 0x50b   : > { %3178 = vst.msk [vmem:[#allocation5 + $0x2e8] sm:$0xff] %vm3146_vm6, %v3113_v49  ;;  %v3581_v28 = vpop.permute.xlu0 %3580 }
 0x50c   : > { %3645 = vst.msk [vmem:[#allocation5 + $0x2f0] sm:$0xff] %vm3146_vm6, %v3581_v28 }
 0x50e   : > { %v4031_v11 = vpop.f32.mrb[38].mxu0 }
 0x50f   : > { %v4033_v30 = vpop.f32.mrb[39].mxu0  ;;  %v4032_v31 = vadd.f32 %v8142_v62, %v4031_v11  ;;  %v4082_v11 = vadd.f32 %v8142_v62, %v8127_v6 }
 0x512   : > { %v3808_v17 = vld [vmem:[#allocation5 + $0x2e8] sm:$0xff] }
 0x513   : > { %v8137_v33 = vpop.f32.mrb[18].mxu1  ;;  %v3809_v27 = vld [vmem:[#allocation5 + $0x2f0] sm:$0xff] }
 0x514   : > { %v4088_v35 = vpop.f32.mrb[19].mxu1  ;;  %4169 = vmatprep.mubr.f32.mxu1 %v3809_v27  ;;  %v4087_v6 = vadd.f32 %v8142_v62, %v8137_v33 }
 0x515   : > { %4170 = vmatmul.mubr.f32.gmra.mrb[52].mxu1 %v3808_v17 }
 0x522   : > { %v4036_v43 = vpop.f32.mrb[40].mxu0 }
 0x523   : > { %v4038_v29 = vpop.f32.mrb[41].mxu0  ;;  %v4037_v16 = vadd.f32 %v8142_v62, %v4036_v43 }
 0x526   : > { %v4870_v55 = vpop.f32.mrb[42].mxu0 }
 0x527   : > { %v4247_v37 = vadd.f32 %v4870_v55, %v4022_v36  ;;  %v4241_v20 = vpop.f32.mrb[43].mxu0 }
 0x528   : > { %v8148_v48 = vpop.f32.mrb[20].mxu1  ;;  %v4242_v41 = vadd.f32 %v4241_v20, %v4017_v7 }
 0x529   : > { %v4093_v63 = vpop.f32.mrb[21].mxu1  ;;  %v4433_v23 = vmul.f32 0.1, %v4247_v37  ;;  %vm4401_vm4 = vcmp.ge.f32.partialorder %v4247_v37, 0.0  ;;  %v4092_v36 = vadd.f32 %v8142_v62, %v8148_v48 }
 0x52a   : > { %v4432_v15 = vmul.f32 0.1, %v4242_v41  ;;  %v4873_v40 = vpop.f32.mrb[44].mxu0  ;;  %vm4400_vm3 = vcmp.ge.f32.partialorder %v4242_v41, 0.0 }
 0x52b   : > { %v4257_v10 = vadd.f32 %v4873_v40, %v4032_v31  ;;  %v4251_v25 = vpop.f32.mrb[45].mxu0  ;;  %v4465_v8 = vsel %vm4401_vm4, %v4247_v37, %v4433_v23 }
 0x52c   : > { %v4252_v57 = vadd.f32 %v4251_v25, %v4027_v4  ;;  %v4464_v9 = vsel %vm4400_vm3, %v4242_v41, %v4432_v15 }
 0x52d   : > { %4496 = vxpose.xlu0.b32.start [1/16] (narrow) %v4464_v9, 32  ;;  %v4435_v39 = vmul.f32 0.1, %v4257_v10  ;;  %vm4403_vm9 = vcmp.ge.f32.partialorder %v4257_v10, 0.0 }
 0x52e   : > { %v4876_v0 = vpop.f32.mrb[46].mxu0  ;;  %v4434_v22 = vmul.f32 0.1, %v4252_v57  ;;  %vm4402_vm15 = vcmp.ge.f32.partialorder %v4252_v57, 0.0 }
 0x52f   : > { %v4267_v3 = vadd.f32 %v4876_v0, %v4042_v5  ;;  %v4261_v14 = vpop.f32.mrb[47].mxu0  ;;  %v4467_v58 = vsel %vm4403_vm9, %v4257_v10, %v4435_v39 }
 0x530   : > { %v4262_v18 = vadd.f32 %v4261_v14, %v4037_v16  ;;  %v4466_v38 = vsel %vm4402_vm15, %v4252_v57, %v4434_v22 }
 0x531   : > { %4497 = vxpose.xlu0.b32.cont [2/16] (narrow) %v4465_v8, 32  ;;  %v4437_v44 = vmul.f32 0.1, %v4267_v3  ;;  %vm4405_vm0 = vcmp.ge.f32.partialorder %v4267_v3, 0.0 }
 0x532   : > { %v4879_v42 = vpop.f32.mrb[48].mxu0  ;;  %v4436_v45 = vmul.f32 0.1, %v4262_v18  ;;  %vm4404_vm14 = vcmp.ge.f32.partialorder %v4262_v18, 0.0 }
 0x533   : > { %v4277_v1 = vadd.f32 %v4879_v42, %v4052_v26  ;;  %v4271_v21 = vpop.f32.mrb[49].mxu0  ;;  %v4469_v29 = vsel %vm4405_vm0, %v4267_v3, %v4437_v44 }
 0x534   : > { %v4096_v46 = vpop.f32.mrb[22].mxu1  ;;  %v4272_v50 = vadd.f32 %v4271_v21, %v4047_v53  ;;  %v4468_v28 = vsel %vm4404_vm14, %v4262_v18, %v4436_v45 }
 0x535   : > { %v4098_v52 = vpop.f32.mrb[23].mxu1  ;;  %4498 = vxpose.xlu0.b32.cont [3/16] (narrow) %v4466_v38, 32  ;;  %v4439_v20 = vmul.f32 0.1, %v4277_v1  ;;  %vm4407_vm2 = vcmp.ge.f32.partialorder %v4277_v1, 0.0  ;;  %v4097_v48 = vadd.f32 %v8142_v62, %v4096_v46 }
 0x536   : > { %v4882_v2 = vpop.f32.mrb[50].mxu0  ;;  %v4438_v27 = vmul.f32 0.1, %v4272_v50  ;;  %vm4406_vm1 = vcmp.ge.f32.partialorder %v4272_v50, 0.0 }
 0x537   : > { %v8163_v19 = vadd.f32 %v4882_v2, %v4062_v12  ;;  %v4281_v32 = vpop.f32.mrb[51].mxu0  ;;  %v4471_v33 = vsel %vm4407_vm2, %v4277_v1, %v4439_v20 }
 0x538   : > { %v4282_v34 = vadd.f32 %v4281_v32, %v4057_v51  ;;  %v4470_v31 = vsel %vm4406_vm1, %v4272_v50, %v4438_v27 }
 0x539   : > { %4499 = vxpose.xlu0.b32.cont [4/16] (narrow) %v4467_v58, 32  ;;  %v4441_v5 = vmul.f32 0.1, %v8163_v19  ;;  %vm4409_vm8 = vcmp.ge.f32.partialorder %v8163_v19, 0.0 }
 0x53a   : > { %v4885_v56 = vpop.f32.mrb[52].mxu0  ;;  %v4440_v10 = vmul.f32 0.1, %v4282_v34  ;;  %vm4408_vm5 = vcmp.ge.f32.partialorder %v4282_v34, 0.0 }
 0x53b   : > { %v8169_v59 = vadd.f32 %v4885_v56, %v4072_v54  ;;  %v4291_v60 = vpop.f32.mrb[53].mxu0  ;;  %v4473_v21 = vsel %vm4409_vm8, %v8163_v19, %v4441_v5 }
 0x53c   : > { %v8171_v49 = vadd.f32 %v4291_v60, %v4067_v61  ;;  %v4472_v14 = vsel %vm4408_vm5, %v4282_v34, %v4440_v10 }
 0x53d   : > { %4500 = vxpose.xlu0.b32.cont [5/16] (narrow) %v4468_v28, 32  ;;  %v4443_v38 = vmul.f32 0.1, %v8169_v59  ;;  %vm4411_vm12 = vcmp.ge.f32.partialorder %v8169_v59, 0.0 }
 0x53e   : > { %v4888_v30 = vpop.f32.mrb[54].mxu0  ;;  %v4442_v42 = vmul.f32 0.1, %v8171_v49  ;;  %vm4410_vm11 = vcmp.ge.f32.partialorder %v8171_v49, 0.0 }
 0x53f   : > { %v8177_v17 = vadd.f32 %v4888_v30, %v4082_v11  ;;  %v4301_v47 = vpop.f32.mrb[55].mxu0  ;;  %v4475_v45 = vsel %vm4411_vm12, %v8169_v59, %v4443_v38 }
 0x540   : > { %v4101_v35 = vpop.f32.mrb[24].mxu1  ;;  %v8179_v43 = vadd.f32 %v4301_v47, %v4077_v24  ;;  %v4474_v52 = vsel %vm4410_vm11, %v8171_v49, %v4442_v42 }
 0x541   : > { %v4103_v7 = vpop.f32.mrb[25].mxu1  ;;  %4501 = vxpose.xlu0.b32.cont [6/16] (narrow) %v4469_v29, 32  ;;  %v4102_v63 = vadd.f32 %v8142_v62, %v4101_v35  ;;  %v4445_v60 = vmul.f32 0.1, %v8177_v17  ;;  %vm4413_vm4 = vcmp.ge.f32.partialorder %v8177_v17, 0.0 }
 0x542   : > { %v4891_v55 = vpop.f32.mrb[56].mxu0  ;;  %v4444_v19 = vmul.f32 0.1, %v8179_v43  ;;  %vm4412_vm13 = vcmp.ge.f32.partialorder %v8179_v43, 0.0 }
 0x543   : > { %v8185_v13 = vadd.f32 %v4891_v55, %v4092_v36  ;;  %v4311_v37 = vpop.f32.mrb[57].mxu0  ;;  %v4477_v30 = vsel %vm4413_vm4, %v8177_v17, %v4445_v60 }
 0x544   : > { %v8187_v41 = vadd.f32 %v4311_v37, %v4087_v6  ;;  %v4476_v44 = vsel %vm4412_vm13, %v8179_v43, %v4444_v19 }
 0x545   : > { %4502 = vxpose.xlu0.b32.cont [7/16] (narrow) %v4470_v31, 32  ;;  %v4447_v35 = vmul.f32 0.1, %v8185_v13  ;;  %vm4415_vm9 = vcmp.ge.f32.partialorder %v8185_v13, 0.0 }
 0x546   : > { %v4894_v4 = vpop.f32.mrb[58].mxu0  ;;  %v4446_v24 = vmul.f32 0.1, %v8187_v41  ;;  %vm4414_vm15 = vcmp.ge.f32.partialorder %v8187_v41, 0.0 }
 0x547   : > { %v4327_v15 = vadd.f32 %v4894_v4, %v4102_v63  ;;  %v4321_v40 = vpop.f32.mrb[59].mxu0  ;;  %v4479_v17 = vsel %vm4415_vm9, %v8185_v13, %v4447_v35 }
 0x548   : > { %v4322_v25 = vadd.f32 %v4321_v40, %v4097_v48  ;;  %v4478_v29 = vsel %vm4414_vm15, %v8187_v41, %v4446_v24 }
 0x549   : > { %4503 = vxpose.xlu0.b32.cont [8/16] (narrow) %v4471_v33, 32  ;;  %v4449_v16 = vmul.f32 0.1, %v4327_v15  ;;  %vm4417_vm7 = vcmp.ge.f32.partialorder %v4327_v15, 0.0 }
 0x54a   : > { %v4448_v23 = vmul.f32 0.1, %v4322_v25  ;;  %v4897_v57 = vpop.f32.mrb[60].mxu0  ;;  %vm4416_vm6 = vcmp.ge.f32.partialorder %v4322_v25, 0.0 }
 0x54b   : > { %v4331_v9 = vpop.f32.mrb[61].mxu0  ;;  %v4481_v1 = vsel %vm4417_vm7, %v4327_v15, %v4449_v16 }
 0x54c   : > { %v4106_v0 = vpop.f32.mrb[26].mxu1  ;;  %v4480_v3 = vsel %vm4416_vm6, %v4322_v25, %v4448_v23 }
 0x54d   : > { %v4107_v22 = vadd.f32 %v8142_v62, %v4106_v0  ;;  %v4108_v18 = vpop.f32.mrb[27].mxu1  ;;  %4528 = vxpose.xlu1.b32.start [1/16] (narrow) %v4480_v3, 32  ;;  %4504 = vxpose.xlu0.b32.cont [9/16] (narrow) %v4472_v14, 32 }
 0x54e   : > { %v8194_v8 = vpop.f32.mrb[62].mxu0 }
 0x54f   : > { %v4332_v26 = vadd.f32 %v4331_v9, %v4107_v22  ;;  %v4341_v53 = vpop.f32.mrb[63].mxu0 }
 0x551   : > { %v4450_v39 = vmul.f32 0.1, %v4332_v26  ;;  %4529 = vxpose.xlu1.b32.cont [2/16] (narrow) %v4481_v1, 32  ;;  %4505 = vxpose.xlu0.b32.cont [10/16] (narrow) %v4473_v21, 32  ;;  %vm4418_vm10 = vcmp.ge.f32.partialorder %v4332_v26, 0.0 }
 0x552   : > { %v8199_v46 = vpop.f32.mrb[64].mxu0 }
 0x553   : > { %v4351_v50 = vpop.f32.mrb[65].mxu0  ;;  %v4482_v12 = vsel %vm4418_vm10, %v4332_v26, %v4450_v39 }
 0x555   : > { %4530 = vxpose.xlu1.b32.cont [3/16] (narrow) %v4482_v12, 32  ;;  %4506 = vxpose.xlu0.b32.cont [11/16] (narrow) %v4474_v52, 32 }
 0x556   : > { %v8204_v51 = vpop.f32.mrb[66].mxu0 }
 0x557   : > { %v8206_v2 = vpop.f32.mrb[67].mxu0 }
 0x558   : > { %v4111_v32 = vpop.f32.mrb[28].mxu1 }
 0x559   : > { %v4112_v34 = vadd.f32 %v8142_v62, %v4111_v32  ;;  %v4113_v58 = vpop.f32.mrb[29].mxu1  ;;  %4507 = vxpose.xlu0.b32.cont [12/16] (narrow) %v4475_v45, 32 }
 0x55a   : > { %v8212_v54 = vpop.f32.mrb[68].mxu0 }
 0x55b   : > { %v4337_v61 = vadd.f32 %v4897_v57, %v4112_v34  ;;  %v8214_v56 = vpop.f32.mrb[69].mxu0 }
 0x55d   : > { %4508 = vxpose.xlu0.b32.cont [13/16] (narrow) %v4476_v44, 32  ;;  %vm4419_vm3 = vcmp.ge.f32.partialorder %v4337_v61, 0.0  ;;  %v4451_v49 = vmul.f32 0.1, %v4337_v61 }
 0x55e   : > { %v8219_v59 = vpop.f32.mrb[70].mxu0 }
 0x55f   : > { %v8221_v28 = vpop.f32.mrb[71].mxu0  ;;  %v4483_v11 = vsel %vm4419_vm3, %v4337_v61, %v4451_v49 }
 0x560   : > { %4531 = vxpose.xlu1.b32.cont [4/16] (narrow) %v4483_v11, 32 }
 0x561   : > { %4509 = vxpose.xlu0.b32.cont [14/16] (narrow) %v4477_v30, 32 }
 0x562   : > { %v8226_v47 = vpop.f32.mrb[72].mxu0 }
 0x563   : > { %v8228_v27 = vpop.f32.mrb[73].mxu0 }
 0x564   : > { %v4116_v43 = vpop.f32.mrb[30].mxu1 }
 0x565   : > { %v4117_v36 = vadd.f32 %v8142_v62, %v4116_v43  ;;  %v4118_v7 = vpop.f32.mrb[31].mxu1  ;;  %4510 = vxpose.xlu0.b32.cont [15/16] (narrow) %v4478_v29, 32 }
 0x567   : > { %v4342_v6 = vadd.f32 %v4341_v53, %v4117_v36 }
 0x569   : > { %4511 = vxpose.xlu0.b32.end [16/16] (narrow) %v4479_v17, 32  ;;  %vm4420_vm14 = vcmp.ge.f32.partialorder %v4342_v6, 0.0  ;;  %v4452_v55 = vmul.f32 0.1, %v4342_v6 }
 0x56b   : > { %v4484_v37 = vsel %vm4420_vm14, %v4342_v6, %v4452_v55 }
 0x56c   : > { %4532 = vxpose.xlu1.b32.cont [5/16] (narrow) %v4484_v37, 32 }
 0x570   : > { %v4121_v20 = vpop.f32.mrb[32].mxu1 }
 0x571   : > { %v4122_v31 = vadd.f32 %v8142_v62, %v4121_v20  ;;  %v4123_v63 = vpop.f32.mrb[33].mxu1 }
 0x573   : > { %v4347_v41 = vadd.f32 %v8194_v8, %v4122_v31 }
 0x575   : > { %vm4421_vm0 = vcmp.ge.f32.partialorder %v4347_v41, 0.0  ;;  %v4453_v48 = vmul.f32 0.1, %v4347_v41 }
 0x577   : > { %v4485_v4 = vsel %vm4421_vm0, %v4347_v41, %v4453_v48 }
 0x578   : > { %4533 = vxpose.xlu1.b32.cont [6/16] (narrow) %v4485_v4, 32 }
 0x57c   : > { %v4126_v15 = vpop.f32.mrb[34].mxu1 }
 0x57d   : > { %v4127_v40 = vadd.f32 %v8142_v62, %v4126_v15  ;;  %v4128_v10 = vpop.f32.mrb[35].mxu1 }
 0x57f   : > { %v4352_v13 = vadd.f32 %v4351_v50, %v4127_v40 }
 0x581   : > { %vm4422_vm1 = vcmp.ge.f32.partialorder %v4352_v13, 0.0  ;;  %v4454_v25 = vmul.f32 0.1, %v4352_v13 }
 0x583   : > { %v4486_v33 = vsel %vm4422_vm1, %v4352_v13, %v4454_v25 }
 0x584   : > { %4534 = vxpose.xlu1.b32.cont [7/16] (narrow) %v4486_v33, 32 }
 0x588   : > { %v4131_v23 = vpop.f32.mrb[36].mxu1 }
 0x589   : > { %v4132_v57 = vadd.f32 %v8142_v62, %v4131_v23  ;;  %v4133_v9 = vpop.f32.mrb[37].mxu1 }
 0x58b   : > { %v4357_v5 = vadd.f32 %v8199_v46, %v4132_v57 }
 0x58d   : > { %vm4423_vm2 = vcmp.ge.f32.partialorder %v4357_v5, 0.0  ;;  %v4455_v16 = vmul.f32 0.1, %v4357_v5 }
 0x58f   : > { %v4487_v0 = vsel %vm4423_vm2, %v4357_v5, %v4455_v16 }
 0x590   : > { %4535 = vxpose.xlu1.b32.cont [8/16] (narrow) %v4487_v0, 32 }
 0x594   : > { %v4136_v3 = vpop.f32.mrb[38].mxu1 }
 0x595   : > { %v4137_v14 = vadd.f32 %v8142_v62, %v4136_v3  ;;  %v4138_v22 = vpop.f32.mrb[39].mxu1 }
 0x597   : > { %v4362_v18 = vadd.f32 %v8206_v2, %v4137_v14 }
 0x599   : > { %vm4424_vm5 = vcmp.ge.f32.partialorder %v4362_v18, 0.0  ;;  %v4456_v8 = vmul.f32 0.1, %v4362_v18 }
 0x59b   : > { %v4488_v26 = vsel %vm4424_vm5, %v4362_v18, %v4456_v8 }
 0x59c   : > { %4536 = vxpose.xlu1.b32.cont [9/16] (narrow) %v4488_v26, 32 }
 0x5a0   : > { %v4141_v53 = vpop.f32.mrb[40].mxu1 }
 0x5a1   : > { %v4142_v42 = vadd.f32 %v8142_v62, %v4141_v53  ;;  %v4143_v1 = vpop.f32.mrb[41].mxu1 }
 0x5a3   : > { %v4367_v21 = vadd.f32 %v8204_v51, %v4142_v42 }
 0x5a5   : > { %vm4425_vm6 = vcmp.ge.f32.partialorder %v4367_v21, 0.0  ;;  %v4457_v39 = vmul.f32 0.1, %v4367_v21 }
 0x5a7   : > { %v4489_v46 = vsel %vm4425_vm6, %v4367_v21, %v4457_v39 }
 0x5a8   : > { %4537 = vxpose.xlu1.b32.cont [10/16] (narrow) %v4489_v46, 32 }
 0x5ac   : > { %v4146_v50 = vpop.f32.mrb[42].mxu1 }
 0x5ad   : > { %v4147_v38 = vadd.f32 %v8142_v62, %v4146_v50  ;;  %v4148_v12 = vpop.f32.mrb[43].mxu1  ;;  %v4512_v51 = vpop.trf.xlu0 }
 0x5ae   : > { %4560 = vst [vmem:[%s8250_s13] sm:$0xff] %v4512_v51 }
 0x5af   : > { %v4372_v52 = vadd.f32 %v8214_v56, %v4147_v38 }
 0x5b1   : > { %vm4426_vm7 = vcmp.ge.f32.partialorder %v4372_v52, 0.0  ;;  %v4458_v2 = vmul.f32 0.1, %v4372_v52  ;;  %v4513_v58 = vpop.trf.xlu0 }
 0x5b2   : > { %4562 = vst [vmem:[%s8250_s13 + $0x10] sm:$0xff] %v4513_v58 }
 0x5b3   : > { %v4490_v19 = vsel %vm4426_vm7, %v4372_v52, %v4458_v2 }
 0x5b4   : > { %4538 = vxpose.xlu1.b32.cont [11/16] (narrow) %v4490_v19, 32 }
 0x5b5   : > { %v4514_v60 = vpop.trf.xlu0 }
 0x5b6   : > { %4564 = vst [vmem:[%s8250_s13 + $0x20] sm:$0xff] %v4514_v60 }
 0x5b8   : > { %v4151_v32 = vpop.f32.mrb[44].mxu1 }
 0x5b9   : > { %v4152_v45 = vadd.f32 %v8142_v62, %v4151_v32  ;;  %v4153_v34 = vpop.f32.mrb[45].mxu1  ;;  %v4515_v49 = vpop.trf.xlu0 }
 0x5ba   : > { %4566 = vst [vmem:[%s8250_s13 + $0x30] sm:$0xff] %v4515_v49 }
 0x5bb   : > { %v4377_v61 = vadd.f32 %v8212_v54, %v4152_v45 }
 0x5bd   : > { %vm4427_vm8 = vcmp.ge.f32.partialorder %v4377_v61, 0.0  ;;  %v4459_v56 = vmul.f32 0.1, %v4377_v61 }
 0x5bf   : > { %v4491_v44 = vsel %vm4427_vm8, %v4377_v61, %v4459_v56 }
 0x5c0   : > { %4539 = vxpose.xlu1.b32.cont [12/16] (narrow) %v4491_v44, 32 }
 0x5c4   : > { %v4156_v11 = vpop.f32.mrb[46].mxu1 }
 0x5c5   : > { %v4157_v24 = vadd.f32 %v8142_v62, %v4156_v11  ;;  %v4158_v30 = vpop.f32.mrb[47].mxu1 }
 0x5c7   : > { %v4382_v35 = vadd.f32 %v8221_v28, %v4157_v24 }
 0x5c9   : > { %vm4428_vm10 = vcmp.ge.f32.partialorder %v4382_v35, 0.0  ;;  %v4460_v43 = vmul.f32 0.1, %v4382_v35 }
 0x5cb   : > { %v4492_v29 = vsel %vm4428_vm10, %v4382_v35, %v4460_v43 }
 0x5cc   : > { %4540 = vxpose.xlu1.b32.cont [13/16] (narrow) %v4492_v29, 32 }
 0x5d0   : > { %v4161_v36 = vpop.f32.mrb[48].mxu1 }
 0x5d1   : > { %v4162_v54 = vadd.f32 %v8142_v62, %v4161_v36  ;;  %v4163_v7 = vpop.f32.mrb[49].mxu1 }
 0x5d3   : > { %v4387_v6 = vadd.f32 %v8219_v59, %v4162_v54 }
 0x5d5   : > { %vm4429_vm11 = vcmp.ge.f32.partialorder %v4387_v6, 0.0  ;;  %v4461_v17 = vmul.f32 0.1, %v4387_v6 }
 0x5d7   : > { %v4493_v55 = vsel %vm4429_vm11, %v4387_v6, %v4461_v17 }
 0x5d8   : > { %4541 = vxpose.xlu1.b32.cont [14/16] (narrow) %v4493_v55, 32 }
 0x5dc   : > { %v4166_v37 = vpop.f32.mrb[50].mxu1 }
 0x5dd   : > { %v4167_v20 = vadd.f32 %v8142_v62, %v4166_v37  ;;  %v4168_v31 = vpop.f32.mrb[51].mxu1 }
 0x5df   : > { %v4392_v28 = vadd.f32 %v8228_v27, %v4167_v20 }
 0x5e1   : > { %v4462_v63 = vmul.f32 0.1, %v4392_v28  ;;  %vm4430_vm12 = vcmp.ge.f32.partialorder %v4392_v28, 0.0 }
 0x5e3   : > { %v4494_v41 = vsel %vm4430_vm12, %v4392_v28, %v4462_v63 }
 0x5e4   : > { %4542 = vxpose.xlu1.b32.cont [15/16] (narrow) %v4494_v41, 32 }
 0x5e8   : > { %v4171_v48 = vpop.f32.mrb[52].mxu1 }
 0x5e9   : > { %v4172_v59 = vadd.f32 %v8142_v62, %v4171_v48  ;;  %v4173_v4 = vpop.f32.mrb[53].mxu1 }
 0x5eb   : > { %v4397_v15 = vadd.f32 %v8226_v47, %v4172_v59 }
 0x5ed   : > { %vm4431_vm13 = vcmp.ge.f32.partialorder %v4397_v15, 0.0  ;;  %v4463_v40 = vmul.f32 0.1, %v4397_v15 }
 0x5ef   : > { %v4495_v10 = vsel %vm4431_vm13, %v4397_v15, %v4463_v40 }
 0x5f0   : > { %4543 = vxpose.xlu1.b32.end [16/16] (narrow) %v4495_v10, 32 }
 0x634   : > { %v4544_v13 = vpop.trf.xlu1 }
 0x635   : > { %4561 = vst [vmem:[%s8250_s13 + $0x8] sm:$0xff] %v4544_v13 }
 0x638   : > { %v4545_v27 = vpop.trf.xlu1 }
 0x639   : > { %4563 = vst [vmem:[%s8250_s13 + $0x18] sm:$0xff] %v4545_v27 }
 0x63c   : > { %v4546_v25 = vpop.trf.xlu1 }
 0x63d   : > { %4565 = vst [vmem:[%s8250_s13 + $0x28] sm:$0xff] %v4546_v25 }
 0x640   : > { %v4547_v33 = vpop.trf.xlu1 }
 0x641   : > { %4567 = vst [vmem:[%s8250_s13 + $0x38] sm:$0xff] %v4547_v33 }
 0x642 PF: > { %s16_s21 = sadd.s32 1, %s5051_s21  }
 0x643   : > { %p13_p4 = scmp.ge.s32.totalorder %s16_s21, 4  }
 0x645   :  { %15 = sbr.rel (!%p13_p4) target bundleno = 1 (0x1), region = 79 }

</bundles_post_ra>
